<compile_context>
chip_gen: v5e
topology: v5e:2x2
jax: 0.10.0
libtpu: 0.0.40
codegen_flags: <defaults>
</compile_context>

<pallas_src>
import functools

import jax
import jax.numpy as jnp
from jax import lax
from jax.experimental import pallas as pl
from jax.experimental.pallas import tpu as pltpu


def _round_up(x, m):
    return (x + m - 1) // m * m


def _repconv_kernel(x_hbm, w_ref, b_ref, o_ref, xbuf, sem, acc_ref, *,
                    wp: int, rows_per_batch: int):
    # x_hbm : (B*Hp*Wp + 8, C1p)       spatially/channel padded input, flattened, stays in HBM
    # w_ref : (9, C1p, C2p)            fused 3x3 weights (1x1 + BN folded), resident in VMEM
    # b_ref : (1, C2p)                 fused bias, f32
    # o_ref : (1, TH, W, C2p)          output tile (compute dtype)
    # xbuf  : (2, (TH+2)*Wp + 8, C1p)  double-buffered VMEM scratch for the haloed input slab
    # sem   : (2,) DMA semaphores (one per slab buffer)
    # acc_ref: (TH*Wp, C2p)            f32 accumulator scratch
    b = pl.program_id(0)
    t = pl.program_id(1)
    n_t = pl.num_programs(1)

    th = o_ref.shape[1]
    w_out = o_ref.shape[2]
    c2p = o_ref.shape[3]
    m = th * wp                                   # matmul M per tap (spatially flattened)
    slab_rows = xbuf.shape[1]

    def slab_copy(tt, slot):
        # Haloed row slab: padded rows [tt*TH, tt*TH + TH + 2) of batch b (+ slack rows so the
        # flattened tap slices below never run past the buffer).
        start = pl.multiple_of(b * rows_per_batch + tt * m, 8)
        return pltpu.make_async_copy(
            x_hbm.at[pl.ds(start, slab_rows)], xbuf.at[slot], sem.at[slot])

    cur = t & 1

    # First tile of this batch: nothing was prefetched for us yet -> start its fetch now.
    @pl.when(t == 0)
    def _():
        slab_copy(0, 0).start()

    # Prefetch the NEXT tile's slab (same batch only -> valid under megacore batch sharding on
    # v7x); it lands in the other buffer while this step's 9 MXU taps run.  Buffer 1-cur was last
    # read by step t-1, whose compute has already completed.
    @pl.when(t + 1 < n_t)
    def _():
        slab_copy(t + 1, 1 - cur).start()

    slab_copy(t, cur).wait()                      # issued at step t-1 (or just above when t == 0)
    x_all = xbuf[cur]                             # ((TH+2)*Wp + 8, C1p)

    # 3x3 conv as 9 shifted, spatially-flattened matmuls on the MXU.  Tap (dy, dx) is the
    # flattened slab shifted by dy*Wp + dx; columns that wrap across a row boundary land in the
    # (discarded) right-halo columns of the output.  First tap overwrites -> no memset store.
    first = True
    for dy in range(3):
        for dx in range(3):
            off = dy * wp + dx                    # static offset
            contrib = lax.dot_general(
                x_all[off:off + m], w_ref[dy * 3 + dx],
                dimension_numbers=(((1,), (0,)), ((), ())),
                preferred_element_type=jnp.float32)
            if first:
                acc_ref[...] = contrib
                first = False
            else:
                acc_ref[...] += contrib

    # Epilogue (bias + SiLU, f32) only on the kept :W columns -- the W-halo/pad columns are
    # dropped before the EUP/VPU ever see them.
    acc = acc_ref[...].reshape(th, wp, c2p)[:, :w_out, :]
    acc = acc + b_ref[...][None]                  # (1, 1, C2p) bias broadcast
    y = acc * jax.nn.sigmoid(acc)                 # SiLU
    o_ref[...] = y[None].astype(o_ref.dtype)


def _vmem_capacity_bytes():
    """Physical VMEM of the local TPU generation (conservative 64 MiB fallback)."""
    try:
        cap = getattr(pltpu.get_tpu_info(), "vmem_capacity_bytes", None)
        if cap:
            return int(cap)
    except Exception:
        pass
    return 64 * 2 ** 20


def repconv_pallas(x_nchw, w3_oihw, w1_oihw, bn1, bn2, *, tile_h=None,
                   compute_dtype=jnp.bfloat16):
    """RepConv forward (inference BN).  x: (B, C1, H, W).  w3: (C2, C1, 3, 3).
    w1: (C2, C1, 1, 1).  bn = (gamma, beta, running_mean, running_var, eps).
    tile_h=None picks a generation-aware H tile (bigger on 128 MiB-VMEM chips)."""
    B, C1, H, W = x_nchw.shape
    C2 = w3_oihw.shape[0]

    g1, b1, m1, v1, e1 = bn1
    g2, b2, m2, v2, e2 = bn2
    s1 = g1 / jnp.sqrt(v1 + e1)                                    # (C2,)
    s2 = g2 / jnp.sqrt(v2 + e2)                                    # (C2,)

    # --- RepConv deploy fusion: fold BN into the convs, fold the 1x1 into the 3x3 centre tap.
    w3f = w3_oihw * s1[:, None, None, None]                        # (C2, C1, 3, 3)
    w1f = w1_oihw[:, :, 0, 0] * s2[:, None]                        # (C2, C1)
    w3f = w3f.at[:, :, 1, 1].add(w1f)
    bias = (b1 - m1 * s1) + (b2 - m2 * s2)                         # (C2,)

    # --- Padded / lane-friendly geometry.
    C1p = _round_up(C1, 128)              # contraction (lane) dim
    C2p = _round_up(C2, 128)              # output lane dim -> unmasked stores
    Wp = _round_up(W + 2, 8)              # +1 halo col each side, rounded to the sublane tile
    itm = jnp.dtype(compute_dtype).itemsize

    vmem_cap = _vmem_capacity_bytes()
    cap_bytes = min(100 * 2 ** 20, (vmem_cap * 4) // 5)   # ~100 MiB on v5e/v6e, ~51 MiB on v7x

    def footprint(th):
        slab = (th + 2) * Wp + 8
        return (2 * (9 * C1p * C2p * itm + C2p * 4)        # weights + bias (worst case 2 buffers)
                + 2 * th * W * C2p * itm                   # output block, double-buffered
                + 2 * slab * C1p * itm                     # input slab scratch, double-buffered
                + th * Wp * C2p * 4)                       # f32 accumulator scratch

    if tile_h is None:
        # Per-generation target (~64 rows with 128 MiB VMEM, ~32 on v7x), snapped to the largest
        # multiple of 8 that minimizes H-tile padding waste, shrunk to fit the VMEM budget.
        target = 64 if vmem_cap >= 96 * 2 ** 20 else 32
        cand_max = min(target, _round_up(H, 8))
        TH, best_waste = 8, None
        for cand in range(8, cand_max + 1, 8):
            waste = _round_up(H, cand) - H
            if best_waste is None or waste <= best_waste:
                TH, best_waste = cand, waste
        while TH > 8 and 2 * footprint(TH) > cap_bytes:
            TH -= 8
    else:
        TH = max(int(tile_h), 1)

    Hc = _round_up(H, TH)                 # output rows incl. tile padding
    Hp = Hc + 2                           # +1 halo row top / bottom
    n_t = Hc // TH
    slab_rows = (TH + 2) * Wp + 8         # per-step input slab (+slack for flattened tap shifts)

    # Weights -> (9, C1p, C2p) in compute dtype; bias -> (1, C2p) f32.
    w = jnp.transpose(w3f, (2, 3, 1, 0))                           # (3, 3, C1, C2)
    w = jnp.pad(w, ((0, 0), (0, 0), (0, C1p - C1), (0, C2p - C2)))
    w = w.reshape(9, C1p, C2p).astype(compute_dtype)
    bias_p = jnp.pad(bias, (0, C2p - C2)).astype(jnp.float32)[None, :]

    # Input -> NHWC + halo / tile / channel padding + compute-dtype cast, flattened over (H, W).
    # Single fused XLA producer of the kernel operand (layout + dtype must change anyway); the
    # channel pad is a no-op when C1 % 128 == 0.
    x_nhwc = jnp.transpose(x_nchw, (0, 2, 3, 1)).astype(compute_dtype)
    x_pad = jnp.pad(x_nhwc, ((0, 0), (1, 1 + Hc - H), (1, Wp - W - 1), (0, C1p - C1)))
    x_flat = jnp.pad(x_pad.reshape(B * Hp * Wp, C1p), ((0, 8), (0, 0)))

    vmem_limit = int(min(cap_bytes, max(16 * 2 ** 20, 2 * footprint(TH))))

    kernel = functools.partial(_repconv_kernel, wp=Wp, rows_per_batch=Hp * Wp)

    def build(resident_mode):
        if resident_mode is None:
            w_spec = pl.BlockSpec((9, C1p, C2p), lambda b, t: (0, 0, 0))
            b_spec = pl.BlockSpec((1, C2p), lambda b, t: (0, 0))
        else:
            # Constant block index -> single pipeline buffer (saves 9*C1p*C2p*itm of VMEM on v7x).
            w_spec = pl.BlockSpec((9, C1p, C2p), lambda b, t: (0, 0, 0),
                                  pipeline_mode=resident_mode)
            b_spec = pl.BlockSpec((1, C2p), lambda b, t: (0, 0),
                                  pipeline_mode=resident_mode)
        return pl.pallas_call(
            kernel,
            out_shape=jax.ShapeDtypeStruct((B, Hc, W, C2p), compute_dtype),
            grid=(B, n_t),
            in_specs=[
                pl.BlockSpec(memory_space=pl.ANY),                   # input stays in HBM
                w_spec,                                              # weights (resident)
                b_spec,                                              # bias    (resident)
            ],
            out_specs=pl.BlockSpec((1, TH, W, C2p), lambda b, t: (b, t, 0, 0)),
            scratch_shapes=[
                pltpu.VMEM((2, slab_rows, C1p), compute_dtype),      # double-buffered input slab
                pltpu.SemaphoreType.DMA((2,)),                       # one DMA semaphore per slot
                pltpu.VMEM((TH * Wp, C2p), jnp.float32),             # f32 accumulator
            ],
            compiler_params=pltpu.CompilerParams(
                # t must stay sequential per core so the cross-step slab prefetch is valid;
                # batches are still sharded across the two TensorCores on v7x.
                dimension_semantics=("parallel", "arbitrary"),
                vmem_limit_bytes=vmem_limit),
        )

    buffered = getattr(pl, "Buffered", None)
    if buffered is not None:
        try:
            out = build(buffered(1))(x_flat, w, bias_p)
        except Exception:
            # pipeline_mode not supported by this JAX/Mosaic -> default double-buffered weights.
            out = build(None)(x_flat, w, bias_p)
    else:
        out = build(None)(x_flat, w, bias_p)

    out = out[:, :H, :, :C2]                       # drop H-tile and channel padding
    return jnp.transpose(out, (0, 3, 1, 2)).astype(x_nchw.dtype)


def repconv_ref(x, w3, w1, bn1, bn2):
    """Pure-JAX reference (NCHW, like PyTorch), all f32."""
    def bn(y, p):
        g, b, m, v, e = p
        inv = g / jnp.sqrt(v + e)
        return (y - m[None, :, None, None]) * inv[None, :, None, None] + b[None, :, None, None]
    dn = ('NCHW', 'OIHW', 'NCHW')
    y1 = lax.conv_general_dilated(x, w3, (1, 1), ((1, 1), (1, 1)), dimension_numbers=dn)
    y2 = lax.conv_general_dilated(x, w1, (1, 1), ((0, 0), (0, 0)), dimension_numbers=dn)
    y = bn(y1, bn1) + bn(y2, bn2)
    return y * jax.nn.sigmoid(y)


if __name__ == "__main__":
    key = jax.random.PRNGKey(0)
    B, C1, C2, H, W = 2, 4, 8, 16, 16
    eps = 1e-5

    keys = jax.random.split(key, 11)
    x = jax.random.normal(keys[0], (B, C1, H, W), jnp.float32)
    w3 = jax.random.normal(keys[1], (C2, C1, 3, 3), jnp.float32) * 0.1
    w1 = jax.random.normal(keys[2], (C2, C1, 1, 1), jnp.float32) * 0.1

    bn1 = (jax.random.uniform(keys[3], (C2,), jnp.float32, 0.5, 1.5),   # gamma
           jax.random.normal(keys[4], (C2,), jnp.float32) * 0.1,        # beta
           jax.random.normal(keys[5], (C2,), jnp.float32) * 0.1,        # running_mean
           jax.random.uniform(keys[6], (C2,), jnp.float32, 0.5, 1.5),   # running_var
           eps)
    bn2 = (jax.random.uniform(keys[7], (C2,), jnp.float32, 0.5, 1.5),
           jax.random.normal(keys[8], (C2,), jnp.float32) * 0.1,
           jax.random.normal(keys[9], (C2,), jnp.float32) * 0.1,
           jax.random.uniform(keys[10], (C2,), jnp.float32, 0.5, 1.5),
           eps)

    ref = repconv_ref(x, w3, w1, bn1, bn2)

    # 1) f32 compute path with a small tile (n_t = 2) so the cross-step slab prefetch /
    #    double-buffer path is exercised; tight tolerance checks the fused structure
    #    (folding, tiling, halo DMA, epilogue slicing).
    out_f32 = jax.block_until_ready(
        repconv_pallas(x, w3, w1, bn1, bn2, tile_h=8, compute_dtype=jnp.float32))
    assert out_f32.shape == (B, C2, H, W)
    assert jnp.allclose(out_f32, ref, atol=1e-4, rtol=1e-4), \
        float(jnp.max(jnp.abs(out_f32 - ref)))

    # 2) Default bf16 MXU path with auto (generation-aware) tile_h: bf16 operands + bf16 output,
    #    f32 accumulation — tolerance relaxed for bf16 rounding.
    out = jax.block_until_ready(repconv_pallas(x, w3, w1, bn1, bn2))
    assert out.shape == (B, C2, H, W)
    assert jnp.allclose(out, ref, atol=4e-2, rtol=4e-2), \
        float(jnp.max(jnp.abs(out - ref)))

    print("KERNEL_OK")
</pallas_src>

<mosaic_0001>
module attributes {stable_mosaic.version = 11 : i64} {
  func.func @_repconv_kernel(%arg0: i32, %arg1: i32, %arg2: memref<872x128xf32, #tpu.memory_space<any>>, %arg3: memref<9x128x128xf32, #tpu.memory_space<vmem>>, %arg4: memref<1x128xf32, #tpu.memory_space<vmem>>, %arg5: memref<1x8x16x128xf32, #tpu.memory_space<vmem>>, %arg6: memref<2x248x128xf32, #tpu.memory_space<vmem>>, %arg7: memref<2x!tpu.dma_semaphore, #tpu.memory_space<semaphore_mem>>, %arg8: memref<192x128xf32, #tpu.memory_space<vmem>>) attributes {dimension_semantics = [#tpu.dimension_semantics<parallel>, #tpu.dimension_semantics<arbitrary>], iteration_bounds = array<i64: 2, 2>, scalar_prefetch = 0 : i64, scratch_operands = 3 : i64, tpu.core_type = #tpu.core_type<tc>, window_params = [{}, {pipeline_mode = #tpu.pipeline_mode<synchronous>, transform_indices = @transform_1, window_bounds = array<i64: 9, 128, 128>}, {pipeline_mode = #tpu.pipeline_mode<synchronous>, transform_indices = @transform_2, window_bounds = array<i64: 1, 128>}, {transform_indices = @transform_3, window_bounds = array<i64: 1, 8, 16, 128>}]} {
    %c1_i32 = arith.constant 1 : i32
    %0 = arith.andi %arg1, %c1_i32 : i32
    %c0_i32 = arith.constant 0 : i32
    %1 = arith.cmpi eq, %arg1, %c0_i32 : i32
    %2 = arith.extui %1 : i1 to i32
    %c0_i32_0 = arith.constant 0 : i32
    %3 = arith.cmpi ne, %2, %c0_i32_0 : i32
    scf.if %3 {
      %c432_i32_77 = arith.constant 432 : i32
      %96 = arith.muli %arg0, %c432_i32_77 : i32
      %c0_i32_78 = arith.constant 0 : i32
      %97 = arith.addi %96, %c0_i32_78 : i32
      %98 = tpu.assume_multiple %97, 8 : i32
      %c0_i32_79 = arith.constant 0 : i32
      %c0_i32_80 = arith.constant 0 : i32
      %c0_i32_81 = arith.constant 0 : i32
      %99 = tpu.memref_slice %arg2[%98, %c0_i32_81] : memref<872x128xf32, #tpu.memory_space<any>> -> memref<248x128xf32, #tpu.memory_space<any>>
      %c0_i32_82 = arith.constant 0 : i32
      %c0_i32_83 = arith.constant 0 : i32
      %100 = tpu.memref_slice %arg6[%c0_i32_79, %c0_i32_82, %c0_i32_83] : memref<2x248x128xf32, #tpu.memory_space<vmem>> -> memref<1x248x128xf32, #tpu.memory_space<vmem>>
      %101 = tpu.memref_squeeze %100 : memref<1x248x128xf32, #tpu.memory_space<vmem>> -> memref<248x128xf32, #tpu.memory_space<vmem>>
      %102 = tpu.memref_slice %arg7[%c0_i32_80] : memref<2x!tpu.dma_semaphore, #tpu.memory_space<semaphore_mem>> -> memref<1x!tpu.dma_semaphore, #tpu.memory_space<semaphore_mem>>
      %103 = tpu.memref_squeeze %102 : memref<1x!tpu.dma_semaphore, #tpu.memory_space<semaphore_mem>> -> memref<!tpu.dma_semaphore, #tpu.memory_space<semaphore_mem>>
      tpu.enqueue_dma source(%99 : memref<248x128xf32, #tpu.memory_space<any>>) target(%101 : memref<248x128xf32, #tpu.memory_space<vmem>>) target_semaphore(%103 : memref<!tpu.dma_semaphore, #tpu.memory_space<semaphore_mem>>)
    } else {
    }
    %c1_i32_1 = arith.constant 1 : i32
    %4 = arith.addi %arg1, %c1_i32_1 : i32
    %c2_i32 = arith.constant 2 : i32
    %5 = arith.cmpi slt, %4, %c2_i32 : i32
    %6 = arith.extui %5 : i1 to i32
    %c0_i32_2 = arith.constant 0 : i32
    %7 = arith.cmpi ne, %6, %c0_i32_2 : i32
    scf.if %7 {
      %c1_i32_77 = arith.constant 1 : i32
      %96 = arith.addi %arg1, %c1_i32_77 : i32
      %c1_i32_78 = arith.constant 1 : i32
      %97 = arith.subi %c1_i32_78, %0 : i32
      %c432_i32_79 = arith.constant 432 : i32
      %98 = arith.muli %arg0, %c432_i32_79 : i32
      %c192_i32_80 = arith.constant 192 : i32
      %99 = arith.muli %96, %c192_i32_80 : i32
      %100 = arith.addi %98, %99 : i32
      %101 = tpu.assume_multiple %100, 8 : i32
      %c0_i32_81 = arith.constant 0 : i32
      %102 = tpu.memref_slice %arg2[%101, %c0_i32_81] : memref<872x128xf32, #tpu.memory_space<any>> -> memref<248x128xf32, #tpu.memory_space<any>>
      %c0_i32_82 = arith.constant 0 : i32
      %c0_i32_83 = arith.constant 0 : i32
      %103 = tpu.memref_slice %arg6[%97, %c0_i32_82, %c0_i32_83] : memref<2x248x128xf32, #tpu.memory_space<vmem>> -> memref<1x248x128xf32, #tpu.memory_space<vmem>>
      %104 = tpu.memref_squeeze %103 : memref<1x248x128xf32, #tpu.memory_space<vmem>> -> memref<248x128xf32, #tpu.memory_space<vmem>>
      %105 = tpu.memref_slice %arg7[%97] : memref<2x!tpu.dma_semaphore, #tpu.memory_space<semaphore_mem>> -> memref<1x!tpu.dma_semaphore, #tpu.memory_space<semaphore_mem>>
      %106 = tpu.memref_squeeze %105 : memref<1x!tpu.dma_semaphore, #tpu.memory_space<semaphore_mem>> -> memref<!tpu.dma_semaphore, #tpu.memory_space<semaphore_mem>>
      tpu.enqueue_dma source(%102 : memref<248x128xf32, #tpu.memory_space<any>>) target(%104 : memref<248x128xf32, #tpu.memory_space<vmem>>) target_semaphore(%106 : memref<!tpu.dma_semaphore, #tpu.memory_space<semaphore_mem>>)
    } else {
    }
    %c432_i32 = arith.constant 432 : i32
    %8 = arith.muli %arg0, %c432_i32 : i32
    %c192_i32 = arith.constant 192 : i32
    %9 = arith.muli %arg1, %c192_i32 : i32
    %10 = arith.addi %8, %9 : i32
    %11 = tpu.assume_multiple %10, 8 : i32
    %c0_i32_3 = arith.constant 0 : i32
    %12 = tpu.memref_slice %arg2[%11, %c0_i32_3] : memref<872x128xf32, #tpu.memory_space<any>> -> memref<248x128xf32, #tpu.memory_space<any>>
    %c0_i32_4 = arith.constant 0 : i32
    %c0_i32_5 = arith.constant 0 : i32
    %13 = tpu.memref_slice %arg6[%0, %c0_i32_4, %c0_i32_5] : memref<2x248x128xf32, #tpu.memory_space<vmem>> -> memref<1x248x128xf32, #tpu.memory_space<vmem>>
    %14 = tpu.memref_squeeze %13 : memref<1x248x128xf32, #tpu.memory_space<vmem>> -> memref<248x128xf32, #tpu.memory_space<vmem>>
    %15 = tpu.memref_slice %arg7[%0] : memref<2x!tpu.dma_semaphore, #tpu.memory_space<semaphore_mem>> -> memref<1x!tpu.dma_semaphore, #tpu.memory_space<semaphore_mem>>
    %16 = tpu.memref_squeeze %15 : memref<1x!tpu.dma_semaphore, #tpu.memory_space<semaphore_mem>> -> memref<!tpu.dma_semaphore, #tpu.memory_space<semaphore_mem>>
    tpu.wait_dma2 semaphore(%16 : memref<!tpu.dma_semaphore, #tpu.memory_space<semaphore_mem>>) src(%12 : memref<248x128xf32, #tpu.memory_space<any>>) dst(%14 : memref<248x128xf32, #tpu.memory_space<vmem>>)
    %17 = arith.index_cast %0 : i32 to index
    %c0 = arith.constant 0 : index
    %c0_6 = arith.constant 0 : index
    %18 = vector.load %arg6[%17, %c0, %c0_6] : memref<2x248x128xf32, #tpu.memory_space<vmem>>, vector<1x248x128xf32>
    %19 = vector.shape_cast %18 : vector<1x248x128xf32> to vector<248x128xf32>
    %20 = vector.extract_strided_slice %19 {offsets = [0, 0], sizes = [192, 128], strides = [1, 1]} : vector<248x128xf32> to vector<192x128xf32>
    %c0_7 = arith.constant 0 : index
    %c0_8 = arith.constant 0 : index
    %c0_9 = arith.constant 0 : index
    %21 = vector.load %arg3[%c0_7, %c0_8, %c0_9] : memref<9x128x128xf32, #tpu.memory_space<vmem>>, vector<1x128x128xf32>
    %22 = vector.shape_cast %21 : vector<1x128x128xf32> to vector<128x128xf32>
    %cst = arith.constant dense<0.000000e+00> : vector<192x128xf32>
    %23 = tpu.matmul %20, %22, %cst {dimension_numbers = #tpu.dot_dimension_numbers<[1], [0], [0], [1], [0, 0, 1, 1], [], []>} : vector<192x128xf32>, vector<128x128xf32>, vector<192x128xf32> -> vector<192x128xf32>
    %c0_10 = arith.constant 0 : index
    %c0_11 = arith.constant 0 : index
    %24 = vector.load %arg8[%c0_10, %c0_11] : memref<192x128xf32, #tpu.memory_space<vmem>>, vector<192x128xf32>
    tpu.vector_store %arg8[%c0_10, %c0_11], %23 {strides = array<i32>} : memref<192x128xf32, #tpu.memory_space<vmem>>, vector<192x128xf32>,
    %25 = vector.extract_strided_slice %19 {offsets = [1, 0], sizes = [192, 128], strides = [1, 1]} : vector<248x128xf32> to vector<192x128xf32>
    %c1 = arith.constant 1 : index
    %c0_12 = arith.constant 0 : index
    %c0_13 = arith.constant 0 : index
    %26 = vector.load %arg3[%c1, %c0_12, %c0_13] : memref<9x128x128xf32, #tpu.memory_space<vmem>>, vector<1x128x128xf32>
    %27 = vector.shape_cast %26 : vector<1x128x128xf32> to vector<128x128xf32>
    %cst_14 = arith.constant dense<0.000000e+00> : vector<192x128xf32>
    %28 = tpu.matmul %25, %27, %cst_14 {dimension_numbers = #tpu.dot_dimension_numbers<[1], [0], [0], [1], [0, 0, 1, 1], [], []>} : vector<192x128xf32>, vector<128x128xf32>, vector<192x128xf32> -> vector<192x128xf32>
    %c0_15 = arith.constant 0 : index
    %c0_16 = arith.constant 0 : index
    %29 = vector.load %arg8[%c0_15, %c0_16] : memref<192x128xf32, #tpu.memory_space<vmem>>, vector<192x128xf32>
    %30 = arith.addf %29, %28 : vector<192x128xf32>
    %c0_17 = arith.constant 0 : index
    %c0_18 = arith.constant 0 : index
    %31 = vector.load %arg8[%c0_17, %c0_18] : memref<192x128xf32, #tpu.memory_space<vmem>>, vector<192x128xf32>
    tpu.vector_store %arg8[%c0_17, %c0_18], %30 {strides = array<i32>} : memref<192x128xf32, #tpu.memory_space<vmem>>, vector<192x128xf32>,
    %32 = vector.extract_strided_slice %19 {offsets = [2, 0], sizes = [192, 128], strides = [1, 1]} : vector<248x128xf32> to vector<192x128xf32>
    %c2 = arith.constant 2 : index
    %c0_19 = arith.constant 0 : index
    %c0_20 = arith.constant 0 : index
    %33 = vector.load %arg3[%c2, %c0_19, %c0_20] : memref<9x128x128xf32, #tpu.memory_space<vmem>>, vector<1x128x128xf32>
    %34 = vector.shape_cast %33 : vector<1x128x128xf32> to vector<128x128xf32>
    %cst_21 = arith.constant dense<0.000000e+00> : vector<192x128xf32>
    %35 = tpu.matmul %32, %34, %cst_21 {dimension_numbers = #tpu.dot_dimension_numbers<[1], [0], [0], [1], [0, 0, 1, 1], [], []>} : vector<192x128xf32>, vector<128x128xf32>, vector<192x128xf32> -> vector<192x128xf32>
    %c0_22 = arith.constant 0 : index
    %c0_23 = arith.constant 0 : index
    %36 = vector.load %arg8[%c0_22, %c0_23] : memref<192x128xf32, #tpu.memory_space<vmem>>, vector<192x128xf32>
    %37 = arith.addf %36, %35 : vector<192x128xf32>
    %c0_24 = arith.constant 0 : index
    %c0_25 = arith.constant 0 : index
    %38 = vector.load %arg8[%c0_24, %c0_25] : memref<192x128xf32, #tpu.memory_space<vmem>>, vector<192x128xf32>
    tpu.vector_store %arg8[%c0_24, %c0_25], %37 {strides = array<i32>} : memref<192x128xf32, #tpu.memory_space<vmem>>, vector<192x128xf32>,
    %39 = vector.extract_strided_slice %19 {offsets = [24, 0], sizes = [192, 128], strides = [1, 1]} : vector<248x128xf32> to vector<192x128xf32>
    %c3 = arith.constant 3 : index
    %c0_26 = arith.constant 0 : index
    %c0_27 = arith.constant 0 : index
    %40 = vector.load %arg3[%c3, %c0_26, %c0_27] : memref<9x128x128xf32, #tpu.memory_space<vmem>>, vector<1x128x128xf32>
    %41 = vector.shape_cast %40 : vector<1x128x128xf32> to vector<128x128xf32>
    %cst_28 = arith.constant dense<0.000000e+00> : vector<192x128xf32>
    %42 = tpu.matmul %39, %41, %cst_28 {dimension_numbers = #tpu.dot_dimension_numbers<[1], [0], [0], [1], [0, 0, 1, 1], [], []>} : vector<192x128xf32>, vector<128x128xf32>, vector<192x128xf32> -> vector<192x128xf32>
    %c0_29 = arith.constant 0 : index
    %c0_30 = arith.constant 0 : index
    %43 = vector.load %arg8[%c0_29, %c0_30] : memref<192x128xf32, #tpu.memory_space<vmem>>, vector<192x128xf32>
    %44 = arith.addf %43, %42 : vector<192x128xf32>
    %c0_31 = arith.constant 0 : index
    %c0_32 = arith.constant 0 : index
    %45 = vector.load %arg8[%c0_31, %c0_32] : memref<192x128xf32, #tpu.memory_space<vmem>>, vector<192x128xf32>
    tpu.vector_store %arg8[%c0_31, %c0_32], %44 {strides = array<i32>} : memref<192x128xf32, #tpu.memory_space<vmem>>, vector<192x128xf32>,
    %46 = vector.extract_strided_slice %19 {offsets = [25, 0], sizes = [192, 128], strides = [1, 1]} : vector<248x128xf32> to vector<192x128xf32>
    %c4 = arith.constant 4 : index
    %c0_33 = arith.constant 0 : index
    %c0_34 = arith.constant 0 : index
    %47 = vector.load %arg3[%c4, %c0_33, %c0_34] : memref<9x128x128xf32, #tpu.memory_space<vmem>>, vector<1x128x128xf32>
    %48 = vector.shape_cast %47 : vector<1x128x128xf32> to vector<128x128xf32>
    %cst_35 = arith.constant dense<0.000000e+00> : vector<192x128xf32>
    %49 = tpu.matmul %46, %48, %cst_35 {dimension_numbers = #tpu.dot_dimension_numbers<[1], [0], [0], [1], [0, 0, 1, 1], [], []>} : vector<192x128xf32>, vector<128x128xf32>, vector<192x128xf32> -> vector<192x128xf32>
    %c0_36 = arith.constant 0 : index
    %c0_37 = arith.constant 0 : index
    %50 = vector.load %arg8[%c0_36, %c0_37] : memref<192x128xf32, #tpu.memory_space<vmem>>, vector<192x128xf32>
    %51 = arith.addf %50, %49 : vector<192x128xf32>
    %c0_38 = arith.constant 0 : index
    %c0_39 = arith.constant 0 : index
    %52 = vector.load %arg8[%c0_38, %c0_39] : memref<192x128xf32, #tpu.memory_space<vmem>>, vector<192x128xf32>
    tpu.vector_store %arg8[%c0_38, %c0_39], %51 {strides = array<i32>} : memref<192x128xf32, #tpu.memory_space<vmem>>, vector<192x128xf32>,
    %53 = vector.extract_strided_slice %19 {offsets = [26, 0], sizes = [192, 128], strides = [1, 1]} : vector<248x128xf32> to vector<192x128xf32>
    %c5 = arith.constant 5 : index
    %c0_40 = arith.constant 0 : index
    %c0_41 = arith.constant 0 : index
    %54 = vector.load %arg3[%c5, %c0_40, %c0_41] : memref<9x128x128xf32, #tpu.memory_space<vmem>>, vector<1x128x128xf32>
    %55 = vector.shape_cast %54 : vector<1x128x128xf32> to vector<128x128xf32>
    %cst_42 = arith.constant dense<0.000000e+00> : vector<192x128xf32>
    %56 = tpu.matmul %53, %55, %cst_42 {dimension_numbers = #tpu.dot_dimension_numbers<[1], [0], [0], [1], [0, 0, 1, 1], [], []>} : vector<192x128xf32>, vector<128x128xf32>, vector<192x128xf32> -> vector<192x128xf32>
    %c0_43 = arith.constant 0 : index
    %c0_44 = arith.constant 0 : index
    %57 = vector.load %arg8[%c0_43, %c0_44] : memref<192x128xf32, #tpu.memory_space<vmem>>, vector<192x128xf32>
    %58 = arith.addf %57, %56 : vector<192x128xf32>
    %c0_45 = arith.constant 0 : index
    %c0_46 = arith.constant 0 : index
    %59 = vector.load %arg8[%c0_45, %c0_46] : memref<192x128xf32, #tpu.memory_space<vmem>>, vector<192x128xf32>
    tpu.vector_store %arg8[%c0_45, %c0_46], %58 {strides = array<i32>} : memref<192x128xf32, #tpu.memory_space<vmem>>, vector<192x128xf32>,
    %60 = vector.extract_strided_slice %19 {offsets = [48, 0], sizes = [192, 128], strides = [1, 1]} : vector<248x128xf32> to vector<192x128xf32>
    %c6 = arith.constant 6 : index
    %c0_47 = arith.constant 0 : index
    %c0_48 = arith.constant 0 : index
    %61 = vector.load %arg3[%c6, %c0_47, %c0_48] : memref<9x128x128xf32, #tpu.memory_space<vmem>>, vector<1x128x128xf32>
    %62 = vector.shape_cast %61 : vector<1x128x128xf32> to vector<128x128xf32>
    %cst_49 = arith.constant dense<0.000000e+00> : vector<192x128xf32>
    %63 = tpu.matmul %60, %62, %cst_49 {dimension_numbers = #tpu.dot_dimension_numbers<[1], [0], [0], [1], [0, 0, 1, 1], [], []>} : vector<192x128xf32>, vector<128x128xf32>, vector<192x128xf32> -> vector<192x128xf32>
    %c0_50 = arith.constant 0 : index
    %c0_51 = arith.constant 0 : index
    %64 = vector.load %arg8[%c0_50, %c0_51] : memref<192x128xf32, #tpu.memory_space<vmem>>, vector<192x128xf32>
    %65 = arith.addf %64, %63 : vector<192x128xf32>
    %c0_52 = arith.constant 0 : index
    %c0_53 = arith.constant 0 : index
    %66 = vector.load %arg8[%c0_52, %c0_53] : memref<192x128xf32, #tpu.memory_space<vmem>>, vector<192x128xf32>
    tpu.vector_store %arg8[%c0_52, %c0_53], %65 {strides = array<i32>} : memref<192x128xf32, #tpu.memory_space<vmem>>, vector<192x128xf32>,
    %67 = vector.extract_strided_slice %19 {offsets = [49, 0], sizes = [192, 128], strides = [1, 1]} : vector<248x128xf32> to vector<192x128xf32>
    %c7 = arith.constant 7 : index
    %c0_54 = arith.constant 0 : index
    %c0_55 = arith.constant 0 : index
    %68 = vector.load %arg3[%c7, %c0_54, %c0_55] : memref<9x128x128xf32, #tpu.memory_space<vmem>>, vector<1x128x128xf32>
    %69 = vector.shape_cast %68 : vector<1x128x128xf32> to vector<128x128xf32>
    %cst_56 = arith.constant dense<0.000000e+00> : vector<192x128xf32>
    %70 = tpu.matmul %67, %69, %cst_56 {dimension_numbers = #tpu.dot_dimension_numbers<[1], [0], [0], [1], [0, 0, 1, 1], [], []>} : vector<192x128xf32>, vector<128x128xf32>, vector<192x128xf32> -> vector<192x128xf32>
    %c0_57 = arith.constant 0 : index
    %c0_58 = arith.constant 0 : index
    %71 = vector.load %arg8[%c0_57, %c0_58] : memref<192x128xf32, #tpu.memory_space<vmem>>, vector<192x128xf32>
    %72 = arith.addf %71, %70 : vector<192x128xf32>
    %c0_59 = arith.constant 0 : index
    %c0_60 = arith.constant 0 : index
    %73 = vector.load %arg8[%c0_59, %c0_60] : memref<192x128xf32, #tpu.memory_space<vmem>>, vector<192x128xf32>
    tpu.vector_store %arg8[%c0_59, %c0_60], %72 {strides = array<i32>} : memref<192x128xf32, #tpu.memory_space<vmem>>, vector<192x128xf32>,
    %74 = vector.extract_strided_slice %19 {offsets = [50, 0], sizes = [192, 128], strides = [1, 1]} : vector<248x128xf32> to vector<192x128xf32>
    %c8 = arith.constant 8 : index
    %c0_61 = arith.constant 0 : index
    %c0_62 = arith.constant 0 : index
    %75 = vector.load %arg3[%c8, %c0_61, %c0_62] : memref<9x128x128xf32, #tpu.memory_space<vmem>>, vector<1x128x128xf32>
    %76 = vector.shape_cast %75 : vector<1x128x128xf32> to vector<128x128xf32>
    %cst_63 = arith.constant dense<0.000000e+00> : vector<192x128xf32>
    %77 = tpu.matmul %74, %76, %cst_63 {dimension_numbers = #tpu.dot_dimension_numbers<[1], [0], [0], [1], [0, 0, 1, 1], [], []>} : vector<192x128xf32>, vector<128x128xf32>, vector<192x128xf32> -> vector<192x128xf32>
    %c0_64 = arith.constant 0 : index
    %c0_65 = arith.constant 0 : index
    %78 = vector.load %arg8[%c0_64, %c0_65] : memref<192x128xf32, #tpu.memory_space<vmem>>, vector<192x128xf32>
    %79 = arith.addf %78, %77 : vector<192x128xf32>
    %c0_66 = arith.constant 0 : index
    %c0_67 = arith.constant 0 : index
    %80 = vector.load %arg8[%c0_66, %c0_67] : memref<192x128xf32, #tpu.memory_space<vmem>>, vector<192x128xf32>
    tpu.vector_store %arg8[%c0_66, %c0_67], %79 {strides = array<i32>} : memref<192x128xf32, #tpu.memory_space<vmem>>, vector<192x128xf32>,
    %c0_68 = arith.constant 0 : index
    %c0_69 = arith.constant 0 : index
    %81 = vector.load %arg8[%c0_68, %c0_69] : memref<192x128xf32, #tpu.memory_space<vmem>>, vector<192x128xf32>
    %82 = vector.shape_cast %81 : vector<192x128xf32> to vector<8x24x128xf32>
    %83 = vector.extract_strided_slice %82 {offsets = [0, 0, 0], sizes = [8, 16, 128], strides = [1, 1, 1]} : vector<8x24x128xf32> to vector<8x16x128xf32>
    %c0_70 = arith.constant 0 : index
    %c0_71 = arith.constant 0 : index
    %84 = vector.load %arg4[%c0_70, %c0_71] : memref<1x128xf32, #tpu.memory_space<vmem>>, vector<1x128xf32>
    %85 = vector.shape_cast %84 : vector<1x128xf32> to vector<1x1x128xf32>
    %86 = vector.broadcast %85 : vector<1x1x128xf32> to vector<8x16x128xf32>
    %87 = arith.addf %83, %86 : vector<8x16x128xf32>
    %88 = arith.negf %87 : vector<8x16x128xf32>
    %89 = math.exp %88 : vector<8x16x128xf32>
    %cst_72 = arith.constant 1.000000e+00 : f32
    %90 = vector.broadcast %cst_72 : f32 to vector<8x16x128xf32>
    %91 = arith.addf %90, %89 : vector<8x16x128xf32>
    %92 = arith.divf %90, %91 : vector<8x16x128xf32>
    %93 = arith.mulf %87, %92 : vector<8x16x128xf32>
    %94 = vector.shape_cast %93 : vector<8x16x128xf32> to vector<1x8x16x128xf32>
    %c0_73 = arith.constant 0 : index
    %c0_74 = arith.constant 0 : index
    %c0_75 = arith.constant 0 : index
    %c0_76 = arith.constant 0 : index
    %95 = vector.load %arg5[%c0_73, %c0_74, %c0_75, %c0_76] : memref<1x8x16x128xf32, #tpu.memory_space<vmem>>, vector<1x8x16x128xf32>
    tpu.vector_store %arg5[%c0_73, %c0_74, %c0_75, %c0_76], %94 {strides = array<i32>} : memref<1x8x16x128xf32, #tpu.memory_space<vmem>>, vector<1x8x16x128xf32>,
    return
  }
  func.func @transform_1(%arg0: i32, %arg1: i32) -> (i32, i32, i32) {
    %c0_i32 = arith.constant 0 : i32
    %c0_i32_0 = arith.constant 0 : i32
    %c0_i32_1 = arith.constant 0 : i32
    %c0_i32_2 = arith.constant 0 : i32
    return %c0_i32, %c0_i32_0, %c0_i32_1 : i32, i32, i32
  }
  func.func @transform_2(%arg0: i32, %arg1: i32) -> (i32, i32) {
    %c0_i32 = arith.constant 0 : i32
    %c0_i32_0 = arith.constant 0 : i32
    %c0_i32_1 = arith.constant 0 : i32
    return %c0_i32, %c0_i32_0 : i32, i32
  }
  func.func @transform_3(%arg0: i32, %arg1: i32) -> (i32, i32, i32, i32) {
    %c0_i32 = arith.constant 0 : i32
    %c0_i32_0 = arith.constant 0 : i32
    %c0_i32_1 = arith.constant 0 : i32
    return %arg0, %arg1, %c0_i32, %c0_i32_0 : i32, i32, i32, i32
  }
}

module attributes {stable_mosaic.version = 11 : i64} {
  func.func @_repconv_kernel(%arg0: i32, %arg1: i32, %arg2: memref<872x128xf32, #tpu.memory_space<any>>, %arg3: memref<9x128x128xf32, #tpu.memory_space<vmem>>, %arg4: memref<1x128xf32, #tpu.memory_space<vmem>>, %arg5: memref<1x8x16x128xf32, #tpu.memory_space<vmem>>, %arg6: memref<2x248x128xf32, #tpu.memory_space<vmem>>, %arg7: memref<2x!tpu.dma_semaphore, #tpu.memory_space<semaphore_mem>>, %arg8: memref<192x128xf32, #tpu.memory_space<vmem>>) attributes {dimension_semantics = [#tpu.dimension_semantics<parallel>, #tpu.dimension_semantics<arbitrary>], iteration_bounds = array<i64: 2, 2>, scalar_prefetch = 0 : i64, scratch_operands = 3 : i64, tpu.core_type = #tpu.core_type<tc>, window_params = [{}, {pipeline_mode = #tpu.pipeline_mode<synchronous>, transform_indices = @transform_1, window_bounds = array<i64: 9, 128, 128>}, {pipeline_mode = #tpu.pipeline_mode<synchronous>, transform_indices = @transform_2, window_bounds = array<i64: 1, 128>}, {transform_indices = @transform_3, window_bounds = array<i64: 1, 8, 16, 128>}]} {
    %c1_i32 = arith.constant 1 : i32
    %0 = arith.andi %arg1, %c1_i32 : i32
    %c0_i32 = arith.constant 0 : i32
    %1 = arith.cmpi eq, %arg1, %c0_i32 : i32
    %2 = arith.extui %1 : i1 to i32
    %c0_i32_0 = arith.constant 0 : i32
    %3 = arith.cmpi ne, %2, %c0_i32_0 : i32
    scf.if %3 {
      %c432_i32_77 = arith.constant 432 : i32
      %96 = arith.muli %arg0, %c432_i32_77 : i32
      %c0_i32_78 = arith.constant 0 : i32
      %97 = arith.addi %96, %c0_i32_78 : i32
      %98 = tpu.assume_multiple %97, 8 : i32
      %c0_i32_79 = arith.constant 0 : i32
      %c0_i32_80 = arith.constant 0 : i32
      %c0_i32_81 = arith.constant 0 : i32
      %99 = tpu.memref_slice %arg2[%98, %c0_i32_81] : memref<872x128xf32, #tpu.memory_space<any>> -> memref<248x128xf32, #tpu.memory_space<any>>
      %c0_i32_82 = arith.constant 0 : i32
      %c0_i32_83 = arith.constant 0 : i32
      %100 = tpu.memref_slice %arg6[%c0_i32_79, %c0_i32_82, %c0_i32_83] : memref<2x248x128xf32, #tpu.memory_space<vmem>> -> memref<1x248x128xf32, #tpu.memory_space<vmem>>
      %101 = tpu.memref_squeeze %100 : memref<1x248x128xf32, #tpu.memory_space<vmem>> -> memref<248x128xf32, #tpu.memory_space<vmem>>
      %102 = tpu.memref_slice %arg7[%c0_i32_80] : memref<2x!tpu.dma_semaphore, #tpu.memory_space<semaphore_mem>> -> memref<1x!tpu.dma_semaphore, #tpu.memory_space<semaphore_mem>>
      %103 = tpu.memref_squeeze %102 : memref<1x!tpu.dma_semaphore, #tpu.memory_space<semaphore_mem>> -> memref<!tpu.dma_semaphore, #tpu.memory_space<semaphore_mem>>
      tpu.enqueue_dma source(%99 : memref<248x128xf32, #tpu.memory_space<any>>) target(%101 : memref<248x128xf32, #tpu.memory_space<vmem>>) target_semaphore(%103 : memref<!tpu.dma_semaphore, #tpu.memory_space<semaphore_mem>>)
    } else {
    }
    %c1_i32_1 = arith.constant 1 : i32
    %4 = arith.addi %arg1, %c1_i32_1 : i32
    %c2_i32 = arith.constant 2 : i32
    %5 = arith.cmpi slt, %4, %c2_i32 : i32
    %6 = arith.extui %5 : i1 to i32
    %c0_i32_2 = arith.constant 0 : i32
    %7 = arith.cmpi ne, %6, %c0_i32_2 : i32
    scf.if %7 {
      %c1_i32_77 = arith.constant 1 : i32
      %96 = arith.addi %arg1, %c1_i32_77 : i32
      %c1_i32_78 = arith.constant 1 : i32
      %97 = arith.subi %c1_i32_78, %0 : i32
      %c432_i32_79 = arith.constant 432 : i32
      %98 = arith.muli %arg0, %c432_i32_79 : i32
      %c192_i32_80 = arith.constant 192 : i32
      %99 = arith.muli %96, %c192_i32_80 : i32
      %100 = arith.addi %98, %99 : i32
      %101 = tpu.assume_multiple %100, 8 : i32
      %c0_i32_81 = arith.constant 0 : i32
      %102 = tpu.memref_slice %arg2[%101, %c0_i32_81] : memref<872x128xf32, #tpu.memory_space<any>> -> memref<248x128xf32, #tpu.memory_space<any>>
      %c0_i32_82 = arith.constant 0 : i32
      %c0_i32_83 = arith.constant 0 : i32
      %103 = tpu.memref_slice %arg6[%97, %c0_i32_82, %c0_i32_83] : memref<2x248x128xf32, #tpu.memory_space<vmem>> -> memref<1x248x128xf32, #tpu.memory_space<vmem>>
      %104 = tpu.memref_squeeze %103 : memref<1x248x128xf32, #tpu.memory_space<vmem>> -> memref<248x128xf32, #tpu.memory_space<vmem>>
      %105 = tpu.memref_slice %arg7[%97] : memref<2x!tpu.dma_semaphore, #tpu.memory_space<semaphore_mem>> -> memref<1x!tpu.dma_semaphore, #tpu.memory_space<semaphore_mem>>
      %106 = tpu.memref_squeeze %105 : memref<1x!tpu.dma_semaphore, #tpu.memory_space<semaphore_mem>> -> memref<!tpu.dma_semaphore, #tpu.memory_space<semaphore_mem>>
      tpu.enqueue_dma source(%102 : memref<248x128xf32, #tpu.memory_space<any>>) target(%104 : memref<248x128xf32, #tpu.memory_space<vmem>>) target_semaphore(%106 : memref<!tpu.dma_semaphore, #tpu.memory_space<semaphore_mem>>)
    } else {
    }
    %c432_i32 = arith.constant 432 : i32
    %8 = arith.muli %arg0, %c432_i32 : i32
    %c192_i32 = arith.constant 192 : i32
    %9 = arith.muli %arg1, %c192_i32 : i32
    %10 = arith.addi %8, %9 : i32
    %11 = tpu.assume_multiple %10, 8 : i32
    %c0_i32_3 = arith.constant 0 : i32
    %12 = tpu.memref_slice %arg2[%11, %c0_i32_3] : memref<872x128xf32, #tpu.memory_space<any>> -> memref<248x128xf32, #tpu.memory_space<any>>
    %c0_i32_4 = arith.constant 0 : i32
    %c0_i32_5 = arith.constant 0 : i32
    %13 = tpu.memref_slice %arg6[%0, %c0_i32_4, %c0_i32_5] : memref<2x248x128xf32, #tpu.memory_space<vmem>> -> memref<1x248x128xf32, #tpu.memory_space<vmem>>
    %14 = tpu.memref_squeeze %13 : memref<1x248x128xf32, #tpu.memory_space<vmem>> -> memref<248x128xf32, #tpu.memory_space<vmem>>
    %15 = tpu.memref_slice %arg7[%0] : memref<2x!tpu.dma_semaphore, #tpu.memory_space<semaphore_mem>> -> memref<1x!tpu.dma_semaphore, #tpu.memory_space<semaphore_mem>>
    %16 = tpu.memref_squeeze %15 : memref<1x!tpu.dma_semaphore, #tpu.memory_space<semaphore_mem>> -> memref<!tpu.dma_semaphore, #tpu.memory_space<semaphore_mem>>
    tpu.wait_dma2 semaphore(%16 : memref<!tpu.dma_semaphore, #tpu.memory_space<semaphore_mem>>) src(%12 : memref<248x128xf32, #tpu.memory_space<any>>) dst(%14 : memref<248x128xf32, #tpu.memory_space<vmem>>)
    %17 = arith.index_cast %0 : i32 to index
    %c0 = arith.constant 0 : index
    %c0_6 = arith.constant 0 : index
    %18 = vector.load %arg6[%17, %c0, %c0_6] : memref<2x248x128xf32, #tpu.memory_space<vmem>>, vector<1x248x128xf32>
    %19 = vector.shape_cast %18 : vector<1x248x128xf32> to vector<248x128xf32>
    %20 = vector.extract_strided_slice %19 {offsets = [0, 0], sizes = [192, 128], strides = [1, 1]} : vector<248x128xf32> to vector<192x128xf32>
    %c0_7 = arith.constant 0 : index
    %c0_8 = arith.constant 0 : index
    %c0_9 = arith.constant 0 : index
    %21 = vector.load %arg3[%c0_7, %c0_8, %c0_9] : memref<9x128x128xf32, #tpu.memory_space<vmem>>, vector<1x128x128xf32>
    %22 = vector.shape_cast %21 : vector<1x128x128xf32> to vector<128x128xf32>
    %cst = arith.constant dense<0.000000e+00> : vector<192x128xf32>
    %23 = tpu.matmul %20, %22, %cst {dimension_numbers = #tpu.dot_dimension_numbers<[1], [0], [0], [1], [0, 0, 1, 1], [], []>} : vector<192x128xf32>, vector<128x128xf32>, vector<192x128xf32> -> vector<192x128xf32>
    %c0_10 = arith.constant 0 : index
    %c0_11 = arith.constant 0 : index
    %24 = vector.load %arg8[%c0_10, %c0_11] : memref<192x128xf32, #tpu.memory_space<vmem>>, vector<192x128xf32>
    tpu.vector_store %arg8[%c0_10, %c0_11], %23 {strides = array<i32>} : memref<192x128xf32, #tpu.memory_space<vmem>>, vector<192x128xf32>,
    %25 = vector.extract_strided_slice %19 {offsets = [1, 0], sizes = [192, 128], strides = [1, 1]} : vector<248x128xf32> to vector<192x128xf32>
    %c1 = arith.constant 1 : index
    %c0_12 = arith.constant 0 : index
    %c0_13 = arith.constant 0 : index
    %26 = vector.load %arg3[%c1, %c0_12, %c0_13] : memref<9x128x128xf32, #tpu.memory_space<vmem>>, vector<1x128x128xf32>
    %27 = vector.shape_cast %26 : vector<1x128x128xf32> to vector<128x128xf32>
    %cst_14 = arith.constant dense<0.000000e+00> : vector<192x128xf32>
    %28 = tpu.matmul %25, %27, %cst_14 {dimension_numbers = #tpu.dot_dimension_numbers<[1], [0], [0], [1], [0, 0, 1, 1], [], []>} : vector<192x128xf32>, vector<128x128xf32>, vector<192x128xf32> -> vector<192x128xf32>
    %c0_15 = arith.constant 0 : index
    %c0_16 = arith.constant 0 : index
    %29 = vector.load %arg8[%c0_15, %c0_16] : memref<192x128xf32, #tpu.memory_space<vmem>>, vector<192x128xf32>
    %30 = arith.addf %29, %28 : vector<192x128xf32>
    %c0_17 = arith.constant 0 : index
    %c0_18 = arith.constant 0 : index
    %31 = vector.load %arg8[%c0_17, %c0_18] : memref<192x128xf32, #tpu.memory_space<vmem>>, vector<192x128xf32>
    tpu.vector_store %arg8[%c0_17, %c0_18], %30 {strides = array<i32>} : memref<192x128xf32, #tpu.memory_space<vmem>>, vector<192x128xf32>,
    %32 = vector.extract_strided_slice %19 {offsets = [2, 0], sizes = [192, 128], strides = [1, 1]} : vector<248x128xf32> to vector<192x128xf32>
    %c2 = arith.constant 2 : index
    %c0_19 = arith.constant 0 : index
    %c0_20 = arith.constant 0 : index
    %33 = vector.load %arg3[%c2, %c0_19, %c0_20] : memref<9x128x128xf32, #tpu.memory_space<vmem>>, vector<1x128x128xf32>
    %34 = vector.shape_cast %33 : vector<1x128x128xf32> to vector<128x128xf32>
    %cst_21 = arith.constant dense<0.000000e+00> : vector<192x128xf32>
    %35 = tpu.matmul %32, %34, %cst_21 {dimension_numbers = #tpu.dot_dimension_numbers<[1], [0], [0], [1], [0, 0, 1, 1], [], []>} : vector<192x128xf32>, vector<128x128xf32>, vector<192x128xf32> -> vector<192x128xf32>
    %c0_22 = arith.constant 0 : index
    %c0_23 = arith.constant 0 : index
    %36 = vector.load %arg8[%c0_22, %c0_23] : memref<192x128xf32, #tpu.memory_space<vmem>>, vector<192x128xf32>
    %37 = arith.addf %36, %35 : vector<192x128xf32>
    %c0_24 = arith.constant 0 : index
    %c0_25 = arith.constant 0 : index
    %38 = vector.load %arg8[%c0_24, %c0_25] : memref<192x128xf32, #tpu.memory_space<vmem>>, vector<192x128xf32>
    tpu.vector_store %arg8[%c0_24, %c0_25], %37 {strides = array<i32>} : memref<192x128xf32, #tpu.memory_space<vmem>>, vector<192x128xf32>,
    %39 = vector.extract_strided_slice %19 {offsets = [24, 0], sizes = [192, 128], strides = [1, 1]} : vector<248x128xf32> to vector<192x128xf32>
    %c3 = arith.constant 3 : index
    %c0_26 = arith.constant 0 : index
    %c0_27 = arith.constant 0 : index
    %40 = vector.load %arg3[%c3, %c0_26, %c0_27] : memref<9x128x128xf32, #tpu.memory_space<vmem>>, vector<1x128x128xf32>
    %41 = vector.shape_cast %40 : vector<1x128x128xf32> to vector<128x128xf32>
    %cst_28 = arith.constant dense<0.000000e+00> : vector<192x128xf32>
    %42 = tpu.matmul %39, %41, %cst_28 {dimension_numbers = #tpu.dot_dimension_numbers<[1], [0], [0], [1], [0, 0, 1, 1], [], []>} : vector<192x128xf32>, vector<128x128xf32>, vector<192x128xf32> -> vector<192x128xf32>
    %c0_29 = arith.constant 0 : index
    %c0_30 = arith.constant 0 : index
    %43 = vector.load %arg8[%c0_29, %c0_30] : memref<192x128xf32, #tpu.memory_space<vmem>>, vector<192x128xf32>
    %44 = arith.addf %43, %42 : vector<192x128xf32>
    %c0_31 = arith.constant 0 : index
    %c0_32 = arith.constant 0 : index
    %45 = vector.load %arg8[%c0_31, %c0_32] : memref<192x128xf32, #tpu.memory_space<vmem>>, vector<192x128xf32>
    tpu.vector_store %arg8[%c0_31, %c0_32], %44 {strides = array<i32>} : memref<192x128xf32, #tpu.memory_space<vmem>>, vector<192x128xf32>,
    %46 = vector.extract_strided_slice %19 {offsets = [25, 0], sizes = [192, 128], strides = [1, 1]} : vector<248x128xf32> to vector<192x128xf32>
    %c4 = arith.constant 4 : index
    %c0_33 = arith.constant 0 : index
    %c0_34 = arith.constant 0 : index
    %47 = vector.load %arg3[%c4, %c0_33, %c0_34] : memref<9x128x128xf32, #tpu.memory_space<vmem>>, vector<1x128x128xf32>
    %48 = vector.shape_cast %47 : vector<1x128x128xf32> to vector<128x128xf32>
    %cst_35 = arith.constant dense<0.000000e+00> : vector<192x128xf32>
    %49 = tpu.matmul %46, %48, %cst_35 {dimension_numbers = #tpu.dot_dimension_numbers<[1], [0], [0], [1], [0, 0, 1, 1], [], []>} : vector<192x128xf32>, vector<128x128xf32>, vector<192x128xf32> -> vector<192x128xf32>
    %c0_36 = arith.constant 0 : index
    %c0_37 = arith.constant 0 : index
    %50 = vector.load %arg8[%c0_36, %c0_37] : memref<192x128xf32, #tpu.memory_space<vmem>>, vector<192x128xf32>
    %51 = arith.addf %50, %49 : vector<192x128xf32>
    %c0_38 = arith.constant 0 : index
    %c0_39 = arith.constant 0 : index
    %52 = vector.load %arg8[%c0_38, %c0_39] : memref<192x128xf32, #tpu.memory_space<vmem>>, vector<192x128xf32>
    tpu.vector_store %arg8[%c0_38, %c0_39], %51 {strides = array<i32>} : memref<192x128xf32, #tpu.memory_space<vmem>>, vector<192x128xf32>,
    %53 = vector.extract_strided_slice %19 {offsets = [26, 0], sizes = [192, 128], strides = [1, 1]} : vector<248x128xf32> to vector<192x128xf32>
    %c5 = arith.constant 5 : index
    %c0_40 = arith.constant 0 : index
    %c0_41 = arith.constant 0 : index
    %54 = vector.load %arg3[%c5, %c0_40, %c0_41] : memref<9x128x128xf32, #tpu.memory_space<vmem>>, vector<1x128x128xf32>
    %55 = vector.shape_cast %54 : vector<1x128x128xf32> to vector<128x128xf32>
    %cst_42 = arith.constant dense<0.000000e+00> : vector<192x128xf32>
    %56 = tpu.matmul %53, %55, %cst_42 {dimension_numbers = #tpu.dot_dimension_numbers<[1], [0], [0], [1], [0, 0, 1, 1], [], []>} : vector<192x128xf32>, vector<128x128xf32>, vector<192x128xf32> -> vector<192x128xf32>
    %c0_43 = arith.constant 0 : index
    %c0_44 = arith.constant 0 : index
    %57 = vector.load %arg8[%c0_43, %c0_44] : memref<192x128xf32, #tpu.memory_space<vmem>>, vector<192x128xf32>
    %58 = arith.addf %57, %56 : vector<192x128xf32>
    %c0_45 = arith.constant 0 : index
    %c0_46 = arith.constant 0 : index
    %59 = vector.load %arg8[%c0_45, %c0_46] : memref<192x128xf32, #tpu.memory_space<vmem>>, vector<192x128xf32>
    tpu.vector_store %arg8[%c0_45, %c0_46], %58 {strides = array<i32>} : memref<192x128xf32, #tpu.memory_space<vmem>>, vector<192x128xf32>,
    %60 = vector.extract_strided_slice %19 {offsets = [48, 0], sizes = [192, 128], strides = [1, 1]} : vector<248x128xf32> to vector<192x128xf32>
    %c6 = arith.constant 6 : index
    %c0_47 = arith.constant 0 : index
    %c0_48 = arith.constant 0 : index
    %61 = vector.load %arg3[%c6, %c0_47, %c0_48] : memref<9x128x128xf32, #tpu.memory_space<vmem>>, vector<1x128x128xf32>
    %62 = vector.shape_cast %61 : vector<1x128x128xf32> to vector<128x128xf32>
    %cst_49 = arith.constant dense<0.000000e+00> : vector<192x128xf32>
    %63 = tpu.matmul %60, %62, %cst_49 {dimension_numbers = #tpu.dot_dimension_numbers<[1], [0], [0], [1], [0, 0, 1, 1], [], []>} : vector<192x128xf32>, vector<128x128xf32>, vector<192x128xf32> -> vector<192x128xf32>
    %c0_50 = arith.constant 0 : index
    %c0_51 = arith.constant 0 : index
    %64 = vector.load %arg8[%c0_50, %c0_51] : memref<192x128xf32, #tpu.memory_space<vmem>>, vector<192x128xf32>
    %65 = arith.addf %64, %63 : vector<192x128xf32>
    %c0_52 = arith.constant 0 : index
    %c0_53 = arith.constant 0 : index
    %66 = vector.load %arg8[%c0_52, %c0_53] : memref<192x128xf32, #tpu.memory_space<vmem>>, vector<192x128xf32>
    tpu.vector_store %arg8[%c0_52, %c0_53], %65 {strides = array<i32>} : memref<192x128xf32, #tpu.memory_space<vmem>>, vector<192x128xf32>,
    %67 = vector.extract_strided_slice %19 {offsets = [49, 0], sizes = [192, 128], strides = [1, 1]} : vector<248x128xf32> to vector<192x128xf32>
    %c7 = arith.constant 7 : index
    %c0_54 = arith.constant 0 : index
    %c0_55 = arith.constant 0 : index
    %68 = vector.load %arg3[%c7, %c0_54, %c0_55] : memref<9x128x128xf32, #tpu.memory_space<vmem>>, vector<1x128x128xf32>
    %69 = vector.shape_cast %68 : vector<1x128x128xf32> to vector<128x128xf32>
    %cst_56 = arith.constant dense<0.000000e+00> : vector<192x128xf32>
    %70 = tpu.matmul %67, %69, %cst_56 {dimension_numbers = #tpu.dot_dimension_numbers<[1], [0], [0], [1], [0, 0, 1, 1], [], []>} : vector<192x128xf32>, vector<128x128xf32>, vector<192x128xf32> -> vector<192x128xf32>
    %c0_57 = arith.constant 0 : index
    %c0_58 = arith.constant 0 : index
    %71 = vector.load %arg8[%c0_57, %c0_58] : memref<192x128xf32, #tpu.memory_space<vmem>>, vector<192x128xf32>
    %72 = arith.addf %71, %70 : vector<192x128xf32>
    %c0_59 = arith.constant 0 : index
    %c0_60 = arith.constant 0 : index
    %73 = vector.load %arg8[%c0_59, %c0_60] : memref<192x128xf32, #tpu.memory_space<vmem>>, vector<192x128xf32>
    tpu.vector_store %arg8[%c0_59, %c0_60], %72 {strides = array<i32>} : memref<192x128xf32, #tpu.memory_space<vmem>>, vector<192x128xf32>,
    %74 = vector.extract_strided_slice %19 {offsets = [50, 0], sizes = [192, 128], strides = [1, 1]} : vector<248x128xf32> to vector<192x128xf32>
    %c8 = arith.constant 8 : index
    %c0_61 = arith.constant 0 : index
    %c0_62 = arith.constant 0 : index
    %75 = vector.load %arg3[%c8, %c0_61, %c0_62] : memref<9x128x128xf32, #tpu.memory_space<vmem>>, vector<1x128x128xf32>
    %76 = vector.shape_cast %75 : vector<1x128x128xf32> to vector<128x128xf32>
    %cst_63 = arith.constant dense<0.000000e+00> : vector<192x128xf32>
    %77 = tpu.matmul %74, %76, %cst_63 {dimension_numbers = #tpu.dot_dimension_numbers<[1], [0], [0], [1], [0, 0, 1, 1], [], []>} : vector<192x128xf32>, vector<128x128xf32>, vector<192x128xf32> -> vector<192x128xf32>
    %c0_64 = arith.constant 0 : index
    %c0_65 = arith.constant 0 : index
    %78 = vector.load %arg8[%c0_64, %c0_65] : memref<192x128xf32, #tpu.memory_space<vmem>>, vector<192x128xf32>
    %79 = arith.addf %78, %77 : vector<192x128xf32>
    %c0_66 = arith.constant 0 : index
    %c0_67 = arith.constant 0 : index
    %80 = vector.load %arg8[%c0_66, %c0_67] : memref<192x128xf32, #tpu.memory_space<vmem>>, vector<192x128xf32>
    tpu.vector_store %arg8[%c0_66, %c0_67], %79 {strides = array<i32>} : memref<192x128xf32, #tpu.memory_space<vmem>>, vector<192x128xf32>,
    %c0_68 = arith.constant 0 : index
    %c0_69 = arith.constant 0 : index
    %81 = vector.load %arg8[%c0_68, %c0_69] : memref<192x128xf32, #tpu.memory_space<vmem>>, vector<192x128xf32>
    %82 = vector.shape_cast %81 : vector<192x128xf32> to vector<8x24x128xf32>
    %83 = vector.extract_strided_slice %82 {offsets = [0, 0, 0], sizes = [8, 16, 128], strides = [1, 1, 1]} : vector<8x24x128xf32> to vector<8x16x128xf32>
    %c0_70 = arith.constant 0 : index
    %c0_71 = arith.constant 0 : index
    %84 = vector.load %arg4[%c0_70, %c0_71] : memref<1x128xf32, #tpu.memory_space<vmem>>, vector<1x128xf32>
    %85 = vector.shape_cast %84 : vector<1x128xf32> to vector<1x1x128xf32>
    %86 = vector.broadcast %85 : vector<1x1x128xf32> to vector<8x16x128xf32>
    %87 = arith.addf %83, %86 : vector<8x16x128xf32>
    %88 = arith.negf %87 : vector<8x16x128xf32>
    %89 = math.exp %88 : vector<8x16x128xf32>
    %cst_72 = arith.constant 1.000000e+00 : f32
    %90 = vector.broadcast %cst_72 : f32 to vector<8x16x128xf32>
    %91 = arith.addf %90, %89 : vector<8x16x128xf32>
    %92 = arith.divf %90, %91 : vector<8x16x128xf32>
    %93 = arith.mulf %87, %92 : vector<8x16x128xf32>
    %94 = vector.shape_cast %93 : vector<8x16x128xf32> to vector<1x8x16x128xf32>
    %c0_73 = arith.constant 0 : index
    %c0_74 = arith.constant 0 : index
    %c0_75 = arith.constant 0 : index
    %c0_76 = arith.constant 0 : index
    %95 = vector.load %arg5[%c0_73, %c0_74, %c0_75, %c0_76] : memref<1x8x16x128xf32, #tpu.memory_space<vmem>>, vector<1x8x16x128xf32>
    tpu.vector_store %arg5[%c0_73, %c0_74, %c0_75, %c0_76], %94 {strides = array<i32>} : memref<1x8x16x128xf32, #tpu.memory_space<vmem>>, vector<1x8x16x128xf32>,
    return
  }
  func.func @transform_1(%arg0: i32, %arg1: i32) -> (i32, i32, i32) {
    %c0_i32 = arith.constant 0 : i32
    %c0_i32_0 = arith.constant 0 : i32
    %c0_i32_1 = arith.constant 0 : i32
    %c0_i32_2 = arith.constant 0 : i32
    return %c0_i32, %c0_i32_0, %c0_i32_1 : i32, i32, i32
  }
  func.func @transform_2(%arg0: i32, %arg1: i32) -> (i32, i32) {
    %c0_i32 = arith.constant 0 : i32
    %c0_i32_0 = arith.constant 0 : i32
    %c0_i32_1 = arith.constant 0 : i32
    return %c0_i32, %c0_i32_0 : i32, i32
  }
  func.func @transform_3(%arg0: i32, %arg1: i32) -> (i32, i32, i32, i32) {
    %c0_i32 = arith.constant 0 : i32
    %c0_i32_0 = arith.constant 0 : i32
    %c0_i32_1 = arith.constant 0 : i32
    return %arg0, %arg1, %c0_i32, %c0_i32_0 : i32, i32, i32, i32
  }
}

</mosaic_0001>

<bundles_post_ra>
// kernel: tpu_custom_call.1
= control target key start
LH: loop header
LB: loop body
LE: loop exit
PB: predicated region body
PF: predicated region fallthrough
CT: control target
= control target key end

     0   :  { %s3867_s0 = inlined_call_operand.hbm [shape: f32[872,128], index: 0, kind: input, shape index: {}]   ;;  %s3868_s1 = inlined_call_operand.hbm [shape: f32[9,128,128], index: 1, kind: input, shape index: {}]   ;;  %s3869_s2 = inlined_call_operand.vmem [shape: f32[1,128], index: 2, kind: input, shape index: {}]   ;;  %s3870_s3 = inlined_call_operand.hbm [shape: f32[2,16,16,128], index: 3, kind: output, shape index: {}]  }
   0x1   :  { %3882 = sst [smem:[#allocation31_spill]] %s3868_s1 }
   0x2   :  { %8 = vsyncpa [#allocation6], 0 }
   0x3   :  { %9 = vsyncpa [#allocation7], 0 }
   0x4   :  { %11 = vsyncpa [#allocation7 + $0x1], 0  ;;  %s2974_s12 = smov 0   ;;  %s2976_s13 = smov 0  }
   0x5   :  { %s2978_s14 = smov 0   ;;  %s2980_s15 = smov 0  }
   0x6   :  { %s2982_s16 = smov 0   ;;  %s2984_s17 = smov 0  }
   0x7   :  { %s2986_s18 = smov 0   ;;  %s2988_s19 = smov 0  }
   0x8 LB: > { %s2502_s20 = sadd.s32 4294967295, %s2946_s19   ;;  %s2503_s21 = sadd.s32 4294967294, %s2946_s19   ;;  %s2946_s19 = sphi %s2988_s19, %s17_s19   ;;  %s2942_s18 = sphi %s2986_s18, %s3923_s18   ;;  %s2938_s17 = sphi %s2984_s17, %s3922_s17   ;;  %s2934_s16 = sphi %s2982_s16, %s3921_s16   ;;  %s2930_s15 = sphi %s2980_s15, %s3920_s15   ;;  %s2926_s14 = sphi %s2978_s14, %s3919_s14   ;;  %s2922_s13 = sphi %s2976_s13, %s3918_s13   ;;  %s2918_s12 = sphi %s2974_s12, %s3917_s12  }
   0x9   : > { %s26_s22 = sadd.s32 1, %s2938_s17  ;;  %s29_s23 = sadd.s32 1, %s2942_s18 }
   0xa   : > { %p27_p0 = scmp.ge.s32.totalorder %s26_s22, 2  ;;  %s80_s24 = sadd.s32 1, %s2926_s14 }
   0xb   : > { %p90_p1 = scmp.ne.s32.totalorder %s2926_s14, %s2922_s13  ;;  %p91_p2 = scmp.eq.s32.totalorder %s2502_s20, 3 }
   0xc   : > { %s3925_s22 = smov (%p27_p0, %s26_s22), 0  ;;  %s3927_s23 = smov (!%p27_p0, %s29_s23), %s2942_s18 }
   0xd   : > { %s76_s25 = ssub.s32 %s2938_s17, %s3925_s22  ;;  %p3026_p3 = por %p91_p2, %p90_p1 }
   0xe   : > { %p31_p4 = scmp.ge.s32.totalorder %s3927_s23, 2  ;;  %p96_p5 = scmp.ne.s32.totalorder %s2922_s13, %s2918_s12 }
   0xf   : > { %p97_p6 = scmp.eq.s32.totalorder %s2503_s21, 3  ;;  %p2504_p7 = scmp.ge.s32.totalorder %s2946_s19, 1 }
  0x10   : > { %s3929_s23 = smov (%p31_p4, %s3927_s23), 0  ;;  %p104_p9 = scmp.lt.s32.totalorder %s2946_s19, 5 }
  0x11   : > { %3884 = sst [smem:[#allocation18_spill]] %s3929_s23  ;;  %p3035_p8 = por %p97_p6, %p96_p5 }
  0x12   : > { %s75_s28 = ssub.s32 %s2942_s18, %s3929_s23  ;;  %p3042_p10 = pnand %p2504_p7, %p104_p9 }
  0x13   : > { %s77_s29 = sor.u32 %s76_s25, %s75_s28  ;;  %p3046_p12 = scmp.eq.s32.totalorder %s2502_s20, 0 }
  0x14   : > { %p78_p11 = scmp.eq.s32.totalorder %s77_s29, 0  ;;  %p2595_p13 = pneg %p3042_p10 }
  0x15   : > { %s3888_s1 = sld [smem:[#allocation31_spill]]  ;;  %s2948_s9 = smov [#allocation5]  }
  0x16   : > { %s3056_s8 = scalar_select %p78_p11, %s2926_s14, %s80_s24  }
  0x17   : > { %s117_s10 = sshll.u32 %s2948_s9, 4  ;;  %p2596_p0 = pnand %p3046_p12, %p2595_p13  ;;  %s118_s10 = int_to_ptr.vmem [resolvable:$true] %s117_s10 }
  0x18   : > { %s2949_s11 = smov 128   ;;  %s2950_s20 = smov 8  }
  0x19   : > { %136 = sbr.rel (%p3042_p10) target bundleno = 693 (0x2b5), region = 28 }
  0x1b   : > { %s115_s7 = sshll.u32 %s3888_s1, 4  ;;  %s116_s7 = int_to_ptr.hbm [resolvable:$true] %s115_s7 }
  0x1c   : > { %2598 = dma.hbm_to_vmem [thread:$0]  (!%p2596_p0), %s116_s7, 18432, %s118_s10, [#allocation6], %s2949_s11, %s2949_s11, %s2950_s20  }
  0x1e   : > { %2907 = dma.done.wait (%p3046_p12), [#allocation6], 18432  }
  0x1f   : > { %2909 = vsyncadd (%p3046_p12), [#allocation6], 4294948864  ;;  %s3871_s21 = sand.u32 1, %s2922_s13   ;;  %p2605_p1 = scmp.eq.s32.totalorder %s2930_s15, 0 }
  0x20   : > { %s3069_s24 = sshll.u32 %s3871_s21, 7  ;;  %s160_s25 = smul.u32 432, %s2934_s16 }
  0x21   : > { %s2446_s28 = smul.u32 192, %s2930_s15  ;;  %s2951_s6 = smov [#allocation2]  }
  0x22   : > { %s161_s5 = scalar_lea.hbm %s3867_s0, %s160_s25  ;;  %s171_s4 = sshll.u32 %s2951_s6, 4  ;;  %s172_s4 = int_to_ptr.vmem [resolvable:$true] %s171_s4 }
  0x23   : > { %s169_s7 = sshll.u32 %s161_s5, 4  ;;  %s2447_s9 = sadd.s32 %s2446_s28, %s160_s25  ;;  %s170_s7 = int_to_ptr.hbm [resolvable:$true] %s169_s7 }
  0x24   : > { %s2790_s10 = sshra.s32 %s170_s7, 4  ;;  %s2796_s1 = scalar_lea.hbm %s3867_s0, 872  ;;  %s2791_s10 = int_to_ptr.hbm [resolvable:$true] %s2790_s10 }
  0x25   : > { %s2792_s11 = scalar_lea.hbm %s2791_s10, 248  ;;  %p2797_p6 = scmp.lt.s32.totalorder %s2791_s10, %s3867_s0 }
  0x26   : > { %p2793_p2 = scmp.ne.s32.totalorder %s2791_s10, %s2792_s11  ;;  %p2798_p7 = scmp.lt.s32.totalorder %s2796_s1, %s2792_s11 }
  0x28   : > { %p2794_p4 = pnand %p2793_p2, %p2605_p1  ;;  %p2799_p9 = por %p2798_p7, %p2797_p6 }
  0x2a   : > { %p2795_p5 = pneg %p2794_p4 }
  0x2c   : > { %p2800_p10 = pnand %p2799_p9, %p2795_p5 }
  0x2e   : > { %2803 = shalt.err (!%p2800_p10)  }
  0x2f   : > { %2590 = dma.hbm_to_vmem [thread:$0]  (%p2605_p1), %s170_s7, 3968, %s172_s4, [#allocation3] }
  0x30   : > { %s2448_s30 = scalar_lea.hbm %s3867_s0, %s2447_s9  ;;  %s3091_s5 = sand.u32 1, %s2930_s15 }
  0x31   : > { %s2449_s21 = scalar_lea.hbm %s2448_s30, 192  ;;  %s175_s23 = sadd.s32 1, %s2930_s15 }
  0x32   : > { %p3094_p11 = scmp.lt.s32.totalorder %s175_s23, 2  ;;  %s180_s10 = ssub.s32 1, %s3091_s5 }
  0x33   : > { %s195_s11 = sshll.u32 %s2449_s21, 4  ;;  %s185_s20 = smul.u32 248, %s180_s10  ;;  %s196_s11 = int_to_ptr.hbm [resolvable:$true] %s195_s11 }
  0x34   : > { %s204_s4 = smul.u32 248, %s3091_s5  ;;  %s187_s9 = scalar_lea.sflag [#allocation3], %s180_s10 }
  0x35   : > { %s186_s7 = scalar_lea.vmem [#allocation2], %s185_s20  ;;  %s2818_s25 = sshra.s32 %s196_s11, 4  ;;  %s2819_s25 = int_to_ptr.hbm [resolvable:$true] %s2818_s25 }
  0x36   : > { %s197_s29 = sshll.u32 %s186_s7, 4  ;;  %s2820_s28 = scalar_lea.hbm %s2819_s25, 248  ;;  %s198_s29 = int_to_ptr.vmem [resolvable:$true] %s197_s29 }
  0x37   : > { %p2821_p12 = scmp.ne.s32.totalorder %s2819_s25, %s2820_s28  ;;  %p2825_p1 = scmp.lt.s32.totalorder %s2819_s25, %s3867_s0 }
  0x38   : > { %p2826_p2 = scmp.lt.s32.totalorder %s2796_s1, %s2820_s28 }
  0x39   : > { %p2822_p13 = pnand %p2821_p12, %p3094_p11 }
  0x3a   : > { %p2827_p4 = por %p2826_p2, %p2825_p1 }
  0x3b   : > { %p2823_p0 = pneg %p2822_p13 }
  0x3d   : > { %p2828_p5 = pnand %p2827_p4, %p2823_p0 }
  0x3f   : > { %2831 = shalt.err (!%p2828_p5)  }
  0x40   : > { %2592 = dma.hbm_to_vmem [thread:$0]  (%p3094_p11), %s196_s11, 3968, %s198_s29, %s187_s9 }
  0x41   : > { %s3108_s21 = scalar_lea.vmem [#allocation8], %s3069_s24  ;;  %s3110_s10 = scalar_lea.vmem [#allocation2], %s204_s4 }
  0x42   : > { %s206_s20 = scalar_lea.sflag [#allocation3], %s3091_s5 }
  0x43   : > { %2910 = dma.done.wait %s206_s20, 3968 }
  0x44   : > { %2911 = vsyncadd %s206_s20, 4294963328  ;;  %v256_v0 = vld [vmem:[#allocation5 + $0x78] sm:$0xff]  ;;  %v255_v1 = vld [vmem:[#allocation5 + $0x70] sm:$0xff]  ;;  %vm412_vm0 = vcmask 1046528   ;;  %vm664_vm1 = vcmask 1045504   ;;  %s2536_s5 = sshll.u32 %s2930_s15, 4 }
  0x45   : > { %2537 = vmatpush.msra.mxu1 %v256_v0  ;;  %2538 = vmatpush.msra.mxu2 %v256_v0  ;;  %v254_v2 = vld [vmem:[#allocation5 + $0x68] sm:$0xff]  ;;  %v253_v3 = vld [vmem:[#allocation5 + $0x60] sm:$0xff]  ;;  %v252_v4 = vld [vmem:[#allocation5 + $0x58] sm:$0xff]  ;;  %s2530_s6 = sshll.u32 %s2934_s16, 5  ;;  %s2397_s29 = sshll.u32 %s3108_s21, 4  ;;  %s2398_s29 = int_to_ptr.vmem [resolvable:$true] %s2397_s29 }
  0x46   : > { %2539 = vmatpush.msra.mxu3 %v256_v0  ;;  %257 = vmatpush.msra.mxu0 %v256_v0  ;;  %v251_v5 = vld [vmem:[#allocation5 + $0x50] sm:$0xff]  ;;  %v250_v6 = vld [vmem:[#allocation5 + $0x48] sm:$0xff]  ;;  %v249_v7 = vld [vmem:[#allocation5 + $0x40] sm:$0xff]  ;;  %s2394_s11 = sadd.s32 %s2536_s5, %s2530_s6  ;;  %s3915_s25 = sand.u32 1, %s2922_s13  }
  0x47   : > { %2540 = vmatpush.msra.mxu1 %v255_v1  ;;  %2541 = vmatpush.msra.mxu2 %v255_v1  ;;  %v248_v8 = vld [vmem:[#allocation5 + $0x38] sm:$0xff]  ;;  %v247_v9 = vld [vmem:[#allocation5 + $0x30] sm:$0xff]  ;;  %v246_v10 = vld [vmem:[#allocation5 + $0x28] sm:$0xff]  ;;  %s2531_s4 = sshll.u32 %s2394_s11, 3  ;;  %s2382_s28 = scalar_lea.sflag [#allocation7], %s3915_s25 }
  0x48   : > { %2542 = vmatpush.msra.mxu3 %v255_v1  ;;  %258 = vmatpush.msra.mxu0 %v255_v1  ;;  %v245_v11 = vld [vmem:[#allocation5 + $0x20] sm:$0xff]  ;;  %v244_v12 = vld [vmem:[#allocation5 + $0x18] sm:$0xff]  ;;  %v243_v13 = vld [vmem:[#allocation5 + $0x10] sm:$0xff]  ;;  %s2396_s16 = scalar_lea.hbm %s3870_s3, %s2531_s4  ;;  %s2866_s1 = scalar_lea.hbm %s3870_s3, 512 }
  0x49   : > { %2543 = vmatpush.msra.mxu1 %v254_v2  ;;  %2544 = vmatpush.msra.mxu2 %v254_v2  ;;  %v242_v14 = vld [vmem:[#allocation5 + $0x8] sm:$0xff]  ;;  %v241_v15 = vld [vmem:[#allocation5] sm:$0xff]  ;;  %v663_v18 = vld [vmem:[#allocation5 + $0x178] sm:$0xff]  ;;  %s2399_s9 = sshll.u32 %s2396_s16, 4  ;;  %s2400_s9 = int_to_ptr.hbm [resolvable:$true] %s2399_s9 }
  0x4a   : > { %2545 = vmatpush.msra.mxu3 %v254_v2  ;;  %259 = vmatpush.msra.mxu0 %v254_v2  ;;  %v3114_v16 = vld [vmem:[%s3110_s10 + $0x30] sm:$0xff]  ;;  %v3117_v17 = vld [vmem:[%s3110_s10 + $0x60] sm:$0xff]  ;;  %v3129_v30 = vld [vmem:[%s3110_s10 + $0x38] sm:$0xff]  ;;  %s2860_s30 = sshra.s32 %s2400_s9, 4  ;;  %s2861_s30 = int_to_ptr.hbm [resolvable:$true] %s2860_s30 }
  0x4b   : > { %2546 = vmatpush.msra.mxu1 %v253_v3  ;;  %2547 = vmatpush.msra.mxu2 %v253_v3  ;;  %v3120_v19 = vld [vmem:[%s3110_s10 + $0x90] sm:$0xff]  ;;  %v662_v22 = vld [vmem:[#allocation5 + $0x170] sm:$0xff]  ;;  %v661_v25 = vld [vmem:[#allocation5 + $0x168] sm:$0xff]  ;;  %s2862_s23 = scalar_lea.hbm %s2861_s30, 128  ;;  %p2867_p10 = scmp.lt.s32.totalorder %s2861_s30, %s3870_s3 }
  0x4c   : > { %2548 = vmatpush.msra.mxu3 %v253_v3  ;;  %260 = vmatpush.msra.mxu0 %v253_v3  ;;  %v386_v20 = vld [vmem:[#allocation5 + $0xf8] sm:$0xff]  ;;  %v385_v23 = vld [vmem:[#allocation5 + $0xf0] sm:$0xff]  ;;  %v384_v27 = vld [vmem:[#allocation5 + $0xe8] sm:$0xff]  ;;  %p2863_p6 = scmp.ne.s32.totalorder %s2861_s30, %s2862_s23  ;;  %p2868_p11 = scmp.lt.s32.totalorder %s2866_s1, %s2862_s23 }
  0x4d   : > { %2549 = vmatpush.msra.mxu1 %v252_v4  ;;  %2550 = vmatpush.msra.mxu2 %v252_v4  ;;  %v915_v21 = vld [vmem:[#allocation5 + $0x1f8] sm:$0xff]  ;;  %v914_v24 = vld [vmem:[#allocation5 + $0x1f0] sm:$0xff]  ;;  %v913_v28 = vld [vmem:[#allocation5 + $0x1e8] sm:$0xff] }
  0x4e   : > { %2551 = vmatpush.msra.mxu3 %v252_v4  ;;  %261 = vmatpush.msra.mxu0 %v252_v4  ;;  %v3126_v26 = vld [vmem:[%s3110_s10] sm:$0xff]  ;;  %v660_v29 = vld [vmem:[#allocation5 + $0x160] sm:$0xff]  ;;  %v3132_v31 = vld [vmem:[%s3110_s10 + $0x68] sm:$0xff]  ;;  %p2864_p7 = pnand %p2863_p6, %p3026_p3  ;;  %p2869_p12 = por %p2868_p11, %p2867_p10 }
  0x4f   : > { %2552 = vmatpush.msra.mxu1 %v251_v5  ;;  %2553 = vmatpush.msra.mxu2 %v251_v5  ;;  %v1093_v32 = vld [vmem:[#allocation5 + $0x278] sm:$0xff]  ;;  %v912_v33 = vld [vmem:[#allocation5 + $0x1e0] sm:$0xff]  ;;  %v1092_v37 = vld [vmem:[#allocation5 + $0x270] sm:$0xff] }
  0x50   : > { %2554 = vmatpush.msra.mxu3 %v251_v5  ;;  %262 = vmatpush.msra.mxu0 %v251_v5  ;;  %v3136_v34 = vld [vmem:[%s3110_s10 + $0x98] sm:$0xff]  ;;  %v659_v35 = vld [vmem:[#allocation5 + $0x158] sm:$0xff]  ;;  %v658_v39 = vld [vmem:[#allocation5 + $0x150] sm:$0xff]  ;;  %p2865_p9 = pneg %p2864_p7 }
  0x51   : > { %2555 = vmatpush.msra.mxu1 %v250_v6  ;;  %2556 = vmatpush.msra.mxu2 %v250_v6  ;;  %v383_v36 = vld [vmem:[#allocation5 + $0xe0] sm:$0xff]  ;;  %v911_v38 = vld [vmem:[#allocation5 + $0x1d8] sm:$0xff]  ;;  %v1091_v41 = vld [vmem:[#allocation5 + $0x268] sm:$0xff] }
  0x52   : > { %2557 = vmatpush.msra.mxu3 %v250_v6  ;;  %263 = vmatpush.msra.mxu0 %v250_v6  ;;  %v382_v40 = vld [vmem:[#allocation5 + $0xd8] sm:$0xff]  ;;  %v910_v42 = vld [vmem:[#allocation5 + $0x1d0] sm:$0xff]  ;;  %v657_v44 = vld [vmem:[#allocation5 + $0x148] sm:$0xff]  ;;  %p2870_p13 = pnand %p2869_p12, %p2865_p9 }
  0x53   : > { %2558 = vmatpush.msra.mxu1 %v249_v7  ;;  %2559 = vmatpush.msra.mxu2 %v249_v7  ;;  %v3142_v43 = vld [vmem:[%s3110_s10 + $0x8] sm:$0xff]  ;;  %v3145_v46 = vld [vmem:[%s3110_s10 + $0x40] sm:$0xff]  ;;  %v3148_v47 = vld [vmem:[%s3110_s10 + $0x70] sm:$0xff] }
  0x54   : > { %2560 = vmatpush.msra.mxu3 %v249_v7  ;;  %264 = vmatpush.msra.mxu0 %v249_v7  ;;  %v381_v45 = vld [vmem:[#allocation5 + $0xd0] sm:$0xff]  ;;  %v1090_v48 = vld [vmem:[#allocation5 + $0x260] sm:$0xff]  ;;  %v909_v49 = vld [vmem:[#allocation5 + $0x1c8] sm:$0xff] }
  0x55   : > { %2561 = vmatpush.msra.mxu1 %v248_v8  ;;  %2562 = vmatpush.msra.mxu2 %v248_v8  ;;  %v3152_v50 = vld [vmem:[%s3110_s10 + $0xa0] sm:$0xff]  ;;  %v656_v51 = vld [vmem:[#allocation5 + $0x140] sm:$0xff]  ;;  %v1089_v53 = vld [vmem:[#allocation5 + $0x258] sm:$0xff] }
  0x56   : > { %2563 = vmatpush.msra.mxu3 %v248_v8  ;;  %265 = vmatpush.msra.mxu0 %v248_v8  ;;  %v380_v52 = vld [vmem:[#allocation5 + $0xc8] sm:$0xff]  ;;  %v908_v54 = vld [vmem:[#allocation5 + $0x1c0] sm:$0xff]  ;;  %v655_v55 = vld [vmem:[#allocation5 + $0x138] sm:$0xff] }
  0x57   : > { %2564 = vmatpush.msra.mxu1 %v247_v9  ;;  %2565 = vmatpush.msra.mxu2 %v247_v9  ;;  %v379_v56 = vld [vmem:[#allocation5 + $0xc0] sm:$0xff]  ;;  %v1088_v57 = vld [vmem:[#allocation5 + $0x250] sm:$0xff]  ;;  %v907_v59 = vld [vmem:[#allocation5 + $0x1b8] sm:$0xff] }
  0x58   : > { %2566 = vmatpush.msra.mxu3 %v247_v9  ;;  %266 = vmatpush.msra.mxu0 %v247_v9  ;;  %v3158_v58 = vld [vmem:[%s3110_s10 + $0x10] sm:$0xff]  ;;  %v654_v60 = vld [vmem:[#allocation5 + $0x130] sm:$0xff]  ;;  %v3164_v63 = vld [vmem:[%s3110_s10 + $0x78] sm:$0xff] }
  0x59   : > { %2567 = vmatpush.msra.mxu1 %v246_v10  ;;  %2568 = vmatpush.msra.mxu2 %v246_v10  ;;  %v378_v61 = vld [vmem:[#allocation5 + $0xb8] sm:$0xff]  ;;  %v1087_v0 = vld [vmem:[#allocation5 + $0x248] sm:$0xff]  ;;  %v906_v1 = vld [vmem:[#allocation5 + $0x1b0] sm:$0xff] }
  0x5a   : > { %2569 = vmatpush.msra.mxu3 %v246_v10  ;;  %267 = vmatpush.msra.mxu0 %v246_v10  ;;  %v3161_v62 = vld [vmem:[%s3110_s10 + $0x48] sm:$0xff]  ;;  %v653_v3 = vld [vmem:[#allocation5 + $0x128] sm:$0xff]  ;;  %v1086_v5 = vld [vmem:[#allocation5 + $0x240] sm:$0xff] }
  0x5b   : > { %2570 = vmatpush.msra.mxu1 %v245_v11  ;;  %2571 = vmatpush.msra.mxu2 %v245_v11  ;;  %v3168_v2 = vld [vmem:[%s3110_s10 + $0xa8] sm:$0xff]  ;;  %v905_v6 = vld [vmem:[#allocation5 + $0x1a8] sm:$0xff]  ;;  %v652_v7 = vld [vmem:[#allocation5 + $0x120] sm:$0xff] }
  0x5c   : > { %2572 = vmatpush.msra.mxu3 %v245_v11  ;;  %268 = vmatpush.msra.mxu0 %v245_v11  ;;  %v377_v4 = vld [vmem:[#allocation5 + $0xb0] sm:$0xff]  ;;  %v376_v8 = vld [vmem:[#allocation5 + $0xa8] sm:$0xff]  ;;  %v1085_v9 = vld [vmem:[#allocation5 + $0x238] sm:$0xff] }
  0x5d   : > { %2573 = vmatpush.msra.mxu1 %v244_v12  ;;  %2574 = vmatpush.msra.mxu2 %v244_v12  ;;  %v3174_v10 = vld [vmem:[%s3110_s10 + $0x18] sm:$0xff] }
  0x5e   : > { %2575 = vmatpush.msra.mxu3 %v244_v12  ;;  %269 = vmatpush.msra.mxu0 %v244_v12  ;;  %v904_v11 = vld [vmem:[#allocation5 + $0x1a0] sm:$0xff]  ;;  %v651_v12 = vld [vmem:[#allocation5 + $0x118] sm:$0xff] }
  0x5f   : > { %2576 = vmatpush.msra.mxu1 %v243_v13  ;;  %2577 = vmatpush.msra.mxu2 %v243_v13 }
  0x60   : > { %2578 = vmatpush.msra.mxu3 %v243_v13  ;;  %270 = vmatpush.msra.mxu0 %v243_v13  ;;  %v375_v13 = vld [vmem:[#allocation5 + $0xa0] sm:$0xff] }
  0x61   : > { %2579 = vmatpush.msra.mxu1 %v242_v14  ;;  %2580 = vmatpush.msra.mxu2 %v242_v14 }
  0x62   : > { %2581 = vmatpush.msra.mxu3 %v242_v14  ;;  %271 = vmatpush.msra.mxu0 %v242_v14  ;;  %v3177_v14 = vld [vmem:[%s3110_s10 + $0x50] sm:$0xff] }
  0x63   : > { %2582 = vmatpush.msra.mxu1 %v241_v15  ;;  %2583 = vmatpush.msra.mxu2 %v241_v15 }
  0x64   : > { %291 = vmatmul.f32.vlgmr.msra.gmra.mxu1 %v3114_v16  ;;  %309 = vmatmul.f32.vlgmr.msra.gmra.mxu2 %v3117_v17 }
  0x65   : > { %738 = vmatpush.msrb.mxu2 %v663_v18  ;;  %2584 = vmatpush.msra.mxu3 %v241_v15  ;;  %v1084_v18 = vld [vmem:[#allocation5 + $0x230] sm:$0xff] }
  0x66   : > { %327 = vmatmul.f32.vlgmr.msra.gmra.mxu3 %v3120_v19  ;;  %486 = vmatpush.msrb.mxu1 %v386_v20  ;;  %v903_v20 = vld [vmem:[#allocation5 + $0x198] sm:$0xff] }
  0x67   : > { %916 = vmatpush.msrb.mxu3 %v915_v21  ;;  %739 = vmatpush.msrb.mxu2 %v662_v22  ;;  %v3184_v21 = vld [vmem:[%s3110_s10 + $0xb0] sm:$0xff]  ;;  %v650_v22 = vld [vmem:[#allocation5 + $0x110] sm:$0xff] }
  0x68   : > { %487 = vmatpush.msrb.mxu1 %v385_v23  ;;  %272 = vmatpush.msra.mxu0 %v241_v15  ;;  %v3180_v15 = vld [vmem:[%s3110_s10 + $0x80] sm:$0xff]  ;;  %v374_v23 = vld [vmem:[#allocation5 + $0x98] sm:$0xff] }
  0x69   : > { %917 = vmatpush.msrb.mxu3 %v914_v24  ;;  %740 = vmatpush.msrb.mxu2 %v661_v25  ;;  %v1083_v24 = vld [vmem:[#allocation5 + $0x228] sm:$0xff]  ;;  %v902_v25 = vld [vmem:[#allocation5 + $0x190] sm:$0xff] }
  0x6a   : > { %273 = vmatmul.f32.vlgmr.msra.gmra.mxu0 %v3126_v26  ;;  %488 = vmatpush.msrb.mxu1 %v384_v27  ;;  %v649_v27 = vld [vmem:[#allocation5 + $0x108] sm:$0xff] }
  0x6b   : > { %918 = vmatpush.msrb.mxu3 %v913_v28  ;;  %741 = vmatpush.msrb.mxu2 %v660_v29  ;;  %v373_v28 = vld [vmem:[#allocation5 + $0x90] sm:$0xff]  ;;  %v1082_v29 = vld [vmem:[#allocation5 + $0x220] sm:$0xff] }
  0x6c   : > { %294 = vmatmul.f32.gmra.mxu1 %v3129_v30  ;;  %312 = vmatmul.f32.gmra.mxu2 %v3132_v31 }
  0x6d   : > { %1106 = vmatpush.msrb.mxu0 %v1093_v32  ;;  %919 = vmatpush.msrb.mxu3 %v912_v33  ;;  %v3190_v32 = vld [vmem:[%s3110_s10 + $0x20] sm:$0xff] }
  0x6e   : > { %330 = vmatmul.f32.gmra.mxu3 %v3136_v34  ;;  %742 = vmatpush.msrb.mxu2 %v659_v35  ;;  %v901_v33 = vld [vmem:[#allocation5 + $0x188] sm:$0xff] }
  0x6f   : > { %489 = vmatpush.msrb.mxu1 %v383_v36  ;;  %1107 = vmatpush.msrb.mxu0 %v1092_v37  ;;  %v372_v35 = vld [vmem:[#allocation5 + $0x88] sm:$0xff]  ;;  %v648_v36 = vld [vmem:[#allocation5 + $0x100] sm:$0xff] }
  0x70   : > { %920 = vmatpush.msrb.mxu3 %v911_v38  ;;  %743 = vmatpush.msrb.mxu2 %v658_v39  ;;  %v3193_v37 = vld [vmem:[%s3110_s10 + $0x58] sm:$0xff]  ;;  %v3196_v38 = vld [vmem:[%s3110_s10 + $0x88] sm:$0xff] }
  0x71   : > { %490 = vmatpush.msrb.mxu1 %v382_v40  ;;  %1108 = vmatpush.msrb.mxu0 %v1091_v41  ;;  %v1081_v39 = vld [vmem:[#allocation5 + $0x218] sm:$0xff]  ;;  %v371_v40 = vld [vmem:[#allocation5 + $0x80] sm:$0xff] }
  0x72   : > { %921 = vmatpush.msrb.mxu3 %v910_v42  ;;  %276 = vmatmul.f32.gmra.mxu0 %v3142_v43  ;;  %v3200_v41 = vld [vmem:[%s3110_s10 + $0xb8] sm:$0xff]  ;;  %v1470_v42 = vld [vmem:[#allocation5 + $0x378] sm:$0xff] }
  0x73   : > { %744 = vmatpush.msrb.mxu2 %v657_v44  ;;  %491 = vmatpush.msrb.mxu1 %v381_v45  ;;  %v900_v44 = vld [vmem:[#allocation5 + $0x180] sm:$0xff]  ;;  %v1080_v45 = vld [vmem:[#allocation5 + $0x210] sm:$0xff] }
  0x74   : > { %297 = vmatmul.f32.gmra.mxu1 %v3145_v46  ;;  %315 = vmatmul.f32.gmra.mxu2 %v3148_v47 }
  0x75   : > { %1109 = vmatpush.msrb.mxu0 %v1090_v48  ;;  %922 = vmatpush.msrb.mxu3 %v909_v49  ;;  %v413_v48 = vrot.slane %v3126_v26, 1  ;;  %v665_v49 = vrot.slane %v3126_v26, 2  ;;  %v1647_v26 = vld [vmem:[#allocation5 + $0x3f0] sm:$0xff] }
  0x76   : > { %333 = vmatmul.f32.gmra.mxu3 %v3152_v50  ;;  %745 = vmatpush.msrb.mxu2 %v656_v51  ;;  %v414_v51 = vrot.slane %v3142_v43, 1 }
  0x77   : > { %492 = vmatpush.msrb.mxu1 %v380_v52  ;;  %1110 = vmatpush.msrb.mxu0 %v1089_v53  ;;  %v666_v52 = vrot.slane %v3142_v43, 2  ;;  %v1648_v53 = vld [vmem:[#allocation5 + $0x3f8] sm:$0xff]  ;;  %v1282_v43 = vld [vmem:[#allocation5 + $0x2f0] sm:$0xff] }
  0x78   : > { %923 = vmatpush.msrb.mxu3 %v908_v54  ;;  %746 = vmatpush.msrb.mxu2 %v655_v55  ;;  %v1283_v54 = vld [vmem:[#allocation5 + $0x2f8] sm:$0xff]  ;;  %v1079_v55 = vld [vmem:[#allocation5 + $0x208] sm:$0xff] }
  0x79   : > { %493 = vmatpush.msrb.mxu1 %v379_v56  ;;  %1111 = vmatpush.msrb.mxu0 %v1088_v57  ;;  %v1469_v56 = vld [vmem:[#allocation5 + $0x370] sm:$0xff] }
  0x7a   : > { %279 = vmatmul.f32.gmra.mxu0 %v3158_v58  ;;  %924 = vmatpush.msrb.mxu3 %v907_v59  ;;  %v3210_v57 = vld [vmem:[%s3110_s10 + $0x28] sm:$0xff]  ;;  %v1078_v59 = vld [vmem:[#allocation5 + $0x200] sm:$0xff] }
  0x7b   : > { %747 = vmatpush.msrb.mxu2 %v654_v60  ;;  %494 = vmatpush.msrb.mxu1 %v378_v61  ;;  %v415_v60 = vsel %vm412_vm0, %v413_v48, %v414_v51  ;;  %v667_v61 = vsel %vm664_vm1, %v665_v49, %v666_v52  ;;  %v1465_v48 = vld [vmem:[#allocation5 + $0x350] sm:$0xff] }
  0x7c   : > { %300 = vmatmul.f32.gmra.mxu1 %v3161_v62  ;;  %318 = vmatmul.f32.gmra.mxu2 %v3164_v63  ;;  %v1643_v49 = vld [vmem:[#allocation5 + $0x3d0] sm:$0xff] }
  0x7d   : > { %1112 = vmatpush.msrb.mxu0 %v1087_v0  ;;  %925 = vmatpush.msrb.mxu3 %v906_v1  ;;  %v1838_v0 = vld [vmem:[#allocation5 + $0x478] sm:$0xff]  ;;  %v1468_v1 = vld [vmem:[#allocation5 + $0x368] sm:$0xff] }
  0x7e   : > { %336 = vmatmul.f32.gmra.mxu3 %v3168_v2  ;;  %748 = vmatpush.msrb.mxu2 %v653_v3  ;;  %v418_v3 = vrot.slane %v3174_v10, 1 }
  0x7f   : > { %495 = vmatpush.msrb.mxu1 %v377_v4  ;;  %1113 = vmatpush.msrb.mxu0 %v1086_v5  ;;  %v420_v4 = vrot.slane %v3190_v32, 1  ;;  %v1281_v5 = vld [vmem:[#allocation5 + $0x2e8] sm:$0xff] }
  0x80   : > { %926 = vmatpush.msrb.mxu3 %v905_v6  ;;  %749 = vmatpush.msrb.mxu2 %v652_v7  ;;  %v1837_v6 = vld [vmem:[#allocation5 + $0x470] sm:$0xff]  ;;  %v1646_v7 = vld [vmem:[#allocation5 + $0x3e8] sm:$0xff] }
  0x81   : > { %496 = vmatpush.msrb.mxu1 %v376_v8  ;;  %1114 = vmatpush.msrb.mxu0 %v1085_v9  ;;  %v416_v8 = vrot.slane %v3158_v58, 1  ;;  %v668_v9 = vrot.slane %v3158_v58, 2  ;;  %v422_v58 = vrot.slane %v3210_v57, 1 }
  0x82   : > { %282 = vmatmul.f32.gmra.mxu0 %v3174_v10  ;;  %927 = vmatpush.msrb.mxu3 %v904_v11  ;;  %v1836_v11 = vld [vmem:[#allocation5 + $0x468] sm:$0xff] }
  0x83   : > { %750 = vmatpush.msrb.mxu2 %v651_v12  ;;  %497 = vmatpush.msrb.mxu1 %v375_v13  ;;  %v1467_v12 = vld [vmem:[#allocation5 + $0x360] sm:$0xff] }
  0x84   : > { %303 = vmatmul.f32.gmra.mxu1 %v3177_v14  ;;  %321 = vmatmul.f32.gmra.mxu2 %v3180_v15  ;;  %v1645_v13 = vld [vmem:[#allocation5 + $0x3e0] sm:$0xff] }
  0x85   : > { %1115 = vmatpush.msrb.mxu0 %v1084_v18  ;;  %928 = vmatpush.msrb.mxu3 %v903_v20  ;;  %v421_v18 = vsel %vm412_vm0, %v418_v3, %v420_v4  ;;  %v417_v20 = vsel %vm412_vm0, %v414_v51, %v416_v8 }
  0x86   : > { %339 = vmatmul.f32.gmra.mxu3 %v3184_v21  ;;  %751 = vmatpush.msrb.mxu2 %v650_v22  ;;  %v669_v22 = vsel %vm664_vm1, %v666_v52, %v668_v9 }
  0x87   : > { %498 = vmatpush.msrb.mxu1 %v374_v23  ;;  %1116 = vmatpush.msrb.mxu0 %v1083_v24  ;;  %v1280_v23 = vld [vmem:[#allocation5 + $0x2e0] sm:$0xff]  ;;  %v670_v24 = vrot.slane %v3174_v10, 2 }
  0x88   : > { %929 = vmatpush.msrb.mxu3 %v902_v25  ;;  %752 = vmatpush.msrb.mxu2 %v649_v27  ;;  %v1835_v25 = vld [vmem:[#allocation5 + $0x460] sm:$0xff]  ;;  %v423_v27 = vsel %vm412_vm0, %v420_v4, %v422_v58  ;;  %v1832_v4 = vld [vmem:[#allocation5 + $0x448] sm:$0xff] }
  0x89   : > { %499 = vmatpush.msrb.mxu1 %v373_v28  ;;  %1117 = vmatpush.msrb.mxu0 %v1082_v29  ;;  %v419_v28 = vsel %vm412_vm0, %v416_v8, %v418_v3  ;;  %v671_v29 = vsel %vm664_vm1, %v668_v9, %v670_v24  ;;  %v432_v3 = vrot.slane %v3177_v14, 1  ;;  %v1641_v8 = vld [vmem:[#allocation5 + $0x3c0] sm:$0xff]  ;;  %v434_v9 = vrot.slane %v3193_v37, 1 }
  0x8a   : > { %285 = vmatmul.f32.gmra.mxu0 %v3190_v32  ;;  %930 = vmatpush.msrb.mxu3 %v901_v33  ;;  %v424_v33 = vrot.slane %v3114_v16, 1 }
  0x8b   : > { %500 = vmatpush.msrb.mxu1 %v372_v35  ;;  %753 = vmatpush.msrb.mxu2 %v648_v36  ;;  %v1466_v35 = vld [vmem:[#allocation5 + $0x358] sm:$0xff]  ;;  %v672_v36 = vrot.slane %v3190_v32, 2 }
  0x8c   : > { %306 = vmatmul.f32.gmra.mxu1 %v3193_v37  ;;  %324 = vmatmul.f32.gmra.mxu2 %v3196_v38 }
  0x8d   : > { %1118 = vmatpush.msrb.mxu0 %v1081_v39  ;;  %501 = vmatpush.msrb.mxu1 %v371_v40  ;;  %v1279_v39 = vld [vmem:[#allocation5 + $0x2d8] sm:$0xff]  ;;  %v425_v40 = vsel %vm412_vm0, %v422_v58, %v424_v33 }
  0x8e   : > { %342 = vmatmul.f32.gmra.mxu3 %v3200_v41  ;;  %1471 = vmatpush.msra.mxu2 %v1470_v42  ;;  %v3234_v42 = vsel %vm664_vm1, %v670_v24, %v672_v36  ;;  %v1640_v58 = vld [vmem:[#allocation5 + $0x3b8] sm:$0xff] }
  0x8f   : > { %931 = vmatpush.msrb.mxu3 %v900_v44  ;;  %1119 = vmatpush.msrb.mxu0 %v1080_v45  ;;  %v426_v44 = vrot.slane %v3129_v30, 1  ;;  %v1834_v45 = vld [vmem:[#allocation5 + $0x458] sm:$0xff] }
  0x90   : > { %1293 = vmatpush.msra.mxu1 %v1283_v54  ;;  %1472 = vmatpush.msra.mxu2 %v1469_v56  ;;  %v1278_v54 = vld [vmem:[#allocation5 + $0x2d0] sm:$0xff]  ;;  %v1275_v24 = vld [vmem:[#allocation5 + $0x2b8] sm:$0xff] }
  0x91   : > { %1661 = vmatpush.msra.mxu3 %v1648_v53  ;;  %1120 = vmatpush.msrb.mxu0 %v1079_v55  ;;  %v3241_v51 = vsel %vm412_vm0, %v424_v33, %v426_v44  ;;  %v428_v53 = vrot.slane %v3145_v46, 1  ;;  %v676_v55 = vrot.slane %v3114_v16, 2  ;;  %v1833_v56 = vld [vmem:[#allocation5 + $0x450] sm:$0xff] }
  0x92   : > { %288 = vmatmul.f32.gmra.mxu0 %v3210_v57  ;;  %1294 = vmatpush.msra.mxu1 %v1282_v43  ;;  %v1464_v43 = vld [vmem:[#allocation5 + $0x348] sm:$0xff]  ;;  %v1461_v33 = vld [vmem:[#allocation5 + $0x330] sm:$0xff] }
  0x93   : > { %1662 = vmatpush.msra.mxu3 %v1647_v26  ;;  %1121 = vmatpush.msrb.mxu0 %v1078_v59  ;;  %v430_v59 = vrot.slane %v3161_v62, 1 }
  0x94   : > { %502 = vmatmul.f32.vlgmr.msrb.gmra.mxu1 %v415_v60  ;;  %754 = vmatmul.f32.vlgmr.msrb.gmra.mxu2 %v667_v61  ;;  %v1642_v60 = vld [vmem:[#allocation5 + $0x3c8] sm:$0xff] }
  0x95   : > { %1848 = vmatpush.msra.mxu0 %v1838_v0  ;;  %1473 = vmatpush.msra.mxu2 %v1468_v1  ;;  %v1277_v61 = vld [vmem:[#allocation5 + $0x2c8] sm:$0xff]  ;;  %v3263_v0 = vsel %vm412_vm0, %v428_v53, %v430_v59 }
  0x96   : > { %932 = vmatmul.f32.vlgmr.msrb.gmra.mxu3 %v3174_v10  ;;  %1295 = vmatpush.msra.mxu1 %v1281_v5  ;;  %v1644_v10 = vld [vmem:[#allocation5 + $0x3d8] sm:$0xff]  ;;  %v3275_v5 = vsel %vm412_vm0, %v430_v59, %v432_v3  ;;  %v690_v59 = vrot.slane %v3132_v31, 2 }
  0x97   : > { %1849 = vmatpush.msra.mxu0 %v1837_v6  ;;  %1663 = vmatpush.msra.mxu3 %v1646_v7  ;;  %v1463_v6 = vld [vmem:[#allocation5 + $0x340] sm:$0xff] }
  0x98   : > { %1474 = vmatpush.msra.mxu2 %v1467_v12  ;;  %1296 = vmatpush.msra.mxu1 %v1280_v23  ;;  %v3287_v12 = vsel %vm412_vm0, %v432_v3, %v434_v9  ;;  %v1273_v3 = vld [vmem:[#allocation5 + $0x2a8] sm:$0xff] }
  0x99   : > { %1850 = vmatpush.msra.mxu0 %v1836_v11  ;;  %1664 = vmatpush.msra.mxu3 %v1645_v13  ;;  %v682_v11 = vrot.slane %v3161_v62, 2 }
  0x9a   : > { %1122 = vmatmul.f32.vlgmr.msrb.gmra.mxu0 %v421_v18  ;;  %1475 = vmatpush.msra.mxu2 %v1466_v35 }
  0x9b   : > { %1851 = vmatpush.msra.mxu0 %v1835_v25  ;;  %1665 = vmatpush.msra.mxu3 %v1644_v10  ;;  %v1639_v10 = vld [vmem:[#allocation5 + $0x3b0] sm:$0xff] }
  0x9c   : > { %505 = vmatmul.f32.gmra.mxu1 %v417_v20  ;;  %757 = vmatmul.f32.gmra.mxu2 %v669_v22  ;;  %v436_v20 = vrot.slane %v3117_v17, 1  ;;  %v684_v22 = vrot.slane %v3177_v14, 2 }
  0x9d   : > { %1297 = vmatpush.msra.mxu1 %v1279_v39  ;;  %1852 = vmatpush.msra.mxu0 %v1834_v45  ;;  %v440_v39 = vrot.slane %v3148_v47, 1 }
  0x9e   : > { %935 = vmatmul.f32.gmra.mxu3 %v3190_v32  ;;  %v674_v32 = vrot.slane %v3210_v57, 2  ;;  %1476 = vmatpush.msra.mxu2 %v1465_v48  ;;  %v3299_v23 = vsel %vm412_vm0, %v434_v9, %v436_v20  ;;  %v3302_v25 = vsel %vm664_vm1, %v682_v11, %v684_v22  ;;  %v1828_v9 = vld [vmem:[#allocation5 + $0x428] sm:$0xff] }
  0x9f   : > { %1666 = vmatpush.msra.mxu3 %v1643_v49  ;;  %1298 = vmatpush.msra.mxu1 %v1278_v54 }
  0xa0   : > { %v3244_v52 = vsel %vm664_vm1, %v672_v36, %v674_v32  ;;  %1853 = vmatpush.msra.mxu0 %v1833_v56  ;;  %v3255_v26 = vsel %vm664_vm1, %v674_v32, %v676_v55  ;;  %1477 = vmatpush.msra.mxu2 %v1464_v43  ;;  %v1460_v56 = vld [vmem:[#allocation5 + $0x328] sm:$0xff] }
  0xa1   : > { %1667 = vmatpush.msra.mxu3 %v1642_v60  ;;  %1299 = vmatpush.msra.mxu1 %v1277_v61  ;;  %v1638_v43 = vld [vmem:[#allocation5 + $0x3a8] sm:$0xff] }
  0xa2   : > { %1125 = vmatmul.f32.gmra.mxu0 %v423_v27  ;;  %1478 = vmatpush.msra.mxu2 %v1463_v6 }
  0xa3   : > { %1854 = vmatpush.msra.mxu0 %v1832_v4  ;;  %1668 = vmatpush.msra.mxu3 %v1641_v8  ;;  %v692_v8 = vrot.slane %v3148_v47, 2 }
  0xa4   : > { %508 = vmatmul.f32.gmra.mxu1 %v419_v28  ;;  %760 = vmatmul.f32.gmra.mxu2 %v671_v29  ;;  %v1830_v28 = vld [vmem:[#allocation5 + $0x438] sm:$0xff] }
  0xa5   : > { %1669 = vmatpush.msra.mxu3 %v1640_v58  ;;  %v3368_v58 = vsel %vm664_vm1, %v690_v59, %v692_v8 }
  0xa6   : > { %938 = vmatmul.f32.gmra.mxu3 %v3210_v57  ;;  %v3252_v57 = vsel %vm412_vm0, %v426_v44, %v428_v53  ;;  %v688_v44 = vrot.slane %v3117_v17, 2 }
  0xa7   : > { %1670 = vmatpush.msra.mxu3 %v1639_v10 }
  0xa8   : > { %v3354_v6 = vsel %vm664_vm1, %v688_v44, %v690_v59  ;;  %v1636_v59 = vld [vmem:[#allocation5 + $0x398] sm:$0xff] }
  0xa9   : > { %1671 = vmatpush.msra.mxu3 %v1638_v43 }
  0xaa   : > { %1128 = vmatmul.f32.gmra.mxu0 %v425_v40 }
  0xac   : > { %511 = vmatmul.f32.gmra.mxu1 %v421_v18  ;;  %763 = vmatmul.f32.gmra.mxu2 %v3234_v42  ;;  %v1831_v18 = vld [vmem:[#allocation5 + $0x440] sm:$0xff] }
  0xad   : > { %1855 = vmatpush.msra.mxu0 %v1831_v18 }
  0xae   : > { %941 = vmatmul.f32.gmra.mxu3 %v3114_v16  ;;  %v678_v16 = vrot.slane %v3129_v30, 2 }
  0xaf   : > { %1856 = vmatpush.msra.mxu0 %v1830_v28 }
  0xb0   : > { %v3266_v1 = vsel %vm664_vm1, %v676_v55, %v678_v16  ;;  %v1829_v55 = vld [vmem:[#allocation5 + $0x430] sm:$0xff] }
  0xb1   : > { %1857 = vmatpush.msra.mxu0 %v1829_v55  ;;  %v448_v55 = vrot.slane %v3120_v19, 1 }
  0xb2   : > { %1131 = vmatmul.f32.gmra.mxu0 %v3241_v51 }
  0xb3   : > { %1858 = vmatpush.msra.mxu0 %v1828_v9 }
  0xb4   : > { %514 = vmatmul.f32.gmra.mxu1 %v423_v27  ;;  %766 = vmatmul.f32.gmra.mxu2 %v3244_v52  ;;  %v438_v27 = vrot.slane %v3132_v31, 1 }
  0xb6   : > { %944 = vmatmul.f32.gmra.mxu3 %v3129_v30  ;;  %v680_v30 = vrot.slane %v3145_v46, 2  ;;  %v3311_v29 = vsel %vm412_vm0, %v436_v20, %v438_v27  ;;  %v3329_v48 = vsel %vm412_vm0, %v438_v27, %v440_v39  ;;  %v1459_v20 = vld [vmem:[#allocation5 + $0x320] sm:$0xff] }
  0xb7   : > { %v1272_v27 = vld [vmem:[#allocation5 + $0x2a0] sm:$0xff] }
  0xb8   : > { %v3278_v7 = vsel %vm664_vm1, %v678_v16, %v680_v30  ;;  %v3290_v13 = vsel %vm664_vm1, %v680_v30, %v682_v11 }
  0xba   : > { %1134 = vmatmul.f32.gmra.mxu0 %v3252_v57 }
  0xbc   : > { %517 = vmatmul.f32.gmra.mxu1 %v425_v40  ;;  %769 = vmatmul.f32.gmra.mxu2 %v3255_v26  ;;  %v1274_v40 = vld [vmem:[#allocation5 + $0x2b0] sm:$0xff] }
  0xbe   : > { %947 = vmatmul.f32.gmra.mxu3 %v3145_v46  ;;  %v1276_v46 = vld [vmem:[#allocation5 + $0x2c0] sm:$0xff] }
  0xbf   : > { %1300 = vmatpush.msra.mxu1 %v1276_v46 }
  0xc1   : > { %1301 = vmatpush.msra.mxu1 %v1275_v24  ;;  %v446_v24 = vrot.slane %v3196_v38, 1 }
  0xc2   : > { %1137 = vmatmul.f32.gmra.mxu0 %v3263_v0 }
  0xc3   : > { %1302 = vmatpush.msra.mxu1 %v1274_v40 }
  0xc4   : > { %520 = vmatmul.f32.gmra.mxu1 %v3241_v51  ;;  %772 = vmatmul.f32.gmra.mxu2 %v3266_v1 }
  0xc5   : > { %1303 = vmatpush.msra.mxu1 %v1273_v3 }
  0xc6   : > { %950 = vmatmul.f32.gmra.mxu3 %v3161_v62  ;;  %v1462_v62 = vld [vmem:[#allocation5 + $0x338] sm:$0xff] }
  0xc7   : > { %1479 = vmatpush.msra.mxu2 %v1462_v62  ;;  %1304 = vmatpush.msra.mxu1 %v1272_v27  ;;  %v1457_v27 = vld [vmem:[#allocation5 + $0x310] sm:$0xff] }
  0xc9   : > { %1480 = vmatpush.msra.mxu2 %v1461_v33 }
  0xca   : > { %1140 = vmatmul.f32.gmra.mxu0 %v3275_v5 }
  0xcb   : > { %1481 = vmatpush.msra.mxu2 %v1460_v56  ;;  %v696_v56 = vrot.slane %v3180_v15, 2 }
  0xcc   : > { %523 = vmatmul.f32.gmra.mxu1 %v3252_v57  ;;  %775 = vmatmul.f32.gmra.mxu2 %v3278_v7 }
  0xcd   : > { %1482 = vmatpush.msra.mxu2 %v1459_v20  ;;  %v1826_v20 = vld [vmem:[#allocation5 + $0x418] sm:$0xff] }
  0xce   : > { %953 = vmatmul.f32.gmra.mxu3 %v3177_v14  ;;  %v686_v14 = vrot.slane %v3193_v37, 2 }
  0xd0   : > { %v3316_v36 = vsel %vm664_vm1, %v684_v22, %v686_v14  ;;  %v3336_v54 = vsel %vm664_vm1, %v686_v14, %v688_v44  ;;  %v694_v14 = vrot.slane %v3164_v63, 2 }
  0xd2   : > { %1143 = vmatmul.f32.gmra.mxu0 %v3287_v12  ;;  %v3388_v44 = vsel %vm664_vm1, %v692_v8, %v694_v14 }
  0xd4   : > { %526 = vmatmul.f32.gmra.mxu1 %v3263_v0  ;;  %778 = vmatmul.f32.gmra.mxu2 %v3290_v13 }
  0xd6   : > { %956 = vmatmul.f32.gmra.mxu3 %v3193_v37 }
  0xda   : > { %1146 = vmatmul.f32.gmra.mxu0 %v3299_v23 }
  0xdc   : > { %529 = vmatmul.f32.gmra.mxu1 %v3275_v5  ;;  %781 = vmatmul.f32.gmra.mxu2 %v3302_v25 }
  0xde   : > { %959 = vmatmul.f32.gmra.mxu3 %v3117_v17  ;;  %v442_v17 = vrot.slane %v3164_v63, 1 }
  0xe0   : > { %v3349_v61 = vsel %vm412_vm0, %v440_v39, %v442_v17 }
  0xe1   : > { %v3313_v35 = vpop.f32.mrf.mxu1 }
  0xe2   : > { %1149 = vmatmul.f32.gmra.mxu0 %v3311_v29 }
  0xe4   : > { %532 = vmatmul.f32.gmra.mxu1 %v3287_v12  ;;  %784 = vmatmul.f32.gmra.mxu2 %v3316_v36 }
  0xe6   : > { %962 = vmatmul.f32.gmra.mxu3 %v3132_v31  ;;  %v444_v31 = vrot.slane %v3180_v15, 1 }
  0xe7   : > { %v3324_v32 = vpop.f32.mrf.mxu2  ;;  %v3326_v45 = vpop.f32.mrf.mxu0 }
  0xe8   : > { %v3363_v18 = vsel %vm412_vm0, %v442_v17, %v444_v31  ;;  %v3381_v10 = vsel %vm412_vm0, %v444_v31, %v446_v24  ;;  %v1458_v17 = vld [vmem:[#allocation5 + $0x318] sm:$0xff] }
  0xe9   : > { %v3331_v49 = vpop.f32.mrf.mxu1  ;;  %v3333_v53 = vpop.f32.mrf.mxu3  ;;  %1483 = vmatpush.msra.mxu2 %v1458_v17  ;;  %v1271_v31 = vld [vmem:[#allocation5 + $0x298] sm:$0xff] }
  0xea   : > { %1152 = vmatmul.f32.gmra.mxu0 %v3329_v48  ;;  %1305 = vmatpush.msra.mxu1 %v1271_v31  ;;  %v700_v31 = vrot.slane %v3120_v19, 2 }
  0xeb   : > { %1484 = vmatpush.msra.mxu2 %v1457_v27 }
  0xec   : > { %535 = vmatmul.f32.gmra.mxu1 %v3299_v23  ;;  %787 = vmatmul.f32.gmra.mxu2 %v3336_v54 }
  0xee   : > { %965 = vmatmul.f32.gmra.mxu3 %v3148_v47  ;;  %v1637_v47 = vld [vmem:[#allocation5 + $0x3a0] sm:$0xff] }
  0xef   : > { %v3344_v16 = vpop.f32.mrf.mxu2  ;;  %v3346_v60 = vpop.f32.mrf.mxu0  ;;  %1672 = vmatpush.msra.mxu3 %v1637_v47 }
  0xf1   : > { %v298_v30 = vpop.f32.mrf.mxu1  ;;  %v3351_v4 = vpop.f32.mrf.mxu3  ;;  %1673 = vmatpush.msra.mxu3 %v1636_v59  ;;  %v1635_v59 = vld [vmem:[#allocation5 + $0x390] sm:$0xff] }
  0xf2   : > { %1155 = vmatmul.f32.gmra.mxu0 %v3349_v61  ;;  %v3401_v30 = vsel %vm412_vm0, %v446_v24, %v448_v55 }
  0xf3   : > { %1674 = vmatpush.msra.mxu3 %v1635_v59 }
  0xf4   : > { %538 = vmatmul.f32.gmra.mxu1 %v3311_v29  ;;  %790 = vmatmul.f32.gmra.mxu2 %v3354_v6 }
  0xf6   : > { %968 = vmatmul.f32.gmra.mxu3 %v3164_v63  ;;  %v1827_v63 = vld [vmem:[#allocation5 + $0x420] sm:$0xff] }
  0xf7   : > { %v316_v46 = vpop.f32.mrf.mxu2  ;;  %v280_v11 = vpop.f32.mrf.mxu0  ;;  %1859 = vmatpush.msra.mxu0 %v1827_v63 }
  0xf8   : > { %v3406_v46 = vsel %vm664_vm1, %v694_v14, %v696_v56  ;;  %v698_v11 = vrot.slane %v3196_v38, 2 }
  0xf9   : > { %v3365_v62 = vpop.f32.mrf.mxu1  ;;  %v334_v22 = vpop.f32.mrf.mxu3  ;;  %1860 = vmatpush.msra.mxu0 %v1826_v20 }
  0xfa   : > { %1158 = vmatmul.f32.gmra.mxu0 %v3363_v18  ;;  %v3418_v17 = vsel %vm664_vm1, %v696_v56, %v698_v11  ;;  %v3431_v59 = vsel %vm664_vm1, %v698_v11, %v700_v31 }
  0xfc   : > { %541 = vmatmul.f32.gmra.mxu1 %v3329_v48  ;;  %793 = vmatmul.f32.gmra.mxu2 %v3368_v58 }
  0xfe   : > { %971 = vmatmul.f32.gmra.mxu3 %v3180_v15  ;;  %v450_v15 = vrot.slane %v3136_v34, 1 }
  0xff   : > { %v3376_v28 = vpop.f32.mrf.mxu2  ;;  %v3378_v33 = vpop.f32.mrf.mxu0 }
 0x100   : > { %v3415_v24 = vsel %vm412_vm0, %v448_v55, %v450_v15  ;;  %v1270_v55 = vld [vmem:[#allocation5 + $0x290] sm:$0xff] }
 0x101   : > { %v3383_v39 = vpop.f32.mrf.mxu1  ;;  %v3385_v40 = vpop.f32.mrf.mxu3  ;;  %1306 = vmatpush.msra.mxu1 %v1270_v55  ;;  %v454_v55 = vrot.slane %v3168_v2, 1 }
 0x102   : > { %3890 = vst [vmem:[#allocation19_spill] sm:$0xff] %v3385_v40  ;;  %1161 = vmatmul.f32.gmra.mxu0 %v3381_v10 }
 0x104   : > { %544 = vmatmul.f32.gmra.mxu1 %v3349_v61  ;;  %796 = vmatmul.f32.gmra.mxu2 %v3388_v44 }
 0x106   : > { %974 = vmatmul.f32.gmra.mxu3 %v3196_v38  ;;  %v452_v38 = vrot.slane %v3152_v50, 1 }
 0x107   : > { %v3396_v43 = vpop.f32.mrf.mxu2  ;;  %v3398_v3 = vpop.f32.mrf.mxu0 }
 0x109   : > { %v307_v8 = vpop.f32.mrf.mxu1  ;;  %v3403_v9 = vpop.f32.mrf.mxu3 }
 0x10a   : > { %3891 = vst [vmem:[#allocation20_spill] sm:$0xff] %v3403_v9  ;;  %1164 = vmatmul.f32.gmra.mxu0 %v3401_v30 }
 0x10c   : > { %547 = vmatmul.f32.gmra.mxu1 %v3363_v18  ;;  %799 = vmatmul.f32.gmra.mxu2 %v3406_v46 }
 0x10e   : > { %977 = vmatmul.f32.gmra.mxu3 %v3120_v19  ;;  %v1825_v19 = vld [vmem:[#allocation5 + $0x410] sm:$0xff] }
 0x10f   : > { %v325_v22 = vpop.f32.mrf.mxu2  ;;  %v289_v47 = vpop.f32.mrf.mxu0  ;;  %1861 = vmatpush.msra.mxu0 %v1825_v19 }
 0x110   : > { %v3428_v22 = vsel %vm412_vm0, %v450_v15, %v452_v38  ;;  %v1456_v15 = vld [vmem:[#allocation5 + $0x308] sm:$0xff] }
 0x111   : > { %v343_v14 = vpop.f32.mrf.mxu3  ;;  %v503_v63 = vpop.f32.mrf.mxu1  ;;  %1485 = vmatpush.msra.mxu2 %v1456_v15  ;;  %v1824_v15 = vld [vmem:[#allocation5 + $0x408] sm:$0xff] }
 0x112   : > { %1167 = vmatmul.f32.gmra.mxu0 %v3415_v24  ;;  %v599_v8 = vadd.f32 %v503_v63, %v3326_v45  ;;  %v702_v63 = vrot.slane %v3136_v34, 2 }
 0x113   : > { %1862 = vmatpush.msra.mxu0 %v1824_v15 }
 0x114   : > { %550 = vmatmul.f32.gmra.mxu1 %v3381_v10  ;;  %802 = vmatmul.f32.gmra.mxu2 %v3418_v17  ;;  %v3446_v40 = vsel %vm664_vm1, %v700_v31, %v702_v63 }
 0x116   : > { %980 = vmatmul.f32.gmra.mxu3 %v3136_v34 }
 0x117   : > { %v755_v56 = vpop.f32.mrf.mxu2  ;;  %v1123_v20 = vpop.f32.mrf.mxu0 }
 0x118   : > { %v851_v47 = vadd.f32 %v755_v56, %v599_v8  ;;  %v1634_v8 = vld [vmem:[#allocation5 + $0x388] sm:$0xff] }
 0x119   : > { %v506_v27 = vpop.f32.mrf.mxu1  ;;  %v933_v14 = vpop.f32.mrf.mxu3  ;;  %1675 = vmatpush.msra.mxu3 %v1634_v8 }
 0x11a   : > { %v1029_v9 = vadd.f32 %v933_v14, %v851_v47  ;;  %1170 = vmatmul.f32.gmra.mxu0 %v3428_v22  ;;  %v600_v11 = vadd.f32 %v506_v27, %v3346_v60  ;;  %v3443_v14 = vsel %vm412_vm0, %v452_v38, %v454_v55  ;;  %v456_v60 = vrot.slane %v3184_v21, 1 }
 0x11b   : > { %v704_v38 = vrot.slane %v3152_v50, 2 }
 0x11c   : > { %v3435_v45 = vadd.f32 %v1123_v20, %v1029_v9  ;;  %553 = vmatmul.f32.gmra.mxu1 %v3401_v30  ;;  %805 = vmatmul.f32.gmra.mxu2 %v3431_v59  ;;  %v1269_v9 = vld [vmem:[#allocation5 + $0x288] sm:$0xff]  ;;  %v3457_v31 = vsel %vm412_vm0, %v454_v55, %v456_v60  ;;  %v1268_v55 = vld [vmem:[#allocation5 + $0x280] sm:$0xff] }
 0x11d   : > { %1307 = vmatpush.msra.mxu1 %v1269_v9 }
 0x11e   : > { %3892 = vst [vmem:[#allocation21_spill] sm:$0xff] %v3435_v45  ;;  %983 = vmatmul.f32.gmra.mxu3 %v3152_v50  ;;  %v1633_v50 = vld [vmem:[#allocation5 + $0x380] sm:$0xff] }
 0x11f   : > { %v758_v56 = vpop.f32.mrf.mxu2  ;;  %v1126_v47 = vpop.f32.mrf.mxu0  ;;  %1676 = vmatpush.msra.mxu3 %v1633_v50  ;;  %1308 = vmatpush.msra.mxu1 %v1268_v55 }
 0x120   : > { %v852_v20 = vadd.f32 %v758_v56, %v600_v11 }
 0x121   : > { %v509_v19 = vpop.f32.mrf.mxu1  ;;  %v936_v45 = vpop.f32.mrf.mxu3 }
 0x122   : > { %v1030_v34 = vadd.f32 %v936_v45, %v852_v20  ;;  %1173 = vmatmul.f32.gmra.mxu0 %v3443_v14  ;;  %v1455_v45 = vld [vmem:[#allocation5 + $0x300] sm:$0xff]  ;;  %v458_v20 = vrot.slane %v3200_v41, 1  ;;  %v706_v19 = vrot.slane %v3168_v2, 2 }
 0x123   : > { %1486 = vmatpush.msra.mxu2 %v1455_v45  ;;  %v3473_v45 = vld [vmem:[%s3110_s10 + $0xc0] sm:$0xff] }
 0x124   : > { %v3450_v27 = vadd.f32 %v1126_v47, %v1030_v34  ;;  %556 = vmatmul.f32.gmra.mxu1 %v3415_v24  ;;  %808 = vmatmul.f32.gmra.mxu2 %v3446_v40  ;;  %v3460_v47 = vsel %vm664_vm1, %v702_v63, %v704_v38 }
 0x126   : > { %3893 = vst [vmem:[#allocation22_spill] sm:$0xff] %v3450_v27  ;;  %986 = vmatmul.f32.gmra.mxu3 %v3168_v2  ;;  %v3476_v27 = vsel %vm664_vm1, %v704_v38, %v706_v19 }
 0x127   : > { %v761_v11 = vpop.f32.mrf.mxu2  ;;  %v1129_v8 = vpop.f32.mrf.mxu0  ;;  %3895 = vst [vmem:[#allocation24_spill] sm:$0xff] %v3476_v27 }
 0x128   : > { %v3470_v11 = vsel %vm412_vm0, %v456_v60, %v458_v20  ;;  %v708_v60 = vrot.slane %v3184_v21, 2 }
 0x129   : > { %v512_v56 = vpop.f32.mrf.mxu1  ;;  %v939_v9 = vpop.f32.mrf.mxu3  ;;  %3894 = vst [vmem:[#allocation23_spill] sm:$0xff] %v3470_v11 }
 0x12a   : > { %1176 = vmatmul.f32.gmra.mxu0 %v3457_v31  ;;  %v602_v34 = vadd.f32 %v512_v56, %v3378_v33  ;;  %v1823_v33 = vld [vmem:[#allocation5 + $0x400] sm:$0xff]  ;;  %v460_v56 = vrot.slane %v3473_v45, 1 }
 0x12b   : > { %1863 = vmatpush.msra.mxu0 %v1823_v33  ;;  %v3491_v33 = vld [vmem:[%s3110_s10 + $0xc8] sm:$0xff] }
 0x12c   : > { %559 = vmatmul.f32.gmra.mxu1 %v3428_v22  ;;  %811 = vmatmul.f32.gmra.mxu2 %v3460_v47 }
 0x12e   : > { %989 = vmatmul.f32.gmra.mxu3 %v3184_v21  ;;  %v1097_v21 = vrot.slane %v3491_v33, 1 }
 0x12f   : > { %v764_v63 = vpop.f32.mrf.mxu2  ;;  %v1132_v15 = vpop.f32.mrf.mxu0 }
 0x130   : > { %v854_v8 = vadd.f32 %v764_v63, %v602_v34 }
 0x131   : > { %v515_v9 = vpop.f32.mrf.mxu1  ;;  %v942_v50 = vpop.f32.mrf.mxu3 }
 0x132   : > { %v1032_v2 = vadd.f32 %v942_v50, %v854_v8  ;;  %1179 = vmatmul.f32.gmra.mxu0 %v3470_v11  ;;  %v603_v34 = vadd.f32 %v515_v9, %v3398_v3  ;;  %v3488_v8 = vsel %vm412_vm0, %v458_v20, %v460_v56  ;;  %v710_v20 = vrot.slane %v3200_v41, 2 }
 0x134   : > { %v3480_v55 = vadd.f32 %v1132_v15, %v1032_v2  ;;  %562 = vmatmul.f32.gmra.mxu1 %v3443_v14  ;;  %814 = vmatmul.f32.gmra.mxu2 %v3476_v27 }
 0x136   : > { %3896 = vst [vmem:[#allocation25_spill] sm:$0xff] %v3480_v55  ;;  %992 = vmatmul.f32.gmra.mxu3 %v3200_v41  ;;  %v3494_v55 = vsel %vm664_vm1, %v706_v19, %v708_v60  ;;  %v3505_v19 = vsel %vm412_vm0, %v460_v56, %v1097_v21  ;;  %v3879_v41 = vrot.slane %v3473_v45, 2 }
 0x137   : > { %v767_v38 = vpop.f32.mrf.mxu2  ;;  %v1135_v63 = vpop.f32.mrf.mxu0  ;;  %3898 = vst [vmem:[#allocation27_spill] sm:$0xff] %v3505_v19 }
 0x138   : > { %v855_v50 = vadd.f32 %v767_v38, %v603_v34  ;;  %v3508_v38 = vld [vmem:[%s3110_s10 + $0xd0] sm:$0xff] }
 0x139   : > { %v518_v15 = vpop.f32.mrf.mxu1  ;;  %v945_v2 = vpop.f32.mrf.mxu3 }
 0x13a   : > { %v1033_v27 = vadd.f32 %v945_v2, %v855_v50  ;;  %1182 = vmatmul.f32.gmra.mxu0 %v3488_v8 }
 0x13c   : > { %v3498_v3 = vadd.f32 %v1135_v63, %v1033_v27  ;;  %565 = vmatmul.f32.gmra.mxu1 %v3457_v31  ;;  %817 = vmatmul.f32.gmra.mxu2 %v3494_v55  ;;  %v3511_v27 = vsel %vm664_vm1, %v708_v60, %v710_v20  ;;  %v1099_v63 = vrot.slane %v3508_v38, 1 }
 0x13d   : > { %3899 = vst [vmem:[#allocation28_spill] sm:$0xff] %v3511_v27 }
 0x13e   : > { %3897 = vst [vmem:[#allocation26_spill] sm:$0xff] %v3498_v3  ;;  %995 = vmatmul.f32.gmra.mxu3 %v3473_v45 }
 0x13f   : > { %v770_v9 = vpop.f32.mrf.mxu2  ;;  %v1138_v34 = vpop.f32.mrf.mxu0 }
 0x140   : > { %v3521_v34 = vsel %vm412_vm0, %v1097_v21, %v1099_v63 }
 0x141   : > { %v521_v50 = vpop.f32.mrf.mxu1  ;;  %v948_v15 = vpop.f32.mrf.mxu3 }
 0x142   : > { %1185 = vmatmul.f32.gmra.mxu0 %v3505_v19  ;;  %v605_v56 = vadd.f32 %v521_v50, %v3313_v35  ;;  %v3524_v15 = vld [vmem:[%s3110_s10 + $0xd8] sm:$0xff] }
 0x143   : > { %3900 = vst [vmem:[#allocation29_spill] sm:$0xff] %v3524_v15  ;;  %v1101_v35 = vrot.slane %v3524_v15, 1 }
 0x144   : > { %568 = vmatmul.f32.gmra.mxu1 %v3470_v11  ;;  %820 = vmatmul.f32.gmra.mxu2 %v3511_v27  ;;  %v3529_v27 = vsel %vm664_vm1, %v710_v20, %v3879_v41 }
 0x145   : > { %v3542_v20 = vsel %vm412_vm0, %v1099_v63, %v1101_v35 }
 0x146   : > { %998 = vmatmul.f32.gmra.mxu3 %v3491_v33 }
 0x147   : > { %v773_v2 = vpop.f32.mrf.mxu2  ;;  %v1141_v9 = vpop.f32.mrf.mxu0 }
 0x148   : > { %v857_v60 = vadd.f32 %v773_v2, %v605_v56 }
 0x149   : > { %v524_v3 = vpop.f32.mrf.mxu1  ;;  %v951_v19 = vpop.f32.mrf.mxu3 }
 0x14a   : > { %v1035_v11 = vadd.f32 %v951_v19, %v857_v60  ;;  %1188 = vmatmul.f32.gmra.mxu0 %v3521_v34  ;;  %v606_v21 = vadd.f32 %v524_v3, %v3331_v49  ;;  %v2743_v49 = vld [vmem:[%s3110_s10 + $0x30] sm:$0xff] }
 0x14c   : > { %v3533_v50 = vadd.f32 %v1141_v9, %v1035_v11  ;;  %571 = vmatmul.f32.gmra.mxu1 %v3488_v8  ;;  %823 = vmatmul.f32.gmra.mxu2 %v3529_v27 }
 0x14e   : > { %3901 = vst [vmem:[#allocation30_spill] sm:$0xff] %v3533_v50  ;;  %1001 = vmatmul.f32.gmra.mxu3 %v3508_v38 }
 0x14f   : > { %v776_v56 = vpop.f32.mrf.mxu2  ;;  %v1144_v2 = vpop.f32.mrf.mxu0 }
 0x150   : > { %v858_v19 = vadd.f32 %v776_v56, %v606_v21  ;;  %v2744_v21 = vld [vmem:[%s3110_s10 + $0x38] sm:$0xff] }
 0x151   : > { %v527_v60 = vpop.f32.mrf.mxu1  ;;  %v954_v11 = vpop.f32.mrf.mxu3 }
 0x152   : > { %v1036_v9 = vadd.f32 %v954_v11, %v858_v19  ;;  %1191 = vmatmul.f32.gmra.mxu0 %v3542_v20 }
 0x154   : > { %v3545_v41 = vadd.f32 %v1144_v2, %v1036_v9  ;;  %1309 = vmatmul.f32.vlgmr.msra.gmra.mxu1 %v3234_v42  ;;  %1487 = vmatmul.f32.vlgmr.msra.gmra.mxu2 %v2743_v49 }
 0x156   : > { %1677 = vmatmul.f32.vlgmr.msra.gmra.mxu3 %v3241_v51 }
 0x157   : > { %v779_v3 = vpop.f32.mrf.mxu2  ;;  %v1147_v50 = vpop.f32.mrf.mxu0 }
 0x159   : > { %v530_v15 = vpop.f32.mrf.mxu1  ;;  %v957_v63 = vpop.f32.mrf.mxu3 }
 0x15a   : > { %1864 = vmatmul.f32.vlgmr.msra.gmra.mxu0 %v3266_v1  ;;  %v608_v56 = vadd.f32 %v530_v15, %v3365_v62 }
 0x15c   : > { %1312 = vmatmul.f32.gmra.mxu1 %v3244_v52  ;;  %1490 = vmatmul.f32.gmra.mxu2 %v2744_v21  ;;  %v2745_v52 = vld [vmem:[%s3110_s10 + $0x40] sm:$0xff] }
 0x15e   : > { %1680 = vmatmul.f32.gmra.mxu3 %v3252_v57 }
 0x15f   : > { %v782_v42 = vpop.f32.mrf.mxu2  ;;  %v1150_v2 = vpop.f32.mrf.mxu0 }
 0x160   : > { %v860_v19 = vadd.f32 %v782_v42, %v608_v56 }
 0x161   : > { %v533_v60 = vpop.f32.mrf.mxu1  ;;  %v960_v51 = vpop.f32.mrf.mxu3 }
 0x162   : > { %v1038_v11 = vadd.f32 %v960_v51, %v860_v19  ;;  %1867 = vmatmul.f32.gmra.mxu0 %v3278_v7  ;;  %v609_v9 = vadd.f32 %v533_v60, %v3383_v39 }
 0x164   : > { %v3556_v50 = vadd.f32 %v1150_v2, %v1038_v11  ;;  %1315 = vmatmul.f32.gmra.mxu1 %v3255_v26  ;;  %1493 = vmatmul.f32.gmra.mxu2 %v2745_v52  ;;  %v2746_v26 = vld [vmem:[%s3110_s10 + $0x48] sm:$0xff]  ;;  %v2747_v2 = vld [vmem:[%s3110_s10 + $0x50] sm:$0xff] }
 0x166   : > { %1683 = vmatmul.f32.gmra.mxu3 %v3263_v0 }
 0x167   : > { %v785_v57 = vpop.f32.mrf.mxu2  ;;  %v1153_v62 = vpop.f32.mrf.mxu0 }
 0x168   : > { %v861_v15 = vadd.f32 %v785_v57, %v609_v9 }
 0x169   : > { %v536_v49 = vpop.f32.mrf.mxu1  ;;  %v963_v3 = vpop.f32.mrf.mxu3 }
 0x16a   : > { %v1039_v63 = vadd.f32 %v963_v3, %v861_v15  ;;  %1870 = vmatmul.f32.gmra.mxu0 %v3290_v13 }
 0x16c   : > { %v3563_v21 = vadd.f32 %v1153_v62, %v1039_v63  ;;  %1318 = vmatmul.f32.gmra.mxu1 %v3266_v1  ;;  %1496 = vmatmul.f32.gmra.mxu2 %v2746_v26  ;;  %v2749_v26 = vld [vmem:[%s3110_s10 + $0x68] sm:$0xff] }
 0x16e   : > { %1686 = vmatmul.f32.gmra.mxu3 %v3275_v5 }
 0x16f   : > { %v788_v39 = vpop.f32.mrf.mxu2  ;;  %v1156_v56 = vpop.f32.mrf.mxu0 }
 0x171   : > { %v539_v0 = vpop.f32.mrf.mxu1  ;;  %v966_v42 = vpop.f32.mrf.mxu3 }
 0x172   : > { %1873 = vmatmul.f32.gmra.mxu0 %v3302_v25  ;;  %v611_v19 = vadd.f32 %v539_v0, %v3324_v32 }
 0x174   : > { %1321 = vmatmul.f32.gmra.mxu1 %v3278_v7  ;;  %1499 = vmatmul.f32.gmra.mxu2 %v2747_v2 }
 0x176   : > { %1689 = vmatmul.f32.gmra.mxu3 %v3287_v12 }
 0x177   : > { %v791_v60 = vpop.f32.mrf.mxu2  ;;  %v1159_v1 = vpop.f32.mrf.mxu0 }
 0x178   : > { %v863_v51 = vadd.f32 %v791_v60, %v611_v19 }
 0x179   : > { %v542_v11 = vpop.f32.mrf.mxu1  ;;  %v969_v52 = vpop.f32.mrf.mxu3 }
 0x17a   : > { %v1041_v5 = vadd.f32 %v969_v52, %v863_v51  ;;  %1876 = vmatmul.f32.gmra.mxu0 %v3316_v36  ;;  %v612_v7 = vadd.f32 %v542_v11, %v3344_v16 }
 0x17c   : > { %v3574_v9 = vadd.f32 %v1159_v1, %v1041_v5  ;;  %1324 = vmatmul.f32.gmra.mxu1 %v3290_v13  ;;  %1502 = vmatmul.f32.gmra.mxu2 %v3193_v37  ;;  %v2748_v13 = vld [vmem:[%s3110_s10 + $0x60] sm:$0xff] }
 0x17e   : > { %1692 = vmatmul.f32.gmra.mxu3 %v3299_v23 }
 0x17f   : > { %v794_v12 = vpop.f32.mrf.mxu2  ;;  %v1162_v32 = vpop.f32.mrf.mxu0 }
 0x180   : > { %v864_v57 = vadd.f32 %v794_v12, %v612_v7 }
 0x181   : > { %v545_v62 = vpop.f32.mrf.mxu1  ;;  %v972_v15 = vpop.f32.mrf.mxu3 }
 0x182   : > { %v1042_v49 = vadd.f32 %v972_v15, %v864_v57  ;;  %1879 = vmatmul.f32.gmra.mxu0 %v3336_v54 }
 0x184   : > { %v3581_v3 = vadd.f32 %v1162_v32, %v1042_v49  ;;  %1327 = vmatmul.f32.gmra.mxu1 %v3302_v25  ;;  %1505 = vmatmul.f32.gmra.mxu2 %v2748_v13  ;;  %v2752_v32 = vld [vmem:[%s3110_s10 + $0x80] sm:$0xff] }
 0x186   : > { %1695 = vmatmul.f32.gmra.mxu3 %v3311_v29 }
 0x187   : > { %v797_v37 = vpop.f32.mrf.mxu2  ;;  %v1165_v16 = vpop.f32.mrf.mxu0 }
 0x189   : > { %v548_v23 = vpop.f32.mrf.mxu1  ;;  %v975_v63 = vpop.f32.mrf.mxu3 }
 0x18a   : > { %1882 = vmatmul.f32.gmra.mxu0 %v3354_v6  ;;  %v614_v39 = vadd.f32 %v548_v23, %v3376_v28 }
 0x18c   : > { %1330 = vmatmul.f32.gmra.mxu1 %v3316_v36  ;;  %1508 = vmatmul.f32.gmra.mxu2 %v2749_v26  ;;  %v2750_v36 = vld [vmem:[%s3110_s10 + $0x70] sm:$0xff] }
 0x18e   : > { %1698 = vmatmul.f32.gmra.mxu3 %v3329_v48 }
 0x18f   : > { %v800_v25 = vpop.f32.mrf.mxu2  ;;  %v1168_v56 = vpop.f32.mrf.mxu0 }
 0x190   : > { %v866_v0 = vadd.f32 %v800_v25, %v614_v39 }
 0x191   : > { %v551_v42 = vpop.f32.mrf.mxu1  ;;  %v978_v29 = vpop.f32.mrf.mxu3 }
 0x192   : > { %v1044_v2 = vadd.f32 %v978_v29, %v866_v0  ;;  %1885 = vmatmul.f32.gmra.mxu0 %v3368_v58  ;;  %v615_v60 = vadd.f32 %v551_v42, %v3396_v43  ;;  %v2755_v42 = vld [vmem:[%s3110_s10 + $0x98] sm:$0xff] }
 0x193   : > { %v3902_v29 = vld [vmem:[#allocation19_spill] sm:$0xff] }
 0x194   : > { %v3592_v19 = vadd.f32 %v1168_v56, %v1044_v2  ;;  %1333 = vmatmul.f32.gmra.mxu1 %v3336_v54  ;;  %1511 = vmatmul.f32.gmra.mxu2 %v2750_v36  ;;  %v2751_v54 = vld [vmem:[%s3110_s10 + $0x78] sm:$0xff] }
 0x196   : > { %1701 = vmatmul.f32.gmra.mxu3 %v3349_v61 }
 0x197   : > { %v803_v48 = vpop.f32.mrf.mxu2  ;;  %v1171_v28 = vpop.f32.mrf.mxu0 }
 0x198   : > { %v867_v1 = vadd.f32 %v803_v48, %v615_v60 }
 0x199   : > { %v554_v51 = vpop.f32.mrf.mxu1  ;;  %v981_v11 = vpop.f32.mrf.mxu3 }
 0x19a   : > { %v1045_v52 = vadd.f32 %v981_v11, %v867_v1  ;;  %1888 = vmatmul.f32.gmra.mxu0 %v3388_v44  ;;  %v3903_v51 = vld [vmem:[#allocation20_spill] sm:$0xff] }
 0x19c   : > { %v3599_v5 = vadd.f32 %v1171_v28, %v1045_v52  ;;  %1336 = vmatmul.f32.gmra.mxu1 %v3354_v6  ;;  %1514 = vmatmul.f32.gmra.mxu2 %v2751_v54 }
 0x19e   : > { %1704 = vmatmul.f32.gmra.mxu3 %v3363_v18 }
 0x19f   : > { %v806_v43 = vpop.f32.mrf.mxu2  ;;  %v1174_v7 = vpop.f32.mrf.mxu0 }
 0x1a1   : > { %v557_v61 = vpop.f32.mrf.mxu1  ;;  %v984_v12 = vpop.f32.mrf.mxu3 }
 0x1a2   : > { %1891 = vmatmul.f32.gmra.mxu0 %v3406_v46  ;;  %v617_v57 = vadd.f32 %v557_v61, %v3333_v53  ;;  %v3904_v12 = vld [vmem:[#allocation24_spill] sm:$0xff] }
 0x1a4   : > { %1339 = vmatmul.f32.gmra.mxu1 %v3368_v58  ;;  %1517 = vmatmul.f32.gmra.mxu2 %v2752_v32  ;;  %v2753_v58 = vld [vmem:[%s3110_s10 + $0x88] sm:$0xff] }
 0x1a6   : > { %1707 = vmatmul.f32.gmra.mxu3 %v3381_v10 }
 0x1a7   : > { %v809_v6 = vpop.f32.mrf.mxu2  ;;  %v1177_v62 = vpop.f32.mrf.mxu0 }
 0x1a8   : > { %v869_v15 = vadd.f32 %v809_v6, %v617_v57 }
 0x1a9   : > { %v560_v49 = vpop.f32.mrf.mxu1  ;;  %v987_v18 = vpop.f32.mrf.mxu3 }
 0x1aa   : > { %v1047_v13 = vadd.f32 %v987_v18, %v869_v15  ;;  %1894 = vmatmul.f32.gmra.mxu0 %v3418_v17  ;;  %v618_v16 = vadd.f32 %v560_v49, %v3351_v4  ;;  %v2758_v15 = vld [vmem:[%s3110_s10 + $0xb0] sm:$0xff]  ;;  %v3905_v49 = vld [vmem:[#allocation21_spill] sm:$0xff] }
 0x1ac   : > { %v3610_v37 = vadd.f32 %v1177_v62, %v1047_v13  ;;  %1342 = vmatmul.f32.gmra.mxu1 %v3388_v44  ;;  %1520 = vmatmul.f32.gmra.mxu2 %v2753_v58  ;;  %v2754_v44 = vld [vmem:[%s3110_s10 + $0x90] sm:$0xff] }
 0x1ad   : > { %v3906_v13 = vld [vmem:[#allocation23_spill] sm:$0xff] }
 0x1ae   : > { %1710 = vmatmul.f32.gmra.mxu3 %v3401_v30 }
 0x1af   : > { %v812_v53 = vpop.f32.mrf.mxu2  ;;  %v1180_v10 = vpop.f32.mrf.mxu0 }
 0x1b0   : > { %v870_v23 = vadd.f32 %v812_v53, %v618_v16 }
 0x1b1   : > { %v563_v63 = vpop.f32.mrf.mxu1  ;;  %v990_v26 = vpop.f32.mrf.mxu3 }
 0x1b2   : > { %v1048_v39 = vadd.f32 %v990_v26, %v870_v23  ;;  %1897 = vmatmul.f32.gmra.mxu0 %v3431_v59  ;;  %v3648_v23 = vld [vmem:[%s3869_s2] ss:$0 sm:$0xff]  ;;  %v3907_v63 = vld [vmem:[#allocation28_spill] sm:$0xff] }
 0x1b3   : > { %v2759_v26 = vld [vmem:[%s3110_s10 + $0xb8] sm:$0xff] }
 0x1b4   : > { %v3617_v25 = vadd.f32 %v1180_v10, %v1048_v39  ;;  %1345 = vmatmul.f32.gmra.mxu1 %v3406_v46  ;;  %1523 = vmatmul.f32.gmra.mxu2 %v2754_v44  ;;  %v3908_v39 = vld [vmem:[#allocation22_spill] sm:$0xff] }
 0x1b6   : > { %1713 = vmatmul.f32.gmra.mxu3 %v3415_v24 }
 0x1b7   : > { %v815_v4 = vpop.f32.mrf.mxu2  ;;  %v1183_v56 = vpop.f32.mrf.mxu0 }
 0x1b9   : > { %v566_v30 = vpop.f32.mrf.mxu1  ;;  %v993_v0 = vpop.f32.mrf.mxu3 }
 0x1ba   : > { %1900 = vmatmul.f32.gmra.mxu0 %v3446_v40  ;;  %v620_v2 = vadd.f32 %v566_v30, %v3902_v29 }
 0x1bc   : > { %1348 = vmatmul.f32.gmra.mxu1 %v3418_v17  ;;  %1526 = vmatmul.f32.gmra.mxu2 %v2755_v42  ;;  %v2756_v17 = vld [vmem:[%s3110_s10 + $0xa0] sm:$0xff] }
 0x1be   : > { %1716 = vmatmul.f32.gmra.mxu3 %v3428_v22 }
 0x1bf   : > { %v818_v46 = vpop.f32.mrf.mxu2  ;;  %v1186_v36 = vpop.f32.mrf.mxu0 }
 0x1c0   : > { %v872_v60 = vadd.f32 %v818_v46, %v620_v2 }
 0x1c1   : > { %v569_v48 = vpop.f32.mrf.mxu1  ;;  %v996_v24 = vpop.f32.mrf.mxu3 }
 0x1c2   : > { %v1050_v28 = vadd.f32 %v996_v24, %v872_v60  ;;  %1903 = vmatmul.f32.gmra.mxu0 %v3460_v47  ;;  %v621_v11 = vadd.f32 %v569_v48, %v3903_v51  ;;  %v3909_v48 = vld [vmem:[#allocation27_spill] sm:$0xff] }
 0x1c4   : > { %v3628_v1 = vadd.f32 %v1186_v36, %v1050_v28  ;;  %1351 = vmatmul.f32.gmra.mxu1 %v3431_v59  ;;  %1529 = vmatmul.f32.gmra.mxu2 %v2756_v17  ;;  %v2757_v59 = vld [vmem:[%s3110_s10 + $0xa8] sm:$0xff]  ;;  %v1284_v36 = vrot.slane %v3491_v33, 2  ;;  %v3910_v17 = vrot.slane %v3473_v45, 2 }
 0x1c6   : > { %1719 = vmatmul.f32.gmra.mxu3 %v3443_v14  ;;  %v3670_v51 = vsel %vm664_vm1, %v3910_v17, %v1284_v36 }
 0x1c7   : > { %v821_v22 = vpop.f32.mrf.mxu2  ;;  %v1189_v52 = vpop.f32.mrf.mxu0 }
 0x1c8   : > { %v873_v54 = vadd.f32 %v821_v22, %v621_v11 }
 0x1c9   : > { %v572_v43 = vpop.f32.mrf.mxu1  ;;  %v999_v7 = vpop.f32.mrf.mxu3 }
 0x1ca   : > { %v1051_v61 = vadd.f32 %v999_v7, %v873_v54  ;;  %1906 = vmatmul.f32.gmra.mxu0 %v3904_v12  ;;  %v1286_v43 = vrot.slane %v3508_v38, 2 }
 0x1cc   : > { %v3635_v32 = vadd.f32 %v1189_v52, %v1051_v61  ;;  %1354 = vmatmul.f32.gmra.mxu1 %v3446_v40  ;;  %1532 = vmatmul.f32.gmra.mxu2 %v2757_v59  ;;  %v3680_v59 = vsel %vm664_vm1, %v1284_v36, %v1286_v43 }
 0x1ce   : > { %1722 = vmatmul.f32.gmra.mxu3 %v3457_v31 }
 0x1cf   : > { %v824_v57 = vpop.f32.mrf.mxu2  ;;  %v1192_v6 = vpop.f32.mrf.mxu0 }
 0x1d1   : > { %v1002_v14 = vpop.f32.mrf.mxu3  ;;  %v1310_v62 = vpop.f32.mrf.mxu1 }
 0x1d2   : > { %1909 = vmatmul.f32.gmra.mxu0 %v3494_v55  ;;  %v1406_v18 = vadd.f32 %v1310_v62, %v3905_v49 }
 0x1d4   : > { %1357 = vmatmul.f32.gmra.mxu1 %v3460_v47  ;;  %1535 = vmatmul.f32.gmra.mxu2 %v2758_v15 }
 0x1d6   : > { %1725 = vmatmul.f32.gmra.mxu3 %v3906_v13 }
 0x1d7   : > { %v1488_v40 = vpop.f32.mrf.mxu2  ;;  %v1865_v58 = vpop.f32.mrf.mxu0 }
 0x1d8   : > { %v1584_v16 = vadd.f32 %v1488_v40, %v1406_v18 }
 0x1d9   : > { %v1313_v53 = vpop.f32.mrf.mxu1  ;;  %v1678_v31 = vpop.f32.mrf.mxu3 }
 0x1da   : > { %v1774_v10 = vadd.f32 %v1678_v31, %v1584_v16  ;;  %1912 = vmatmul.f32.gmra.mxu0 %v3907_v63  ;;  %v1407_v44 = vadd.f32 %v1313_v53, %v3908_v39  ;;  %v3690_v16 = vld [vmem:[%s3110_s10 + $0xe0] sm:$0xff] }
 0x1dc   : > { %v1961_v47 = vadd.f32 %v1865_v58, %v1774_v10  ;;  %1360 = vmatmul.f32.gmra.mxu1 %v3904_v12  ;;  %1538 = vmatmul.f32.gmra.mxu2 %v2759_v26 }
 0x1de   : > { %v3655_v4 = vadd.f32 %v3648_v23, %v1961_v47  ;;  %1728 = vmatmul.f32.gmra.mxu3 %v3488_v8 }
 0x1df   : > { %v1491_v56 = vpop.f32.mrf.mxu2  ;;  %v1868_v30 = vpop.f32.mrf.mxu0 }
 0x1e0   : > { %v2511_v0 = vmul.f32 -1.442695, %v3655_v4  ;;  %v1585_v42 = vadd.f32 %v1491_v56, %v1407_v44  ;;  %v1652_v56 = vrot.slane %v3690_v16, 1 }
 0x1e1   : > { %v1316_v29 = vpop.f32.mrf.mxu1  ;;  %v1681_v2 = vpop.f32.mrf.mxu3 }
 0x1e2   : > { %2679 = vpow2.f32 %v2511_v0  ;;  %v1775_v46 = vadd.f32 %v1681_v2, %v1585_v42  ;;  %1915 = vmatmul.f32.gmra.mxu0 %v3529_v27 }
 0x1e4   : > { %v1962_v60 = vadd.f32 %v1868_v30, %v1775_v46  ;;  %1363 = vmatmul.f32.gmra.mxu1 %v3494_v55  ;;  %1541 = vmatmul.f32.gmra.mxu2 %v3473_v45  ;;  %v3911_v45 = vld [vmem:[#allocation25_spill] sm:$0xff] }
 0x1e6   : > { %v3664_v8 = vadd.f32 %v3648_v23, %v1962_v60  ;;  %1731 = vmatmul.f32.gmra.mxu3 %v3909_v48 }
 0x1e7   : > { %v1494_v24 = vpop.f32.mrf.mxu2  ;;  %v1871_v28 = vpop.f32.mrf.mxu0 }
 0x1e8   : > { %v2680_v11 = vpop.eup %2679  ;;  %v2512_v22 = vmul.f32 -1.442695, %v3664_v8  ;;  %v1653_v24 = vsel %vm412_vm0, %v1101_v35, %v1652_v56  ;;  %v1839_v28 = vrot.slane %v3690_v16, 2 }
 0x1e9   : > { %v2093_v52 = vadd.f32 1.0, %v2680_v11  ;;  %v1319_v54 = vpop.f32.mrf.mxu1  ;;  %v1684_v55 = vpop.f32.mrf.mxu3 }
 0x1ea   : > { %2681 = vpow2.f32 %v2512_v22  ;;  %1918 = vmatmul.f32.gmra.mxu0 %v3670_v51  ;;  %v1409_v7 = vadd.f32 %v1319_v54, %v3911_v45  ;;  %v3712_v22 = vld [vmem:[%s3110_s10 + $0xe8] sm:$0xff] }
 0x1eb   : > { %2683 = vrcp.f32 %v2093_v52  ;;  %v2118_v53 = vand.u32 2147483647, %v2093_v52  ;;  %v2120_v31 = vand.u32 2147483648, %v2093_v52  ;;  %vm2114_vm3 = vweird.f32 %v2093_v52 }
 0x1ec   : > { %1366 = vmatmul.f32.gmra.mxu1 %v3907_v63  ;;  %1544 = vmatmul.f32.gmra.mxu2 %v3491_v33  ;;  %v3912_v33 = vld [vmem:[#allocation29_spill] sm:$0xff]  ;;  %v3913_v63 = vld [vmem:[#allocation26_spill] sm:$0xff] }
 0x1ed   : > { %v2121_v29 = vor.u32 1.1754944e-38, %v2120_v31  ;;  %vm2119_vm5 = vcmp.eq.f32.partialorder %v2118_v53, 8.507059e+37 }
 0x1ee   : > { %1734 = vmatmul.f32.gmra.mxu3 %v3521_v34  ;;  %v1288_v34 = vrot.slane %v3912_v33, 2 }
 0x1ef   : > { %v1497_v61 = vpop.f32.mrf.mxu2  ;;  %v1874_v12 = vpop.f32.mrf.mxu0 }
 0x1f0   : > { %v2682_v57 = vpop.eup %2681  ;;  %v1587_v6 = vadd.f32 %v1497_v61, %v1409_v7  ;;  %v1840_v7 = vsel %vm664_vm1, %v1288_v34, %v1839_v28 }
 0x1f1   : > { %v2684_v14 = vpop.eup %2683  ;;  %v3682_v62 = vadd.f32 1.0, %v2682_v57  ;;  %v1322_v15 = vpop.f32.mrf.mxu1 }
 0x1f2   : > { %v1687_v49 = vpop.f32.mrf.mxu3  ;;  %v2110_v18 = vmul.f32 %v2684_v14, %v2093_v52  ;;  %1921 = vmatmul.f32.gmra.mxu0 %v3680_v59  ;;  %vm2115_vm2 = vweird.f32 %v2684_v14  ;;  %v1410_v47 = vadd.f32 %v1322_v15, %v3913_v63 }
 0x1f3   : > { %v1777_v13 = vadd.f32 %v1687_v49, %v1587_v6  ;;  %2685 = vrcp.f32 %v3682_v62  ;;  %vm2116_vm4 = vmor %vm2114_vm3, %vm2115_vm2  ;;  %v2135_v52 = vand.u32 2147483648, %v3682_v62  ;;  %vm2129_vm7 = vweird.f32 %v3682_v62 }
 0x1f4   : > { %v2111_v40 = vsub.f32 1.0, %v2110_v18  ;;  %1369 = vmatmul.f32.gmra.mxu1 %v3529_v27  ;;  %1547 = vmatmul.f32.gmra.mxu2 %v3508_v38  ;;  %v3699_v27 = vsel %vm664_vm1, %v1286_v43, %v1288_v34  ;;  %v2133_v43 = vand.u32 2147483647, %v3682_v62  ;;  %v1841_v34 = vrot.slane %v3712_v22, 2 }
 0x1f5   : > { %v1964_v58 = vadd.f32 %v1874_v12, %v1777_v13  ;;  %v2136_v57 = vor.u32 1.1754944e-38, %v2135_v52 }
 0x1f6   : > { %v2112_v10 = vmul.f32 %v2684_v14, %v2111_v40  ;;  %1737 = vmatmul.f32.gmra.mxu3 %v3542_v20  ;;  %vm2134_vm9 = vcmp.eq.f32.partialorder %v2133_v43, 8.507059e+37 }
 0x1f7   : > { %v3694_v26 = vadd.f32 %v3648_v23, %v1964_v58  ;;  %v1500_v39 = vpop.f32.mrf.mxu2  ;;  %v1877_v44 = vpop.f32.mrf.mxu0 }
 0x1f8   : > { %v2113_v38 = vadd.f32 %v2684_v14, %v2112_v10  ;;  %v1588_v0 = vadd.f32 %v1500_v39, %v1410_v47  ;;  %v1842_v10 = vsel %vm664_vm1, %v1839_v28, %v1841_v34 }
 0x1f9   : > { %v2513_v30 = vmul.f32 -1.442695, %v3694_v26  ;;  %v2686_v42 = vpop.eup %2685  ;;  %v1325_v2 = vpop.f32.mrf.mxu1 }
 0x1fa   : > { %v1690_v46 = vpop.f32.mrf.mxu3  ;;  %v2117_v36 = vsel %vm2116_vm4, %v2684_v14, %v2113_v38  ;;  %v2125_v20 = vmul.f32 %v2686_v42, %v3682_v62  ;;  %1924 = vmatmul.f32.gmra.mxu0 %v3699_v27  ;;  %vm2130_vm6 = vweird.f32 %v2686_v42  ;;  %v3914_v62 = vld [vmem:[#allocation30_spill] sm:$0xff] }
 0x1fb   : > { %2687 = vpow2.f32 %v2513_v30  ;;  %v2122_v60 = vsel %vm2119_vm5, %v2121_v29, %v2117_v36  ;;  %v1778_v48 = vadd.f32 %v1690_v46, %v1588_v0  ;;  %vm2131_vm8 = vmor %vm2129_vm7, %vm2130_vm6 }
 0x1fc   : > { %v2349_v17 = vmul.f32 %v2122_v60, %v3655_v4  ;;  %v2126_v11 = vsub.f32 1.0, %v2125_v20  ;;  %1372 = vmatmul.f32.gmra.mxu1 %v3670_v51  ;;  %1550 = vmatmul.f32.gmra.mxu2 %v3912_v33  ;;  %v1654_v51 = vrot.slane %v3712_v22, 1 }
 0x1fd   : > { %v1965_v54 = vadd.f32 %v1877_v44, %v1778_v48 }
 0x1fe   : > { %2365 = vst [vmem:[%s3108_s21] sm:$0xff] %v2349_v17  ;;  %v2127_v55 = vmul.f32 %v2686_v42, %v2126_v11  ;;  %1740 = vmatmul.f32.gmra.mxu3 %v1653_v24  ;;  %v1655_v33 = vsel %vm412_vm0, %v1652_v56, %v1654_v51 }
 0x1ff   : > { %v3718_v35 = vadd.f32 %v3648_v23, %v1965_v54  ;;  %v1503_v4 = vpop.f32.mrf.mxu2  ;;  %v1880_v45 = vpop.f32.mrf.mxu0 }
 0x200   : > { %v2128_v12 = vadd.f32 %v2686_v42, %v2127_v55 }
 0x201   : > { %v2688_v61 = vpop.eup %2687  ;;  %v2514_v14 = vmul.f32 -1.442695, %v3718_v35  ;;  %v1328_v15 = vpop.f32.mrf.mxu1 }
 0x202   : > { %v2095_v6 = vadd.f32 1.0, %v2688_v61  ;;  %v1693_v49 = vpop.f32.mrf.mxu3  ;;  %v2132_v18 = vsel %vm2131_vm8, %v2686_v42, %v2128_v12  ;;  %1927 = vmatmul.f32.gmra.mxu0 %v1840_v7  ;;  %v1412_v58 = vadd.f32 %v1328_v15, %v3914_v62 }
 0x203   : > { %v2137_v13 = vsel %vm2134_vm9, %v2136_v57, %v2132_v18 }
 0x204   : > { %2689 = vrcp.f32 %v2095_v6  ;;  %v2350_v40 = vmul.f32 %v2137_v13, %v3664_v8  ;;  %1375 = vmatmul.f32.gmra.mxu1 %v3680_v59  ;;  %1553 = vmatmul.f32.gmra.mxu2 %v3690_v16  ;;  %v240_v59 = vld [vmem:[%s3110_s10 + $0xf0] sm:$0xff]  ;;  %v2148_v29 = vand.u32 2147483647, %v2095_v6  ;;  %v2150_v2 = vand.u32 2147483648, %v2095_v6 }
 0x205   : > { %2691 = vpow2.f32 %v2514_v14  ;;  %v1656_v0 = vrot.slane %v240_v59, 1  ;;  %vm2144_vm11 = vweird.f32 %v2095_v6 }
 0x206   : > { %2366 = vst [vmem:[%s3108_s21 + $0x8] sm:$0xff] %v2350_v40  ;;  %1743 = vmatmul.f32.gmra.mxu3 %v1655_v33  ;;  %v2151_v11 = vor.u32 1.1754944e-38, %v2150_v2  ;;  %vm2149_vm13 = vcmp.eq.f32.partialorder %v2148_v29, 8.507059e+37 }
 0x207   : > { %v1506_v53 = vpop.f32.mrf.mxu2  ;;  %v1883_v31 = vpop.f32.mrf.mxu0  ;;  %v1657_v60 = vsel %vm412_vm0, %v1654_v51, %v1656_v0 }
 0x208   : > { %v1590_v63 = vadd.f32 %v1506_v53, %v1412_v58 }
 0x209   : > { %v1331_v39 = vpop.f32.mrf.mxu1 }
 0x20a   : > { %v2690_v47 = vpop.eup %2689  ;;  %v1696_v44 = vpop.f32.mrf.mxu3  ;;  %1930 = vmatmul.f32.gmra.mxu0 %v1842_v10  ;;  %v1413_v36 = vadd.f32 %v1331_v39, %v3545_v41  ;;  %v1843_v41 = vrot.slane %v240_v59, 2 }
 0x20b   : > { %v2692_v56 = vpop.eup %2691  ;;  %v2140_v8 = vmul.f32 %v2690_v47, %v2095_v6  ;;  %v1780_v38 = vadd.f32 %v1696_v44, %v1590_v63  ;;  %vm2145_vm10 = vweird.f32 %v2690_v47 }
 0x20c   : > { %v2096_v30 = vadd.f32 1.0, %v2692_v56  ;;  %1556 = vmatmul.f32.gmra.mxu2 %v3712_v22  ;;  %1378 = vmatmul.f32.gmra.mxu1 %v3699_v27  ;;  %vm2146_vm12 = vmor %vm2144_vm11, %vm2145_vm10  ;;  %v1844_v45 = vsel %vm664_vm1, %v1841_v34, %v1843_v41 }
 0x20d   : > { %v2141_v16 = vsub.f32 1.0, %v2140_v8  ;;  %v1967_v42 = vadd.f32 %v1883_v31, %v1780_v38 }
 0x20e   : > { %2693 = vrcp.f32 %v2096_v30  ;;  %1746 = vmatmul.f32.gmra.mxu3 %v1657_v60  ;;  %v2165_v6 = vand.u32 2147483648, %v2096_v30  ;;  %v2163_v13 = vand.u32 2147483647, %v2096_v30  ;;  %vm2159_vm15 = vweird.f32 %v2096_v30 }
 0x20f   : > { %v2142_v46 = vmul.f32 %v2690_v47, %v2141_v16  ;;  %v3737_v20 = vadd.f32 %v3648_v23, %v1967_v42  ;;  %v1509_v48 = vpop.f32.mrf.mxu2  ;;  %v1886_v24 = vpop.f32.mrf.mxu0 }
 0x210   : > { %v1591_v27 = vadd.f32 %v1509_v48, %v1413_v36  ;;  %v2166_v58 = vor.u32 1.1754944e-38, %v2165_v6  ;;  %vm2164_vm1 = vcmp.eq.f32.partialorder %v2163_v13, 8.507059e+37 }
 0x211   : > { %v2143_v28 = vadd.f32 %v2690_v47, %v2142_v46  ;;  %v2515_v17 = vmul.f32 -1.442695, %v3737_v20  ;;  %v1334_v22 = vpop.f32.mrf.mxu1 }
 0x212   : > { %v1699_v52 = vpop.f32.mrf.mxu3  ;;  %1933 = vmatmul.f32.gmra.mxu0 %v1844_v45 }
 0x213   : > { %v2147_v54 = vsel %vm2146_vm12, %v2690_v47, %v2143_v28  ;;  %2695 = vpow2.f32 %v2515_v17  ;;  %v1781_v55 = vadd.f32 %v1699_v52, %v1591_v27 }
 0x214   : > { %v2694_v43 = vpop.eup %2693  ;;  %v2152_v4 = vsel %vm2149_vm13, %v2151_v11, %v2147_v54 }
 0x215   : > { %v2351_v51 = vmul.f32 %v2152_v4, %v3694_v26  ;;  %v2155_v7 = vmul.f32 %v2694_v43, %v2096_v30  ;;  %v1968_v61 = vadd.f32 %v1886_v24, %v1781_v55  ;;  %vm2160_vm14 = vweird.f32 %v2694_v43 }
 0x216   : > { %vm2161_vm0 = vmor %vm2159_vm15, %vm2160_vm14 }
 0x217   : > { %2367 = vst [vmem:[%s3108_s21 + $0x10] sm:$0xff] %v2351_v51  ;;  %v2156_v12 = vsub.f32 1.0, %v2155_v7  ;;  %v3746_v57 = vadd.f32 %v3648_v23, %v1968_v61  ;;  %v1512_v14 = vpop.f32.mrf.mxu2  ;;  %v1889_v15 = vpop.f32.mrf.mxu0 }
 0x219   : > { %v2696_v49 = vpop.eup %2695  ;;  %v2157_v18 = vmul.f32 %v2694_v43, %v2156_v12  ;;  %v2516_v33 = vmul.f32 -1.442695, %v3746_v57  ;;  %v1337_v40 = vpop.f32.mrf.mxu1 }
 0x21a   : > { %v2097_v34 = vadd.f32 1.0, %v2696_v49  ;;  %v1702_v26 = vpop.f32.mrf.mxu3  ;;  %v1415_v63 = vadd.f32 %v1337_v40, %v3556_v50 }
 0x21b   : > { %v2158_v62 = vadd.f32 %v2694_v43, %v2157_v18  ;;  %2697 = vpow2.f32 %v2516_v33 }
 0x21c   : > { %2699 = vrcp.f32 %v2097_v34  ;;  %v2178_v2 = vand.u32 2147483647, %v2097_v34  ;;  %v2180_v46 = vand.u32 2147483648, %v2097_v34  ;;  %vm2174_vm3 = vweird.f32 %v2097_v34 }
 0x21d   : > { %v2162_v53 = vsel %vm2161_vm0, %v2694_v43, %v2158_v62 }
 0x21e   : > { %v2167_v31 = vsel %vm2164_vm1, %v2166_v58, %v2162_v53  ;;  %v2181_v11 = vor.u32 1.1754944e-38, %v2180_v46  ;;  %vm2179_vm5 = vcmp.eq.f32.partialorder %v2178_v2, 8.507059e+37 }
 0x21f   : > { %v2352_v10 = vmul.f32 %v2167_v31, %v3718_v35  ;;  %v1515_v47 = vpop.f32.mrf.mxu2  ;;  %v1892_v39 = vpop.f32.mrf.mxu0 }
 0x220   : > { %v1593_v56 = vadd.f32 %v1515_v47, %v1415_v63 }
 0x221   : > { %v2698_v44 = vpop.eup %2697  ;;  %2368 = vst [vmem:[%s3108_s21 + $0x18] sm:$0xff] %v2352_v10  ;;  %v1340_v59 = vpop.f32.mrf.mxu1 }
 0x222   : > { %v2700_v8 = vpop.eup %2699  ;;  %v2098_v38 = vadd.f32 1.0, %v2698_v44  ;;  %v1705_v30 = vpop.f32.mrf.mxu3  ;;  %v1416_v50 = vadd.f32 %v1340_v59, %v3563_v21 }
 0x223   : > { %v2170_v0 = vmul.f32 %v2700_v8, %v2097_v34  ;;  %v1783_v16 = vadd.f32 %v1705_v30, %v1593_v56  ;;  %vm2175_vm2 = vweird.f32 %v2700_v8 }
 0x224   : > { %2701 = vrcp.f32 %v2098_v38  ;;  %vm2176_vm4 = vmor %vm2174_vm3, %vm2175_vm2  ;;  %v2195_v45 = vand.u32 2147483648, %v2098_v38  ;;  %v2193_v61 = vand.u32 2147483647, %v2098_v38  ;;  %vm2189_vm7 = vweird.f32 %v2098_v38 }
 0x225   : > { %v2171_v42 = vsub.f32 1.0, %v2170_v0  ;;  %v1970_v29 = vadd.f32 %v1892_v39, %v1783_v16 }
 0x226   : > { %v2196_v18 = vor.u32 1.1754944e-38, %v2195_v45  ;;  %vm2194_vm9 = vcmp.eq.f32.partialorder %v2193_v61, 8.507059e+37 }
 0x227   : > { %v2172_v36 = vmul.f32 %v2700_v8, %v2171_v42  ;;  %v3754_v35 = vadd.f32 %v3648_v23, %v1970_v29  ;;  %v1518_v60 = vpop.f32.mrf.mxu2  ;;  %v1895_v48 = vpop.f32.mrf.mxu0 }
 0x228   : > { %v1594_v17 = vadd.f32 %v1518_v60, %v1416_v50 }
 0x229   : > { %v2173_v24 = vadd.f32 %v2700_v8, %v2172_v36  ;;  %v2517_v28 = vmul.f32 -1.442695, %v3754_v35  ;;  %v1343_v22 = vpop.f32.mrf.mxu1 }
 0x22a   : > { %v2702_v27 = vpop.eup %2701  ;;  %v1708_v52 = vpop.f32.mrf.mxu3 }
 0x22b   : > { %v2177_v41 = vsel %vm2176_vm4, %v2700_v8, %v2173_v24  ;;  %v2185_v54 = vmul.f32 %v2702_v27, %v2098_v38  ;;  %2703 = vpow2.f32 %v2517_v28  ;;  %v1784_v55 = vadd.f32 %v1708_v52, %v1594_v17 }
 0x22c   : > { %v2182_v21 = vsel %vm2179_vm5, %v2181_v11, %v2177_v41  ;;  %vm2190_vm6 = vweird.f32 %v2702_v27 }
 0x22d   : > { %v2353_v43 = vmul.f32 %v2182_v21, %v3737_v20  ;;  %v2186_v4 = vsub.f32 1.0, %v2185_v54  ;;  %v1971_v51 = vadd.f32 %v1895_v48, %v1784_v55  ;;  %vm2191_vm8 = vmor %vm2189_vm7, %vm2190_vm6 }
 0x22f   : > { %2369 = vst [vmem:[%s3108_s21 + $0x20] sm:$0xff] %v2353_v43  ;;  %v2187_v7 = vmul.f32 %v2702_v27, %v2186_v4  ;;  %v3760_v12 = vadd.f32 %v3648_v23, %v1971_v51  ;;  %v1521_v6 = vpop.f32.mrf.mxu2  ;;  %v1898_v14 = vpop.f32.mrf.mxu0 }
 0x231   : > { %v2704_v15 = vpop.eup %2703  ;;  %v2188_v49 = vadd.f32 %v2702_v27, %v2187_v7  ;;  %v2518_v20 = vmul.f32 -1.442695, %v3760_v12  ;;  %v1346_v33 = vpop.f32.mrf.mxu1 }
 0x232   : > { %v2099_v13 = vadd.f32 1.0, %v2704_v15  ;;  %v1711_v34 = vpop.f32.mrf.mxu3  ;;  %v1418_v58 = vadd.f32 %v1346_v33, %v3574_v9 }
 0x233   : > { %v2192_v40 = vsel %vm2191_vm8, %v2702_v27, %v2188_v49 }
 0x234   : > { %v2197_v26 = vsel %vm2194_vm9, %v2196_v18, %v2192_v40  ;;  %2705 = vrcp.f32 %v2099_v13  ;;  %v2208_v0 = vand.u32 2147483647, %v2099_v13  ;;  %v2210_v16 = vand.u32 2147483648, %v2099_v13 }
 0x235   : > { %v2354_v62 = vmul.f32 %v2197_v26, %v3746_v57  ;;  %2707 = vpow2.f32 %v2518_v20  ;;  %vm2204_vm11 = vweird.f32 %v2099_v13 }
 0x236   : > { %v2211_v60 = vor.u32 1.1754944e-38, %v2210_v16  ;;  %vm2209_vm13 = vcmp.eq.f32.partialorder %v2208_v0, 8.507059e+37 }
 0x237   : > { %2370 = vst [vmem:[%s3108_s21 + $0x28] sm:$0xff] %v2354_v62  ;;  %v1524_v53 = vpop.f32.mrf.mxu2  ;;  %v1901_v31 = vpop.f32.mrf.mxu0 }
 0x238   : > { %v1596_v10 = vadd.f32 %v1524_v53, %v1418_v58 }
 0x239   : > { %v1349_v47 = vpop.f32.mrf.mxu1 }
 0x23a   : > { %v2706_v63 = vpop.eup %2705  ;;  %v1714_v39 = vpop.f32.mrf.mxu3  ;;  %v1419_v42 = vadd.f32 %v1349_v47, %v3581_v3 }
 0x23b   : > { %v2708_v44 = vpop.eup %2707  ;;  %v2200_v56 = vmul.f32 %v2706_v63, %v2099_v13  ;;  %v1786_v8 = vadd.f32 %v1714_v39, %v1596_v10  ;;  %vm2205_vm10 = vweird.f32 %v2706_v63 }
 0x23c   : > { %v2100_v38 = vadd.f32 1.0, %v2708_v44  ;;  %vm2206_vm12 = vmor %vm2204_vm11, %vm2205_vm10 }
 0x23d   : > { %v2201_v59 = vsub.f32 1.0, %v2200_v56  ;;  %v1973_v30 = vadd.f32 %v1901_v31, %v1786_v8 }
 0x23e   : > { %2709 = vrcp.f32 %v2100_v38  ;;  %v2225_v21 = vand.u32 2147483648, %v2100_v38  ;;  %v2223_v51 = vand.u32 2147483647, %v2100_v38  ;;  %vm2219_vm15 = vweird.f32 %v2100_v38 }
 0x23f   : > { %v2202_v57 = vmul.f32 %v2706_v63, %v2201_v59  ;;  %v3768_v9 = vadd.f32 %v3648_v23, %v1973_v30  ;;  %v1527_v29 = vpop.f32.mrf.mxu2  ;;  %v1904_v2 = vpop.f32.mrf.mxu0 }
 0x240   : > { %v1597_v50 = vadd.f32 %v1527_v29, %v1419_v42  ;;  %v2226_v15 = vor.u32 1.1754944e-38, %v2225_v21  ;;  %vm2224_vm1 = vcmp.eq.f32.partialorder %v2223_v51, 8.507059e+37 }
 0x241   : > { %v2203_v46 = vadd.f32 %v2706_v63, %v2202_v57  ;;  %v2519_v36 = vmul.f32 -1.442695, %v3768_v9  ;;  %v1352_v48 = vpop.f32.mrf.mxu1 }
 0x242   : > { %v1717_v24 = vpop.f32.mrf.mxu3 }
 0x243   : > { %v2207_v28 = vsel %vm2206_vm12, %v2706_v63, %v2203_v46  ;;  %2711 = vpow2.f32 %v2519_v36  ;;  %v1787_v17 = vadd.f32 %v1717_v24, %v1597_v50 }
 0x244   : > { %v2710_v3 = vpop.eup %2709  ;;  %v2212_v27 = vsel %vm2209_vm13, %v2211_v60, %v2207_v28 }
 0x245   : > { %v2355_v11 = vmul.f32 %v2212_v27, %v3754_v35  ;;  %v2215_v22 = vmul.f32 %v2710_v3, %v2100_v38  ;;  %v1974_v52 = vadd.f32 %v1904_v2, %v1787_v17  ;;  %vm2220_vm14 = vweird.f32 %v2710_v3 }
 0x246   : > { %vm2221_vm0 = vmor %vm2219_vm15, %vm2220_vm14 }
 0x247   : > { %2371 = vst [vmem:[%s3108_s21 + $0x30] sm:$0xff] %v2355_v11  ;;  %v2216_v41 = vsub.f32 1.0, %v2215_v22  ;;  %v3774_v54 = vadd.f32 %v3648_v23, %v1974_v52  ;;  %v1530_v55 = vpop.f32.mrf.mxu2  ;;  %v1907_v43 = vpop.f32.mrf.mxu0 }
 0x249   : > { %v2712_v4 = vpop.eup %2711  ;;  %v2217_v45 = vmul.f32 %v2710_v3, %v2216_v41  ;;  %v2520_v7 = vmul.f32 -1.442695, %v3774_v54  ;;  %v1355_v6 = vpop.f32.mrf.mxu1 }
 0x24a   : > { %v2101_v61 = vadd.f32 1.0, %v2712_v4  ;;  %v1720_v35 = vpop.f32.mrf.mxu3  ;;  %v1421_v20 = vadd.f32 %v1355_v6, %v3592_v19 }
 0x24b   : > { %v2218_v14 = vadd.f32 %v2710_v3, %v2217_v45  ;;  %2713 = vpow2.f32 %v2520_v7 }
 0x24c   : > { %2715 = vrcp.f32 %v2101_v61  ;;  %v2238_v44 = vand.u32 2147483647, %v2101_v61  ;;  %v2240_v56 = vand.u32 2147483648, %v2101_v61  ;;  %vm2234_vm3 = vweird.f32 %v2101_v61 }
 0x24d   : > { %v2222_v49 = vsel %vm2221_vm0, %v2710_v3, %v2218_v14 }
 0x24e   : > { %v2227_v18 = vsel %vm2224_vm1, %v2226_v15, %v2222_v49  ;;  %v2241_v42 = vor.u32 1.1754944e-38, %v2240_v56  ;;  %vm2239_vm5 = vcmp.eq.f32.partialorder %v2238_v44, 8.507059e+37 }
 0x24f   : > { %v2356_v13 = vmul.f32 %v2227_v18, %v3760_v12  ;;  %v1533_v33 = vpop.f32.mrf.mxu2  ;;  %v1910_v34 = vpop.f32.mrf.mxu0 }
 0x250   : > { %v1599_v26 = vadd.f32 %v1533_v33, %v1421_v20 }
 0x251   : > { %v2714_v40 = vpop.eup %2713  ;;  %2372 = vst [vmem:[%s3108_s21 + $0x38] sm:$0xff] %v2356_v13  ;;  %v1358_v53 = vpop.f32.mrf.mxu1 }
 0x252   : > { %v2716_v62 = vpop.eup %2715  ;;  %v2102_v58 = vadd.f32 1.0, %v2714_v40  ;;  %v1723_v31 = vpop.f32.mrf.mxu3  ;;  %v1422_v19 = vadd.f32 %v1358_v53, %v3599_v5 }
 0x253   : > { %v2230_v10 = vmul.f32 %v2716_v62, %v2101_v61  ;;  %v1789_v63 = vadd.f32 %v1723_v31, %v1599_v26  ;;  %vm2235_vm2 = vweird.f32 %v2716_v62 }
 0x254   : > { %2717 = vrcp.f32 %v2102_v58  ;;  %vm2236_vm4 = vmor %vm2234_vm3, %vm2235_vm2  ;;  %v2255_v24 = vand.u32 2147483648, %v2102_v58  ;;  %v2253_v3 = vand.u32 2147483647, %v2102_v58  ;;  %vm2249_vm7 = vweird.f32 %v2102_v58 }
 0x255   : > { %v2231_v47 = vsub.f32 1.0, %v2230_v10  ;;  %v1976_v39 = vadd.f32 %v1910_v34, %v1789_v63 }
 0x256   : > { %v2256_v21 = vor.u32 1.1754944e-38, %v2255_v24  ;;  %vm2254_vm9 = vcmp.eq.f32.partialorder %v2253_v3, 8.507059e+37 }
 0x257   : > { %v2232_v8 = vmul.f32 %v2716_v62, %v2231_v47  ;;  %v3782_v12 = vadd.f32 %v3648_v23, %v1976_v39  ;;  %v1536_v38 = vpop.f32.mrf.mxu2  ;;  %v1913_v59 = vpop.f32.mrf.mxu0 }
 0x258   : > { %v1600_v16 = vadd.f32 %v1536_v38, %v1422_v19 }
 0x259   : > { %v2233_v30 = vadd.f32 %v2716_v62, %v2232_v8  ;;  %v2521_v0 = vmul.f32 -1.442695, %v3782_v12  ;;  %v1361_v29 = vpop.f32.mrf.mxu1 }
 0x25a   : > { %v2718_v57 = vpop.eup %2717  ;;  %v1726_v2 = vpop.f32.mrf.mxu3 }
 0x25b   : > { %v2237_v46 = vsel %vm2236_vm4, %v2716_v62, %v2233_v30  ;;  %v2245_v36 = vmul.f32 %v2718_v57, %v2102_v58  ;;  %2719 = vpow2.f32 %v2521_v0  ;;  %v1790_v50 = vadd.f32 %v1726_v2, %v1600_v16 }
 0x25c   : > { %v2242_v5 = vsel %vm2239_vm5, %v2241_v42, %v2237_v46  ;;  %vm2250_vm6 = vweird.f32 %v2718_v57 }
 0x25d   : > { %v2357_v60 = vmul.f32 %v2242_v5, %v3768_v9  ;;  %v2246_v48 = vsub.f32 1.0, %v2245_v36  ;;  %v1977_v28 = vadd.f32 %v1913_v59, %v1790_v50  ;;  %vm2251_vm8 = vmor %vm2249_vm7, %vm2250_vm6 }
 0x25f   : > { %2373 = vst [vmem:[%s3108_s21 + $0x40] sm:$0xff] %v2357_v60  ;;  %v2247_v17 = vmul.f32 %v2718_v57, %v2246_v48  ;;  %v3788_v27 = vadd.f32 %v3648_v23, %v1977_v28  ;;  %v1539_v11 = vpop.f32.mrf.mxu2  ;;  %v1916_v22 = vpop.f32.mrf.mxu0 }
 0x261   : > { %v2720_v52 = vpop.eup %2719  ;;  %v2248_v41 = vadd.f32 %v2718_v57, %v2247_v17  ;;  %v2522_v9 = vmul.f32 -1.442695, %v3788_v27  ;;  %v1364_v43 = vpop.f32.mrf.mxu1 }
 0x262   : > { %v2103_v55 = vadd.f32 1.0, %v2720_v52  ;;  %v1729_v4 = vpop.f32.mrf.mxu3  ;;  %v1424_v61 = vadd.f32 %v1364_v43, %v3610_v37 }
 0x263   : > { %v2252_v45 = vsel %vm2251_vm8, %v2718_v57, %v2248_v41 }
 0x264   : > { %v2257_v51 = vsel %vm2254_vm9, %v2256_v21, %v2252_v45  ;;  %2721 = vrcp.f32 %v2103_v55  ;;  %v2268_v62 = vand.u32 2147483647, %v2103_v55  ;;  %v2270_v58 = vand.u32 2147483648, %v2103_v55 }
 0x265   : > { %v2358_v7 = vmul.f32 %v2257_v51, %v3774_v54  ;;  %2723 = vpow2.f32 %v2522_v9  ;;  %vm2264_vm11 = vweird.f32 %v2103_v55 }
 0x266   : > { %v2271_v44 = vor.u32 1.1754944e-38, %v2270_v58  ;;  %vm2269_vm13 = vcmp.eq.f32.partialorder %v2268_v62, 8.507059e+37 }
 0x267   : > { %2374 = vst [vmem:[%s3108_s21 + $0x48] sm:$0xff] %v2358_v7  ;;  %v1542_v6 = vpop.f32.mrf.mxu2  ;;  %v1919_v35 = vpop.f32.mrf.mxu0 }
 0x268   : > { %v1602_v14 = vadd.f32 %v1542_v6, %v1424_v61 }
 0x269   : > { %v1367_v49 = vpop.f32.mrf.mxu1 }
 0x26a   : > { %v2722_v15 = vpop.eup %2721  ;;  %v1732_v18 = vpop.f32.mrf.mxu3  ;;  %v1425_v53 = vadd.f32 %v1367_v49, %v3617_v25 }
 0x26b   : > { %v2724_v13 = vpop.eup %2723  ;;  %v2260_v20 = vmul.f32 %v2722_v15, %v2103_v55  ;;  %v1792_v33 = vadd.f32 %v1732_v18, %v1602_v14  ;;  %vm2265_vm10 = vweird.f32 %v2722_v15 }
 0x26c   : > { %v2104_v34 = vadd.f32 1.0, %v2724_v13  ;;  %vm2266_vm12 = vmor %vm2264_vm11, %vm2265_vm10 }
 0x26d   : > { %v2261_v40 = vsub.f32 1.0, %v2260_v20  ;;  %v1979_v26 = vadd.f32 %v1919_v35, %v1792_v33 }
 0x26e   : > { %2725 = vrcp.f32 %v2104_v34  ;;  %v2285_v29 = vand.u32 2147483648, %v2104_v34  ;;  %v2283_v50 = vand.u32 2147483647, %v2104_v34  ;;  %vm2279_vm15 = vweird.f32 %v2104_v34 }
 0x26f   : > { %v2262_v54 = vmul.f32 %v2722_v15, %v2261_v40  ;;  %v3796_v37 = vadd.f32 %v3648_v23, %v1979_v26  ;;  %v1545_v31 = vpop.f32.mrf.mxu2  ;;  %v1922_v10 = vpop.f32.mrf.mxu0 }
 0x270   : > { %v1603_v39 = vadd.f32 %v1545_v31, %v1425_v53  ;;  %v2286_v17 = vor.u32 1.1754944e-38, %v2285_v29  ;;  %vm2284_vm1 = vcmp.eq.f32.partialorder %v2283_v50, 8.507059e+37 }
 0x271   : > { %v2263_v63 = vadd.f32 %v2722_v15, %v2262_v54  ;;  %v2523_v47 = vmul.f32 -1.442695, %v3796_v37  ;;  %v1370_v56 = vpop.f32.mrf.mxu1 }
 0x272   : > { %v1735_v8 = vpop.f32.mrf.mxu3 }
 0x273   : > { %v2267_v19 = vsel %vm2266_vm12, %v2722_v15, %v2263_v63  ;;  %2727 = vpow2.f32 %v2523_v47  ;;  %v1793_v38 = vadd.f32 %v1735_v8, %v1603_v39 }
 0x274   : > { %v2726_v25 = vpop.eup %2725  ;;  %v2272_v59 = vsel %vm2269_vm13, %v2271_v44, %v2267_v19 }
 0x275   : > { %v2359_v30 = vmul.f32 %v2272_v59, %v3782_v12  ;;  %v2275_v0 = vmul.f32 %v2726_v25, %v2104_v34  ;;  %v1980_v16 = vadd.f32 %v1922_v10, %v1793_v38  ;;  %vm2280_vm14 = vweird.f32 %v2726_v25 }
 0x276   : > { %vm2281_vm0 = vmor %vm2279_vm15, %vm2280_vm14 }
 0x277   : > { %2375 = vst [vmem:[%s3108_s21 + $0x50] sm:$0xff] %v2359_v30  ;;  %v2276_v57 = vsub.f32 1.0, %v2275_v0  ;;  %v3802_v42 = vadd.f32 %v3648_v23, %v1980_v16  ;;  %v1548_v2 = vpop.f32.mrf.mxu2  ;;  %v1925_v46 = vpop.f32.mrf.mxu0 }
 0x279   : > { %v2728_v36 = vpop.eup %2727  ;;  %v2277_v5 = vmul.f32 %v2726_v25, %v2276_v57  ;;  %v2524_v60 = vmul.f32 -1.442695, %v3802_v42  ;;  %v1373_v24 = vpop.f32.mrf.mxu1 }
 0x27a   : > { %v2105_v48 = vadd.f32 1.0, %v2728_v36  ;;  %v1738_v12 = vpop.f32.mrf.mxu3  ;;  %v1427_v52 = vadd.f32 %v1373_v24, %v3628_v1 }
 0x27b   : > { %v2278_v28 = vadd.f32 %v2726_v25, %v2277_v5  ;;  %2729 = vpow2.f32 %v2524_v60 }
 0x27c   : > { %2731 = vrcp.f32 %v2105_v48  ;;  %v2298_v14 = vand.u32 2147483647, %v2105_v48  ;;  %v2300_v15 = vand.u32 2147483648, %v2105_v48  ;;  %vm2294_vm3 = vweird.f32 %v2105_v48 }
 0x27d   : > { %v2282_v3 = vsel %vm2281_vm0, %v2726_v25, %v2278_v28 }
 0x27e   : > { %v2287_v11 = vsel %vm2284_vm1, %v2286_v17, %v2282_v3  ;;  %v2301_v26 = vor.u32 1.1754944e-38, %v2300_v15  ;;  %vm2299_vm5 = vcmp.eq.f32.partialorder %v2298_v14, 8.507059e+37 }
 0x27f   : > { %v2360_v22 = vmul.f32 %v2287_v11, %v3788_v27  ;;  %v1551_v41 = vpop.f32.mrf.mxu2  ;;  %v1928_v21 = vpop.f32.mrf.mxu0 }
 0x280   : > { %v1605_v9 = vadd.f32 %v1551_v41, %v1427_v52 }
 0x281   : > { %v2730_v55 = vpop.eup %2729  ;;  %2376 = vst [vmem:[%s3108_s21 + $0x58] sm:$0xff] %v2360_v22  ;;  %v1376_v45 = vpop.f32.mrf.mxu1 }
 0x282   : > { %v2732_v43 = vpop.eup %2731  ;;  %v2106_v4 = vadd.f32 1.0, %v2730_v55  ;;  %v1741_v51 = vpop.f32.mrf.mxu3  ;;  %v1428_v1 = vadd.f32 %v1376_v45, %v3635_v32 }
 0x283   : > { %v2290_v7 = vmul.f32 %v2732_v43, %v2105_v48  ;;  %v1795_v61 = vadd.f32 %v1741_v51, %v1605_v9  ;;  %vm2295_vm2 = vweird.f32 %v2732_v43 }
 0x284   : > { %2733 = vrcp.f32 %v2106_v4  ;;  %vm2296_vm4 = vmor %vm2294_vm3, %vm2295_vm2  ;;  %v2315_v47 = vand.u32 2147483648, %v2106_v4  ;;  %v2313_v56 = vand.u32 2147483647, %v2106_v4  ;;  %vm2309_vm7 = vweird.f32 %v2106_v4 }
 0x285   : > { %v2291_v6 = vsub.f32 1.0, %v2290_v7  ;;  %v1982_v35 = vadd.f32 %v1928_v21, %v1795_v61 }
 0x286   : > { %v2316_v59 = vor.u32 1.1754944e-38, %v2315_v47  ;;  %vm2314_vm9 = vcmp.eq.f32.partialorder %v2313_v56, 8.507059e+37 }
 0x287   : > { %v2292_v49 = vmul.f32 %v2732_v43, %v2291_v6  ;;  %v3810_v27 = vadd.f32 %v3648_v23, %v1982_v35  ;;  %v1554_v18 = vpop.f32.mrf.mxu2  ;;  %v1931_v34 = vpop.f32.mrf.mxu0 }
 0x288   : > { %v1606_v33 = vadd.f32 %v1554_v18, %v1428_v1 }
 0x289   : > { %v2293_v13 = vadd.f32 %v2732_v43, %v2292_v49  ;;  %v2525_v20 = vmul.f32 -1.442695, %v3810_v27  ;;  %v1379_v58 = vpop.f32.mrf.mxu1 }
 0x28a   : > { %v2734_v40 = vpop.eup %2733  ;;  %v1744_v62 = vpop.f32.mrf.mxu3 }
 0x28b   : > { %v2297_v54 = vsel %vm2296_vm4, %v2732_v43, %v2293_v13  ;;  %v2305_v53 = vmul.f32 %v2734_v40, %v2106_v4  ;;  %2735 = vpow2.f32 %v2525_v20  ;;  %v1796_v31 = vadd.f32 %v1744_v62, %v1606_v33 }
 0x28c   : > { %v2302_v32 = vsel %vm2299_vm5, %v2301_v26, %v2297_v54  ;;  %vm2310_vm6 = vweird.f32 %v2734_v40 }
 0x28d   : > { %v2361_v10 = vmul.f32 %v2302_v32, %v3796_v37  ;;  %v2306_v63 = vsub.f32 1.0, %v2305_v53  ;;  %v1983_v39 = vadd.f32 %v1931_v34, %v1796_v31  ;;  %vm2311_vm8 = vmor %vm2309_vm7, %vm2310_vm6 }
 0x28f   : > { %2377 = vst [vmem:[%s3108_s21 + $0x60] sm:$0xff] %v2361_v10  ;;  %v2307_v44 = vmul.f32 %v2734_v40, %v2306_v63  ;;  %v2044_v8 = vadd.f32 %v3648_v23, %v1983_v39  ;;  %v1557_v19 = vpop.f32.mrf.mxu2  ;;  %v1934_v16 = vpop.f32.mrf.mxu0 }
 0x291   : > { %v2736_v38 = vpop.eup %2735  ;;  %v2308_v25 = vadd.f32 %v2734_v40, %v2307_v44  ;;  %v2526_v0 = vmul.f32 -1.442695, %v2044_v8 }
 0x292   : > { %v2107_v30 = vadd.f32 1.0, %v2736_v38  ;;  %v1747_v57 = vpop.f32.mrf.mxu3 }
 0x293   : > { %v2312_v37 = vsel %vm2311_vm8, %v2734_v40, %v2308_v25 }
 0x294   : > { %v2317_v29 = vsel %vm2314_vm9, %v2316_v59, %v2312_v37  ;;  %2737 = vrcp.f32 %v2107_v30  ;;  %v2330_v60 = vand.u32 2147483648, %v2107_v30  ;;  %v2328_v24 = vand.u32 2147483647, %v2107_v30 }
 0x295   : > { %v2362_v2 = vmul.f32 %v2317_v29, %v3802_v42  ;;  %2739 = vpow2.f32 %v2526_v0  ;;  %vm2324_vm11 = vweird.f32 %v2107_v30 }
 0x296   : > { %v2331_v28 = vor.u32 1.1754944e-38, %v2330_v60  ;;  %vm2329_vm13 = vcmp.eq.f32.partialorder %v2328_v24, 8.507059e+37 }
 0x297   : > { %2378 = vst [vmem:[%s3108_s21 + $0x68] sm:$0xff] %v2362_v2 }
 0x29a   : > { %v2738_v23 = vpop.eup %2737 }
 0x29b   : > { %v2740_v46 = vpop.eup %2739  ;;  %v2320_v36 = vmul.f32 %v2738_v23, %v2107_v30  ;;  %vm2325_vm10 = vweird.f32 %v2738_v23 }
 0x29c   : > { %v2108_v5 = vadd.f32 1.0, %v2740_v46  ;;  %vm2326_vm12 = vmor %vm2324_vm11, %vm2325_vm10 }
 0x29d   : > { %v2321_v50 = vsub.f32 1.0, %v2320_v36 }
 0x29e   : > { %2741 = vrcp.f32 %v2108_v5  ;;  %v2345_v41 = vand.u32 2147483648, %v2108_v5  ;;  %v2343_v55 = vand.u32 2147483647, %v2108_v5  ;;  %vm2339_vm15 = vweird.f32 %v2108_v5 }
 0x29f   : > { %v2322_v48 = vmul.f32 %v2738_v23, %v2321_v50 }
 0x2a0   : > { %v2346_v43 = vor.u32 1.1754944e-38, %v2345_v41  ;;  %vm2344_vm1 = vcmp.eq.f32.partialorder %v2343_v55, 8.507059e+37 }
 0x2a1   : > { %v2323_v12 = vadd.f32 %v2738_v23, %v2322_v48 }
 0x2a3   : > { %v2327_v42 = vsel %vm2326_vm12, %v2738_v23, %v2323_v12 }
 0x2a4   : > { %v2742_v17 = vpop.eup %2741  ;;  %v2332_v3 = vsel %vm2329_vm13, %v2331_v28, %v2327_v42 }
 0x2a5   : > { %v2363_v11 = vmul.f32 %v2332_v3, %v3810_v27  ;;  %v2335_v22 = vmul.f32 %v2742_v17, %v2108_v5  ;;  %vm2340_vm14 = vweird.f32 %v2742_v17 }
 0x2a6   : > { %vm2341_vm0 = vmor %vm2339_vm15, %vm2340_vm14 }
 0x2a7   : > { %2379 = vst [vmem:[%s3108_s21 + $0x70] sm:$0xff] %v2363_v11  ;;  %v2336_v52 = vsub.f32 1.0, %v2335_v22 }
 0x2a9   : > { %v2337_v21 = vmul.f32 %v2742_v17, %v2336_v52 }
 0x2ab   : > { %v2338_v9 = vadd.f32 %v2742_v17, %v2337_v21 }
 0x2ad   : > { %v2342_v4 = vsel %vm2341_vm0, %v2742_v17, %v2338_v9 }
 0x2ae   : > { %v2347_v45 = vsel %vm2344_vm1, %v2346_v43, %v2342_v4 }
 0x2af   : > { %v2364_v51 = vmul.f32 %v2347_v45, %v2044_v8 }
 0x2b1   : > { %2380 = vst [vmem:[%s3108_s21 + $0x78] sm:$0xff] %v2364_v51 }
 0x2b2   : > { %2873 = shalt.err (!%p2870_p13)
}
 0x2b3   : > { %s2952_s21 = smov 128   ;;  %s2953_s6 = smov 8  }
 0x2b4   : > { %2593 = dma.vmem_to_hbm [thread:$0]  (%p3026_p3), %s2398_s29, 2048, %s2400_s9, %s2382_s28, %s2952_s21, %s2952_s21, %s2953_s6  }
 0x2b5 PF: > { %p2607_p0 = scmp.ge.s32.totalorder %s2946_s19, 2  ;;  %s2414_s11 = sand.u32 1, %s2918_s12  }
 0x2b6   : > { %s2415_s4 = scalar_lea.sflag [#allocation7], %s2414_s11 }
 0x2b7   : > { %p2600_p1 = pnand %p2607_p0, %p3035_p8 }
 0x2b9   : > { %p2601_p2 = pneg %p2600_p1 }
 0x2bb   : > { %2913 = dma.done.wait (%p2601_p2), %s2415_s4, 2048  }
 0x2bc   : > { %2915 = vsyncadd (%p2601_p2), %s2415_s4, 4294965248  ;;  %s17_s19 = sadd.s32 1, %s2946_s19   ;;  %s3916_s26 = sld [smem:[#allocation18_spill]] }
 0x2bd   : > { %p14_p4 = scmp.ge.s32.totalorder %s17_s19, 6   ;;  %s3917_s12 = smov %s2922_s13 }
 0x2be   : > { %s3918_s13 = smov %s2926_s14  ;;  %s3919_s14 = smov %s3056_s8 }
 0x2bf   : > { %s3920_s15 = smov %s2938_s17  ;;  %s3921_s16 = smov %s2942_s18 }
 0x2c0   : > { %s3922_s17 = smov %s3925_s22  ;;  %16 = sbr.rel (!%p14_p4) target bundleno = 8 (0x8), region = 96 }
 0x2c2   : > { %s3923_s18 = smov %s3916_s26 }
 0x2c5   :  { %2421 = vsyncpa [#allocation6], 1 }
 0x2c6   :  { %2423 = vsyncpa [#allocation6 + $0x1], 1 }
 0x2c7   :  { %2424 = vsyncpa [#allocation7], 1 }
 0x2c8   :  { %2426 = vsyncpa [#allocation7 + $0x1], 1 }
 0x2c9   :  { %2427 = vsyncmov [#allocation3] }
 0x2cc   :  { %s2428_s27 = vpop.sfrf %2427 }
 0x2cd   :  { %p2534_p3 = scmp.ne.s32.totalorder %s2428_s27, 0 }
 0x2cf   :  { %2432 = shalt.err (%p2534_p3)  }
 0x2d0   :  { %2434 = vsyncmov [#allocation3 + $0x1] }
 0x2d3   :  { %s2435_s8 = vpop.sfrf %2434 }
 0x2d4   :  { %p2535_p8 = scmp.ne.s32.totalorder %s2435_s8, 0 }
 0x2d6   :  { %2439 = shalt.err (%p2535_p8)  }

// kernel: tpu_custom_call.1
= control target key start
LH: loop header
LB: loop body
LE: loop exit
PB: predicated region body
PF: predicated region fallthrough
CT: control target
= control target key end

     0   :  { %s3867_s0 = inlined_call_operand.hbm [shape: f32[872,128], index: 0, kind: input, shape index: {}]   ;;  %s3868_s1 = inlined_call_operand.hbm [shape: f32[9,128,128], index: 1, kind: input, shape index: {}]   ;;  %s3869_s2 = inlined_call_operand.vmem [shape: f32[1,128], index: 2, kind: input, shape index: {}]   ;;  %s3870_s3 = inlined_call_operand.hbm [shape: f32[2,16,16,128], index: 3, kind: output, shape index: {}]  }
   0x1   :  { %3882 = sst [smem:[#allocation31_spill]] %s3868_s1 }
   0x2   :  { %8 = vsyncpa [#allocation6], 0 }
   0x3   :  { %9 = vsyncpa [#allocation7], 0 }
   0x4   :  { %11 = vsyncpa [#allocation7 + $0x1], 0  ;;  %s2974_s12 = smov 0   ;;  %s2976_s13 = smov 0  }
   0x5   :  { %s2978_s14 = smov 0   ;;  %s2980_s15 = smov 0  }
   0x6   :  { %s2982_s16 = smov 0   ;;  %s2984_s17 = smov 0  }
   0x7   :  { %s2986_s18 = smov 0   ;;  %s2988_s19 = smov 0  }
   0x8 LB: > { %s2502_s20 = sadd.s32 4294967295, %s2946_s19   ;;  %s2503_s21 = sadd.s32 4294967294, %s2946_s19   ;;  %s2946_s19 = sphi %s2988_s19, %s17_s19   ;;  %s2942_s18 = sphi %s2986_s18, %s3923_s18   ;;  %s2938_s17 = sphi %s2984_s17, %s3922_s17   ;;  %s2934_s16 = sphi %s2982_s16, %s3921_s16   ;;  %s2930_s15 = sphi %s2980_s15, %s3920_s15   ;;  %s2926_s14 = sphi %s2978_s14, %s3919_s14   ;;  %s2922_s13 = sphi %s2976_s13, %s3918_s13   ;;  %s2918_s12 = sphi %s2974_s12, %s3917_s12  }
   0x9   : > { %s26_s22 = sadd.s32 1, %s2938_s17  ;;  %s29_s23 = sadd.s32 1, %s2942_s18 }
   0xa   : > { %p27_p0 = scmp.ge.s32.totalorder %s26_s22, 2  ;;  %s80_s24 = sadd.s32 1, %s2926_s14 }
   0xb   : > { %p90_p1 = scmp.ne.s32.totalorder %s2926_s14, %s2922_s13  ;;  %p91_p2 = scmp.eq.s32.totalorder %s2502_s20, 3 }
   0xc   : > { %s3925_s22 = smov (%p27_p0, %s26_s22), 0  ;;  %s3927_s23 = smov (!%p27_p0, %s29_s23), %s2942_s18 }
   0xd   : > { %s76_s25 = ssub.s32 %s2938_s17, %s3925_s22  ;;  %p3026_p3 = por %p91_p2, %p90_p1 }
   0xe   : > { %p31_p4 = scmp.ge.s32.totalorder %s3927_s23, 2  ;;  %p96_p5 = scmp.ne.s32.totalorder %s2922_s13, %s2918_s12 }
   0xf   : > { %p97_p6 = scmp.eq.s32.totalorder %s2503_s21, 3  ;;  %p2504_p7 = scmp.ge.s32.totalorder %s2946_s19, 1 }
  0x10   : > { %s3929_s23 = smov (%p31_p4, %s3927_s23), 0  ;;  %p104_p9 = scmp.lt.s32.totalorder %s2946_s19, 5 }
  0x11   : > { %3884 = sst [smem:[#allocation18_spill]] %s3929_s23  ;;  %p3035_p8 = por %p97_p6, %p96_p5 }
  0x12   : > { %s75_s28 = ssub.s32 %s2942_s18, %s3929_s23  ;;  %p3042_p10 = pnand %p2504_p7, %p104_p9 }
  0x13   : > { %s77_s29 = sor.u32 %s76_s25, %s75_s28  ;;  %p3046_p12 = scmp.eq.s32.totalorder %s2502_s20, 0 }
  0x14   : > { %p78_p11 = scmp.eq.s32.totalorder %s77_s29, 0  ;;  %p2595_p13 = pneg %p3042_p10 }
  0x15   : > { %s3888_s1 = sld [smem:[#allocation31_spill]]  ;;  %s2948_s9 = smov [#allocation5]  }
  0x16   : > { %s3056_s8 = scalar_select %p78_p11, %s2926_s14, %s80_s24  }
  0x17   : > { %s117_s10 = sshll.u32 %s2948_s9, 4  ;;  %p2596_p0 = pnand %p3046_p12, %p2595_p13  ;;  %s118_s10 = int_to_ptr.vmem [resolvable:$true] %s117_s10 }
  0x18   : > { %s2949_s11 = smov 128   ;;  %s2950_s20 = smov 8  }
  0x19   : > { %136 = sbr.rel (%p3042_p10) target bundleno = 693 (0x2b5), region = 28 }
  0x1b   : > { %s115_s7 = sshll.u32 %s3888_s1, 4  ;;  %s116_s7 = int_to_ptr.hbm [resolvable:$true] %s115_s7 }
  0x1c   : > { %2598 = dma.hbm_to_vmem [thread:$0]  (!%p2596_p0), %s116_s7, 18432, %s118_s10, [#allocation6], %s2949_s11, %s2949_s11, %s2950_s20  }
  0x1e   : > { %2907 = dma.done.wait (%p3046_p12), [#allocation6], 18432  }
  0x1f   : > { %2909 = vsyncadd (%p3046_p12), [#allocation6], 4294948864  ;;  %s3871_s21 = sand.u32 1, %s2922_s13   ;;  %p2605_p1 = scmp.eq.s32.totalorder %s2930_s15, 0 }
  0x20   : > { %s3069_s24 = sshll.u32 %s3871_s21, 7  ;;  %s160_s25 = smul.u32 432, %s2934_s16 }
  0x21   : > { %s2446_s28 = smul.u32 192, %s2930_s15  ;;  %s2951_s6 = smov [#allocation2]  }
  0x22   : > { %s161_s5 = scalar_lea.hbm %s3867_s0, %s160_s25  ;;  %s171_s4 = sshll.u32 %s2951_s6, 4  ;;  %s172_s4 = int_to_ptr.vmem [resolvable:$true] %s171_s4 }
  0x23   : > { %s169_s7 = sshll.u32 %s161_s5, 4  ;;  %s2447_s9 = sadd.s32 %s2446_s28, %s160_s25  ;;  %s170_s7 = int_to_ptr.hbm [resolvable:$true] %s169_s7 }
  0x24   : > { %s2790_s10 = sshra.s32 %s170_s7, 4  ;;  %s2796_s1 = scalar_lea.hbm %s3867_s0, 872  ;;  %s2791_s10 = int_to_ptr.hbm [resolvable:$true] %s2790_s10 }
  0x25   : > { %s2792_s11 = scalar_lea.hbm %s2791_s10, 248  ;;  %p2797_p6 = scmp.lt.s32.totalorder %s2791_s10, %s3867_s0 }
  0x26   : > { %p2793_p2 = scmp.ne.s32.totalorder %s2791_s10, %s2792_s11  ;;  %p2798_p7 = scmp.lt.s32.totalorder %s2796_s1, %s2792_s11 }
  0x28   : > { %p2794_p4 = pnand %p2793_p2, %p2605_p1  ;;  %p2799_p9 = por %p2798_p7, %p2797_p6 }
  0x2a   : > { %p2795_p5 = pneg %p2794_p4 }
  0x2c   : > { %p2800_p10 = pnand %p2799_p9, %p2795_p5 }
  0x2e   : > { %2803 = shalt.err (!%p2800_p10)  }
  0x2f   : > { %2590 = dma.hbm_to_vmem [thread:$0]  (%p2605_p1), %s170_s7, 3968, %s172_s4, [#allocation3] }
  0x30   : > { %s2448_s30 = scalar_lea.hbm %s3867_s0, %s2447_s9  ;;  %s3091_s5 = sand.u32 1, %s2930_s15 }
  0x31   : > { %s2449_s21 = scalar_lea.hbm %s2448_s30, 192  ;;  %s175_s23 = sadd.s32 1, %s2930_s15 }
  0x32   : > { %p3094_p11 = scmp.lt.s32.totalorder %s175_s23, 2  ;;  %s180_s10 = ssub.s32 1, %s3091_s5 }
  0x33   : > { %s195_s11 = sshll.u32 %s2449_s21, 4  ;;  %s185_s20 = smul.u32 248, %s180_s10  ;;  %s196_s11 = int_to_ptr.hbm [resolvable:$true] %s195_s11 }
  0x34   : > { %s204_s4 = smul.u32 248, %s3091_s5  ;;  %s187_s9 = scalar_lea.sflag [#allocation3], %s180_s10 }
  0x35   : > { %s186_s7 = scalar_lea.vmem [#allocation2], %s185_s20  ;;  %s2818_s25 = sshra.s32 %s196_s11, 4  ;;  %s2819_s25 = int_to_ptr.hbm [resolvable:$true] %s2818_s25 }
  0x36   : > { %s197_s29 = sshll.u32 %s186_s7, 4  ;;  %s2820_s28 = scalar_lea.hbm %s2819_s25, 248  ;;  %s198_s29 = int_to_ptr.vmem [resolvable:$true] %s197_s29 }
  0x37   : > { %p2821_p12 = scmp.ne.s32.totalorder %s2819_s25, %s2820_s28  ;;  %p2825_p1 = scmp.lt.s32.totalorder %s2819_s25, %s3867_s0 }
  0x38   : > { %p2826_p2 = scmp.lt.s32.totalorder %s2796_s1, %s2820_s28 }
  0x39   : > { %p2822_p13 = pnand %p2821_p12, %p3094_p11 }
  0x3a   : > { %p2827_p4 = por %p2826_p2, %p2825_p1 }
  0x3b   : > { %p2823_p0 = pneg %p2822_p13 }
  0x3d   : > { %p2828_p5 = pnand %p2827_p4, %p2823_p0 }
  0x3f   : > { %2831 = shalt.err (!%p2828_p5)  }
  0x40   : > { %2592 = dma.hbm_to_vmem [thread:$0]  (%p3094_p11), %s196_s11, 3968, %s198_s29, %s187_s9 }
  0x41   : > { %s3108_s21 = scalar_lea.vmem [#allocation8], %s3069_s24  ;;  %s3110_s10 = scalar_lea.vmem [#allocation2], %s204_s4 }
  0x42   : > { %s206_s20 = scalar_lea.sflag [#allocation3], %s3091_s5 }
  0x43   : > { %2910 = dma.done.wait %s206_s20, 3968 }
  0x44   : > { %2911 = vsyncadd %s206_s20, 4294963328  ;;  %v256_v0 = vld [vmem:[#allocation5 + $0x78] sm:$0xff]  ;;  %v255_v1 = vld [vmem:[#allocation5 + $0x70] sm:$0xff]  ;;  %vm412_vm0 = vcmask 1046528   ;;  %vm664_vm1 = vcmask 1045504   ;;  %s2536_s5 = sshll.u32 %s2930_s15, 4 }
  0x45   : > { %2537 = vmatpush.msra.mxu1 %v256_v0  ;;  %2538 = vmatpush.msra.mxu2 %v256_v0  ;;  %v254_v2 = vld [vmem:[#allocation5 + $0x68] sm:$0xff]  ;;  %v253_v3 = vld [vmem:[#allocation5 + $0x60] sm:$0xff]  ;;  %v252_v4 = vld [vmem:[#allocation5 + $0x58] sm:$0xff]  ;;  %s2530_s6 = sshll.u32 %s2934_s16, 5  ;;  %s2397_s29 = sshll.u32 %s3108_s21, 4  ;;  %s2398_s29 = int_to_ptr.vmem [resolvable:$true] %s2397_s29 }
  0x46   : > { %2539 = vmatpush.msra.mxu3 %v256_v0  ;;  %257 = vmatpush.msra.mxu0 %v256_v0  ;;  %v251_v5 = vld [vmem:[#allocation5 + $0x50] sm:$0xff]  ;;  %v250_v6 = vld [vmem:[#allocation5 + $0x48] sm:$0xff]  ;;  %v249_v7 = vld [vmem:[#allocation5 + $0x40] sm:$0xff]  ;;  %s2394_s11 = sadd.s32 %s2536_s5, %s2530_s6  ;;  %s3915_s25 = sand.u32 1, %s2922_s13  }
  0x47   : > { %2540 = vmatpush.msra.mxu1 %v255_v1  ;;  %2541 = vmatpush.msra.mxu2 %v255_v1  ;;  %v248_v8 = vld [vmem:[#allocation5 + $0x38] sm:$0xff]  ;;  %v247_v9 = vld [vmem:[#allocation5 + $0x30] sm:$0xff]  ;;  %v246_v10 = vld [vmem:[#allocation5 + $0x28] sm:$0xff]  ;;  %s2531_s4 = sshll.u32 %s2394_s11, 3  ;;  %s2382_s28 = scalar_lea.sflag [#allocation7], %s3915_s25 }
  0x48   : > { %2542 = vmatpush.msra.mxu3 %v255_v1  ;;  %258 = vmatpush.msra.mxu0 %v255_v1  ;;  %v245_v11 = vld [vmem:[#allocation5 + $0x20] sm:$0xff]  ;;  %v244_v12 = vld [vmem:[#allocation5 + $0x18] sm:$0xff]  ;;  %v243_v13 = vld [vmem:[#allocation5 + $0x10] sm:$0xff]  ;;  %s2396_s16 = scalar_lea.hbm %s3870_s3, %s2531_s4  ;;  %s2866_s1 = scalar_lea.hbm %s3870_s3, 512 }
  0x49   : > { %2543 = vmatpush.msra.mxu1 %v254_v2  ;;  %2544 = vmatpush.msra.mxu2 %v254_v2  ;;  %v242_v14 = vld [vmem:[#allocation5 + $0x8] sm:$0xff]  ;;  %v241_v15 = vld [vmem:[#allocation5] sm:$0xff]  ;;  %v663_v18 = vld [vmem:[#allocation5 + $0x178] sm:$0xff]  ;;  %s2399_s9 = sshll.u32 %s2396_s16, 4  ;;  %s2400_s9 = int_to_ptr.hbm [resolvable:$true] %s2399_s9 }
  0x4a   : > { %2545 = vmatpush.msra.mxu3 %v254_v2  ;;  %259 = vmatpush.msra.mxu0 %v254_v2  ;;  %v3114_v16 = vld [vmem:[%s3110_s10 + $0x30] sm:$0xff]  ;;  %v3117_v17 = vld [vmem:[%s3110_s10 + $0x60] sm:$0xff]  ;;  %v3129_v30 = vld [vmem:[%s3110_s10 + $0x38] sm:$0xff]  ;;  %s2860_s30 = sshra.s32 %s2400_s9, 4  ;;  %s2861_s30 = int_to_ptr.hbm [resolvable:$true] %s2860_s30 }
  0x4b   : > { %2546 = vmatpush.msra.mxu1 %v253_v3  ;;  %2547 = vmatpush.msra.mxu2 %v253_v3  ;;  %v3120_v19 = vld [vmem:[%s3110_s10 + $0x90] sm:$0xff]  ;;  %v662_v22 = vld [vmem:[#allocation5 + $0x170] sm:$0xff]  ;;  %v661_v25 = vld [vmem:[#allocation5 + $0x168] sm:$0xff]  ;;  %s2862_s23 = scalar_lea.hbm %s2861_s30, 128  ;;  %p2867_p10 = scmp.lt.s32.totalorder %s2861_s30, %s3870_s3 }
  0x4c   : > { %2548 = vmatpush.msra.mxu3 %v253_v3  ;;  %260 = vmatpush.msra.mxu0 %v253_v3  ;;  %v386_v20 = vld [vmem:[#allocation5 + $0xf8] sm:$0xff]  ;;  %v385_v23 = vld [vmem:[#allocation5 + $0xf0] sm:$0xff]  ;;  %v384_v27 = vld [vmem:[#allocation5 + $0xe8] sm:$0xff]  ;;  %p2863_p6 = scmp.ne.s32.totalorder %s2861_s30, %s2862_s23  ;;  %p2868_p11 = scmp.lt.s32.totalorder %s2866_s1, %s2862_s23 }
  0x4d   : > { %2549 = vmatpush.msra.mxu1 %v252_v4  ;;  %2550 = vmatpush.msra.mxu2 %v252_v4  ;;  %v915_v21 = vld [vmem:[#allocation5 + $0x1f8] sm:$0xff]  ;;  %v914_v24 = vld [vmem:[#allocation5 + $0x1f0] sm:$0xff]  ;;  %v913_v28 = vld [vmem:[#allocation5 + $0x1e8] sm:$0xff] }
  0x4e   : > { %2551 = vmatpush.msra.mxu3 %v252_v4  ;;  %261 = vmatpush.msra.mxu0 %v252_v4  ;;  %v3126_v26 = vld [vmem:[%s3110_s10] sm:$0xff]  ;;  %v660_v29 = vld [vmem:[#allocation5 + $0x160] sm:$0xff]  ;;  %v3132_v31 = vld [vmem:[%s3110_s10 + $0x68] sm:$0xff]  ;;  %p2864_p7 = pnand %p2863_p6, %p3026_p3  ;;  %p2869_p12 = por %p2868_p11, %p2867_p10 }
  0x4f   : > { %2552 = vmatpush.msra.mxu1 %v251_v5  ;;  %2553 = vmatpush.msra.mxu2 %v251_v5  ;;  %v1093_v32 = vld [vmem:[#allocation5 + $0x278] sm:$0xff]  ;;  %v912_v33 = vld [vmem:[#allocation5 + $0x1e0] sm:$0xff]  ;;  %v1092_v37 = vld [vmem:[#allocation5 + $0x270] sm:$0xff] }
  0x50   : > { %2554 = vmatpush.msra.mxu3 %v251_v5  ;;  %262 = vmatpush.msra.mxu0 %v251_v5  ;;  %v3136_v34 = vld [vmem:[%s3110_s10 + $0x98] sm:$0xff]  ;;  %v659_v35 = vld [vmem:[#allocation5 + $0x158] sm:$0xff]  ;;  %v658_v39 = vld [vmem:[#allocation5 + $0x150] sm:$0xff]  ;;  %p2865_p9 = pneg %p2864_p7 }
  0x51   : > { %2555 = vmatpush.msra.mxu1 %v250_v6  ;;  %2556 = vmatpush.msra.mxu2 %v250_v6  ;;  %v383_v36 = vld [vmem:[#allocation5 + $0xe0] sm:$0xff]  ;;  %v911_v38 = vld [vmem:[#allocation5 + $0x1d8] sm:$0xff]  ;;  %v1091_v41 = vld [vmem:[#allocation5 + $0x268] sm:$0xff] }
  0x52   : > { %2557 = vmatpush.msra.mxu3 %v250_v6  ;;  %263 = vmatpush.msra.mxu0 %v250_v6  ;;  %v382_v40 = vld [vmem:[#allocation5 + $0xd8] sm:$0xff]  ;;  %v910_v42 = vld [vmem:[#allocation5 + $0x1d0] sm:$0xff]  ;;  %v657_v44 = vld [vmem:[#allocation5 + $0x148] sm:$0xff]  ;;  %p2870_p13 = pnand %p2869_p12, %p2865_p9 }
  0x53   : > { %2558 = vmatpush.msra.mxu1 %v249_v7  ;;  %2559 = vmatpush.msra.mxu2 %v249_v7  ;;  %v3142_v43 = vld [vmem:[%s3110_s10 + $0x8] sm:$0xff]  ;;  %v3145_v46 = vld [vmem:[%s3110_s10 + $0x40] sm:$0xff]  ;;  %v3148_v47 = vld [vmem:[%s3110_s10 + $0x70] sm:$0xff] }
  0x54   : > { %2560 = vmatpush.msra.mxu3 %v249_v7  ;;  %264 = vmatpush.msra.mxu0 %v249_v7  ;;  %v381_v45 = vld [vmem:[#allocation5 + $0xd0] sm:$0xff]  ;;  %v1090_v48 = vld [vmem:[#allocation5 + $0x260] sm:$0xff]  ;;  %v909_v49 = vld [vmem:[#allocation5 + $0x1c8] sm:$0xff] }
  0x55   : > { %2561 = vmatpush.msra.mxu1 %v248_v8  ;;  %2562 = vmatpush.msra.mxu2 %v248_v8  ;;  %v3152_v50 = vld [vmem:[%s3110_s10 + $0xa0] sm:$0xff]  ;;  %v656_v51 = vld [vmem:[#allocation5 + $0x140] sm:$0xff]  ;;  %v1089_v53 = vld [vmem:[#allocation5 + $0x258] sm:$0xff] }
  0x56   : > { %2563 = vmatpush.msra.mxu3 %v248_v8  ;;  %265 = vmatpush.msra.mxu0 %v248_v8  ;;  %v380_v52 = vld [vmem:[#allocation5 + $0xc8] sm:$0xff]  ;;  %v908_v54 = vld [vmem:[#allocation5 + $0x1c0] sm:$0xff]  ;;  %v655_v55 = vld [vmem:[#allocation5 + $0x138] sm:$0xff] }
  0x57   : > { %2564 = vmatpush.msra.mxu1 %v247_v9  ;;  %2565 = vmatpush.msra.mxu2 %v247_v9  ;;  %v379_v56 = vld [vmem:[#allocation5 + $0xc0] sm:$0xff]  ;;  %v1088_v57 = vld [vmem:[#allocation5 + $0x250] sm:$0xff]  ;;  %v907_v59 = vld [vmem:[#allocation5 + $0x1b8] sm:$0xff] }
  0x58   : > { %2566 = vmatpush.msra.mxu3 %v247_v9  ;;  %266 = vmatpush.msra.mxu0 %v247_v9  ;;  %v3158_v58 = vld [vmem:[%s3110_s10 + $0x10] sm:$0xff]  ;;  %v654_v60 = vld [vmem:[#allocation5 + $0x130] sm:$0xff]  ;;  %v3164_v63 = vld [vmem:[%s3110_s10 + $0x78] sm:$0xff] }
  0x59   : > { %2567 = vmatpush.msra.mxu1 %v246_v10  ;;  %2568 = vmatpush.msra.mxu2 %v246_v10  ;;  %v378_v61 = vld [vmem:[#allocation5 + $0xb8] sm:$0xff]  ;;  %v1087_v0 = vld [vmem:[#allocation5 + $0x248] sm:$0xff]  ;;  %v906_v1 = vld [vmem:[#allocation5 + $0x1b0] sm:$0xff] }
  0x5a   : > { %2569 = vmatpush.msra.mxu3 %v246_v10  ;;  %267 = vmatpush.msra.mxu0 %v246_v10  ;;  %v3161_v62 = vld [vmem:[%s3110_s10 + $0x48] sm:$0xff]  ;;  %v653_v3 = vld [vmem:[#allocation5 + $0x128] sm:$0xff]  ;;  %v1086_v5 = vld [vmem:[#allocation5 + $0x240] sm:$0xff] }
  0x5b   : > { %2570 = vmatpush.msra.mxu1 %v245_v11  ;;  %2571 = vmatpush.msra.mxu2 %v245_v11  ;;  %v3168_v2 = vld [vmem:[%s3110_s10 + $0xa8] sm:$0xff]  ;;  %v905_v6 = vld [vmem:[#allocation5 + $0x1a8] sm:$0xff]  ;;  %v652_v7 = vld [vmem:[#allocation5 + $0x120] sm:$0xff] }
  0x5c   : > { %2572 = vmatpush.msra.mxu3 %v245_v11  ;;  %268 = vmatpush.msra.mxu0 %v245_v11  ;;  %v377_v4 = vld [vmem:[#allocation5 + $0xb0] sm:$0xff]  ;;  %v376_v8 = vld [vmem:[#allocation5 + $0xa8] sm:$0xff]  ;;  %v1085_v9 = vld [vmem:[#allocation5 + $0x238] sm:$0xff] }
  0x5d   : > { %2573 = vmatpush.msra.mxu1 %v244_v12  ;;  %2574 = vmatpush.msra.mxu2 %v244_v12  ;;  %v3174_v10 = vld [vmem:[%s3110_s10 + $0x18] sm:$0xff] }
  0x5e   : > { %2575 = vmatpush.msra.mxu3 %v244_v12  ;;  %269 = vmatpush.msra.mxu0 %v244_v12  ;;  %v904_v11 = vld [vmem:[#allocation5 + $0x1a0] sm:$0xff]  ;;  %v651_v12 = vld [vmem:[#allocation5 + $0x118] sm:$0xff] }
  0x5f   : > { %2576 = vmatpush.msra.mxu1 %v243_v13  ;;  %2577 = vmatpush.msra.mxu2 %v243_v13 }
  0x60   : > { %2578 = vmatpush.msra.mxu3 %v243_v13  ;;  %270 = vmatpush.msra.mxu0 %v243_v13  ;;  %v375_v13 = vld [vmem:[#allocation5 + $0xa0] sm:$0xff] }
  0x61   : > { %2579 = vmatpush.msra.mxu1 %v242_v14  ;;  %2580 = vmatpush.msra.mxu2 %v242_v14 }
  0x62   : > { %2581 = vmatpush.msra.mxu3 %v242_v14  ;;  %271 = vmatpush.msra.mxu0 %v242_v14  ;;  %v3177_v14 = vld [vmem:[%s3110_s10 + $0x50] sm:$0xff] }
  0x63   : > { %2582 = vmatpush.msra.mxu1 %v241_v15  ;;  %2583 = vmatpush.msra.mxu2 %v241_v15 }
  0x64   : > { %291 = vmatmul.f32.vlgmr.msra.gmra.mxu1 %v3114_v16  ;;  %309 = vmatmul.f32.vlgmr.msra.gmra.mxu2 %v3117_v17 }
  0x65   : > { %738 = vmatpush.msrb.mxu2 %v663_v18  ;;  %2584 = vmatpush.msra.mxu3 %v241_v15  ;;  %v1084_v18 = vld [vmem:[#allocation5 + $0x230] sm:$0xff] }
  0x66   : > { %327 = vmatmul.f32.vlgmr.msra.gmra.mxu3 %v3120_v19  ;;  %486 = vmatpush.msrb.mxu1 %v386_v20  ;;  %v903_v20 = vld [vmem:[#allocation5 + $0x198] sm:$0xff] }
  0x67   : > { %916 = vmatpush.msrb.mxu3 %v915_v21  ;;  %739 = vmatpush.msrb.mxu2 %v662_v22  ;;  %v3184_v21 = vld [vmem:[%s3110_s10 + $0xb0] sm:$0xff]  ;;  %v650_v22 = vld [vmem:[#allocation5 + $0x110] sm:$0xff] }
  0x68   : > { %487 = vmatpush.msrb.mxu1 %v385_v23  ;;  %272 = vmatpush.msra.mxu0 %v241_v15  ;;  %v3180_v15 = vld [vmem:[%s3110_s10 + $0x80] sm:$0xff]  ;;  %v374_v23 = vld [vmem:[#allocation5 + $0x98] sm:$0xff] }
  0x69   : > { %917 = vmatpush.msrb.mxu3 %v914_v24  ;;  %740 = vmatpush.msrb.mxu2 %v661_v25  ;;  %v1083_v24 = vld [vmem:[#allocation5 + $0x228] sm:$0xff]  ;;  %v902_v25 = vld [vmem:[#allocation5 + $0x190] sm:$0xff] }
  0x6a   : > { %273 = vmatmul.f32.vlgmr.msra.gmra.mxu0 %v3126_v26  ;;  %488 = vmatpush.msrb.mxu1 %v384_v27  ;;  %v649_v27 = vld [vmem:[#allocation5 + $0x108] sm:$0xff] }
  0x6b   : > { %918 = vmatpush.msrb.mxu3 %v913_v28  ;;  %741 = vmatpush.msrb.mxu2 %v660_v29  ;;  %v373_v28 = vld [vmem:[#allocation5 + $0x90] sm:$0xff]  ;;  %v1082_v29 = vld [vmem:[#allocation5 + $0x220] sm:$0xff] }
  0x6c   : > { %294 = vmatmul.f32.gmra.mxu1 %v3129_v30  ;;  %312 = vmatmul.f32.gmra.mxu2 %v3132_v31 }
  0x6d   : > { %1106 = vmatpush.msrb.mxu0 %v1093_v32  ;;  %919 = vmatpush.msrb.mxu3 %v912_v33  ;;  %v3190_v32 = vld [vmem:[%s3110_s10 + $0x20] sm:$0xff] }
  0x6e   : > { %330 = vmatmul.f32.gmra.mxu3 %v3136_v34  ;;  %742 = vmatpush.msrb.mxu2 %v659_v35  ;;  %v901_v33 = vld [vmem:[#allocation5 + $0x188] sm:$0xff] }
  0x6f   : > { %489 = vmatpush.msrb.mxu1 %v383_v36  ;;  %1107 = vmatpush.msrb.mxu0 %v1092_v37  ;;  %v372_v35 = vld [vmem:[#allocation5 + $0x88] sm:$0xff]  ;;  %v648_v36 = vld [vmem:[#allocation5 + $0x100] sm:$0xff] }
  0x70   : > { %920 = vmatpush.msrb.mxu3 %v911_v38  ;;  %743 = vmatpush.msrb.mxu2 %v658_v39  ;;  %v3193_v37 = vld [vmem:[%s3110_s10 + $0x58] sm:$0xff]  ;;  %v3196_v38 = vld [vmem:[%s3110_s10 + $0x88] sm:$0xff] }
  0x71   : > { %490 = vmatpush.msrb.mxu1 %v382_v40  ;;  %1108 = vmatpush.msrb.mxu0 %v1091_v41  ;;  %v1081_v39 = vld [vmem:[#allocation5 + $0x218] sm:$0xff]  ;;  %v371_v40 = vld [vmem:[#allocation5 + $0x80] sm:$0xff] }
  0x72   : > { %921 = vmatpush.msrb.mxu3 %v910_v42  ;;  %276 = vmatmul.f32.gmra.mxu0 %v3142_v43  ;;  %v3200_v41 = vld [vmem:[%s3110_s10 + $0xb8] sm:$0xff]  ;;  %v1470_v42 = vld [vmem:[#allocation5 + $0x378] sm:$0xff] }
  0x73   : > { %744 = vmatpush.msrb.mxu2 %v657_v44  ;;  %491 = vmatpush.msrb.mxu1 %v381_v45  ;;  %v900_v44 = vld [vmem:[#allocation5 + $0x180] sm:$0xff]  ;;  %v1080_v45 = vld [vmem:[#allocation5 + $0x210] sm:$0xff] }
  0x74   : > { %297 = vmatmul.f32.gmra.mxu1 %v3145_v46  ;;  %315 = vmatmul.f32.gmra.mxu2 %v3148_v47 }
  0x75   : > { %1109 = vmatpush.msrb.mxu0 %v1090_v48  ;;  %922 = vmatpush.msrb.mxu3 %v909_v49  ;;  %v413_v48 = vrot.slane %v3126_v26, 1  ;;  %v665_v49 = vrot.slane %v3126_v26, 2  ;;  %v1647_v26 = vld [vmem:[#allocation5 + $0x3f0] sm:$0xff] }
  0x76   : > { %333 = vmatmul.f32.gmra.mxu3 %v3152_v50  ;;  %745 = vmatpush.msrb.mxu2 %v656_v51  ;;  %v414_v51 = vrot.slane %v3142_v43, 1 }
  0x77   : > { %492 = vmatpush.msrb.mxu1 %v380_v52  ;;  %1110 = vmatpush.msrb.mxu0 %v1089_v53  ;;  %v666_v52 = vrot.slane %v3142_v43, 2  ;;  %v1648_v53 = vld [vmem:[#allocation5 + $0x3f8] sm:$0xff]  ;;  %v1282_v43 = vld [vmem:[#allocation5 + $0x2f0] sm:$0xff] }
  0x78   : > { %923 = vmatpush.msrb.mxu3 %v908_v54  ;;  %746 = vmatpush.msrb.mxu2 %v655_v55  ;;  %v1283_v54 = vld [vmem:[#allocation5 + $0x2f8] sm:$0xff]  ;;  %v1079_v55 = vld [vmem:[#allocation5 + $0x208] sm:$0xff] }
  0x79   : > { %493 = vmatpush.msrb.mxu1 %v379_v56  ;;  %1111 = vmatpush.msrb.mxu0 %v1088_v57  ;;  %v1469_v56 = vld [vmem:[#allocation5 + $0x370] sm:$0xff] }
  0x7a   : > { %279 = vmatmul.f32.gmra.mxu0 %v3158_v58  ;;  %924 = vmatpush.msrb.mxu3 %v907_v59  ;;  %v3210_v57 = vld [vmem:[%s3110_s10 + $0x28] sm:$0xff]  ;;  %v1078_v59 = vld [vmem:[#allocation5 + $0x200] sm:$0xff] }
  0x7b   : > { %747 = vmatpush.msrb.mxu2 %v654_v60  ;;  %494 = vmatpush.msrb.mxu1 %v378_v61  ;;  %v415_v60 = vsel %vm412_vm0, %v413_v48, %v414_v51  ;;  %v667_v61 = vsel %vm664_vm1, %v665_v49, %v666_v52  ;;  %v1465_v48 = vld [vmem:[#allocation5 + $0x350] sm:$0xff] }
  0x7c   : > { %300 = vmatmul.f32.gmra.mxu1 %v3161_v62  ;;  %318 = vmatmul.f32.gmra.mxu2 %v3164_v63  ;;  %v1643_v49 = vld [vmem:[#allocation5 + $0x3d0] sm:$0xff] }
  0x7d   : > { %1112 = vmatpush.msrb.mxu0 %v1087_v0  ;;  %925 = vmatpush.msrb.mxu3 %v906_v1  ;;  %v1838_v0 = vld [vmem:[#allocation5 + $0x478] sm:$0xff]  ;;  %v1468_v1 = vld [vmem:[#allocation5 + $0x368] sm:$0xff] }
  0x7e   : > { %336 = vmatmul.f32.gmra.mxu3 %v3168_v2  ;;  %748 = vmatpush.msrb.mxu2 %v653_v3  ;;  %v418_v3 = vrot.slane %v3174_v10, 1 }
  0x7f   : > { %495 = vmatpush.msrb.mxu1 %v377_v4  ;;  %1113 = vmatpush.msrb.mxu0 %v1086_v5  ;;  %v420_v4 = vrot.slane %v3190_v32, 1  ;;  %v1281_v5 = vld [vmem:[#allocation5 + $0x2e8] sm:$0xff] }
  0x80   : > { %926 = vmatpush.msrb.mxu3 %v905_v6  ;;  %749 = vmatpush.msrb.mxu2 %v652_v7  ;;  %v1837_v6 = vld [vmem:[#allocation5 + $0x470] sm:$0xff]  ;;  %v1646_v7 = vld [vmem:[#allocation5 + $0x3e8] sm:$0xff] }
  0x81   : > { %496 = vmatpush.msrb.mxu1 %v376_v8  ;;  %1114 = vmatpush.msrb.mxu0 %v1085_v9  ;;  %v416_v8 = vrot.slane %v3158_v58, 1  ;;  %v668_v9 = vrot.slane %v3158_v58, 2  ;;  %v422_v58 = vrot.slane %v3210_v57, 1 }
  0x82   : > { %282 = vmatmul.f32.gmra.mxu0 %v3174_v10  ;;  %927 = vmatpush.msrb.mxu3 %v904_v11  ;;  %v1836_v11 = vld [vmem:[#allocation5 + $0x468] sm:$0xff] }
  0x83   : > { %750 = vmatpush.msrb.mxu2 %v651_v12  ;;  %497 = vmatpush.msrb.mxu1 %v375_v13  ;;  %v1467_v12 = vld [vmem:[#allocation5 + $0x360] sm:$0xff] }
  0x84   : > { %303 = vmatmul.f32.gmra.mxu1 %v3177_v14  ;;  %321 = vmatmul.f32.gmra.mxu2 %v3180_v15  ;;  %v1645_v13 = vld [vmem:[#allocation5 + $0x3e0] sm:$0xff] }
  0x85   : > { %1115 = vmatpush.msrb.mxu0 %v1084_v18  ;;  %928 = vmatpush.msrb.mxu3 %v903_v20  ;;  %v421_v18 = vsel %vm412_vm0, %v418_v3, %v420_v4  ;;  %v417_v20 = vsel %vm412_vm0, %v414_v51, %v416_v8 }
  0x86   : > { %339 = vmatmul.f32.gmra.mxu3 %v3184_v21  ;;  %751 = vmatpush.msrb.mxu2 %v650_v22  ;;  %v669_v22 = vsel %vm664_vm1, %v666_v52, %v668_v9 }
  0x87   : > { %498 = vmatpush.msrb.mxu1 %v374_v23  ;;  %1116 = vmatpush.msrb.mxu0 %v1083_v24  ;;  %v1280_v23 = vld [vmem:[#allocation5 + $0x2e0] sm:$0xff]  ;;  %v670_v24 = vrot.slane %v3174_v10, 2 }
  0x88   : > { %929 = vmatpush.msrb.mxu3 %v902_v25  ;;  %752 = vmatpush.msrb.mxu2 %v649_v27  ;;  %v1835_v25 = vld [vmem:[#allocation5 + $0x460] sm:$0xff]  ;;  %v423_v27 = vsel %vm412_vm0, %v420_v4, %v422_v58  ;;  %v1832_v4 = vld [vmem:[#allocation5 + $0x448] sm:$0xff] }
  0x89   : > { %499 = vmatpush.msrb.mxu1 %v373_v28  ;;  %1117 = vmatpush.msrb.mxu0 %v1082_v29  ;;  %v419_v28 = vsel %vm412_vm0, %v416_v8, %v418_v3  ;;  %v671_v29 = vsel %vm664_vm1, %v668_v9, %v670_v24  ;;  %v432_v3 = vrot.slane %v3177_v14, 1  ;;  %v1641_v8 = vld [vmem:[#allocation5 + $0x3c0] sm:$0xff]  ;;  %v434_v9 = vrot.slane %v3193_v37, 1 }
  0x8a   : > { %285 = vmatmul.f32.gmra.mxu0 %v3190_v32  ;;  %930 = vmatpush.msrb.mxu3 %v901_v33  ;;  %v424_v33 = vrot.slane %v3114_v16, 1 }
  0x8b   : > { %500 = vmatpush.msrb.mxu1 %v372_v35  ;;  %753 = vmatpush.msrb.mxu2 %v648_v36  ;;  %v1466_v35 = vld [vmem:[#allocation5 + $0x358] sm:$0xff]  ;;  %v672_v36 = vrot.slane %v3190_v32, 2 }
  0x8c   : > { %306 = vmatmul.f32.gmra.mxu1 %v3193_v37  ;;  %324 = vmatmul.f32.gmra.mxu2 %v3196_v38 }
  0x8d   : > { %1118 = vmatpush.msrb.mxu0 %v1081_v39  ;;  %501 = vmatpush.msrb.mxu1 %v371_v40  ;;  %v1279_v39 = vld [vmem:[#allocation5 + $0x2d8] sm:$0xff]  ;;  %v425_v40 = vsel %vm412_vm0, %v422_v58, %v424_v33 }
  0x8e   : > { %342 = vmatmul.f32.gmra.mxu3 %v3200_v41  ;;  %1471 = vmatpush.msra.mxu2 %v1470_v42  ;;  %v3234_v42 = vsel %vm664_vm1, %v670_v24, %v672_v36  ;;  %v1640_v58 = vld [vmem:[#allocation5 + $0x3b8] sm:$0xff] }
  0x8f   : > { %931 = vmatpush.msrb.mxu3 %v900_v44  ;;  %1119 = vmatpush.msrb.mxu0 %v1080_v45  ;;  %v426_v44 = vrot.slane %v3129_v30, 1  ;;  %v1834_v45 = vld [vmem:[#allocation5 + $0x458] sm:$0xff] }
  0x90   : > { %1293 = vmatpush.msra.mxu1 %v1283_v54  ;;  %1472 = vmatpush.msra.mxu2 %v1469_v56  ;;  %v1278_v54 = vld [vmem:[#allocation5 + $0x2d0] sm:$0xff]  ;;  %v1275_v24 = vld [vmem:[#allocation5 + $0x2b8] sm:$0xff] }
  0x91   : > { %1661 = vmatpush.msra.mxu3 %v1648_v53  ;;  %1120 = vmatpush.msrb.mxu0 %v1079_v55  ;;  %v3241_v51 = vsel %vm412_vm0, %v424_v33, %v426_v44  ;;  %v428_v53 = vrot.slane %v3145_v46, 1  ;;  %v676_v55 = vrot.slane %v3114_v16, 2  ;;  %v1833_v56 = vld [vmem:[#allocation5 + $0x450] sm:$0xff] }
  0x92   : > { %288 = vmatmul.f32.gmra.mxu0 %v3210_v57  ;;  %1294 = vmatpush.msra.mxu1 %v1282_v43  ;;  %v1464_v43 = vld [vmem:[#allocation5 + $0x348] sm:$0xff]  ;;  %v1461_v33 = vld [vmem:[#allocation5 + $0x330] sm:$0xff] }
  0x93   : > { %1662 = vmatpush.msra.mxu3 %v1647_v26  ;;  %1121 = vmatpush.msrb.mxu0 %v1078_v59  ;;  %v430_v59 = vrot.slane %v3161_v62, 1 }
  0x94   : > { %502 = vmatmul.f32.vlgmr.msrb.gmra.mxu1 %v415_v60  ;;  %754 = vmatmul.f32.vlgmr.msrb.gmra.mxu2 %v667_v61  ;;  %v1642_v60 = vld [vmem:[#allocation5 + $0x3c8] sm:$0xff] }
  0x95   : > { %1848 = vmatpush.msra.mxu0 %v1838_v0  ;;  %1473 = vmatpush.msra.mxu2 %v1468_v1  ;;  %v1277_v61 = vld [vmem:[#allocation5 + $0x2c8] sm:$0xff]  ;;  %v3263_v0 = vsel %vm412_vm0, %v428_v53, %v430_v59 }
  0x96   : > { %932 = vmatmul.f32.vlgmr.msrb.gmra.mxu3 %v3174_v10  ;;  %1295 = vmatpush.msra.mxu1 %v1281_v5  ;;  %v1644_v10 = vld [vmem:[#allocation5 + $0x3d8] sm:$0xff]  ;;  %v3275_v5 = vsel %vm412_vm0, %v430_v59, %v432_v3  ;;  %v690_v59 = vrot.slane %v3132_v31, 2 }
  0x97   : > { %1849 = vmatpush.msra.mxu0 %v1837_v6  ;;  %1663 = vmatpush.msra.mxu3 %v1646_v7  ;;  %v1463_v6 = vld [vmem:[#allocation5 + $0x340] sm:$0xff] }
  0x98   : > { %1474 = vmatpush.msra.mxu2 %v1467_v12  ;;  %1296 = vmatpush.msra.mxu1 %v1280_v23  ;;  %v3287_v12 = vsel %vm412_vm0, %v432_v3, %v434_v9  ;;  %v1273_v3 = vld [vmem:[#allocation5 + $0x2a8] sm:$0xff] }
  0x99   : > { %1850 = vmatpush.msra.mxu0 %v1836_v11  ;;  %1664 = vmatpush.msra.mxu3 %v1645_v13  ;;  %v682_v11 = vrot.slane %v3161_v62, 2 }
  0x9a   : > { %1122 = vmatmul.f32.vlgmr.msrb.gmra.mxu0 %v421_v18  ;;  %1475 = vmatpush.msra.mxu2 %v1466_v35 }
  0x9b   : > { %1851 = vmatpush.msra.mxu0 %v1835_v25  ;;  %1665 = vmatpush.msra.mxu3 %v1644_v10  ;;  %v1639_v10 = vld [vmem:[#allocation5 + $0x3b0] sm:$0xff] }
  0x9c   : > { %505 = vmatmul.f32.gmra.mxu1 %v417_v20  ;;  %757 = vmatmul.f32.gmra.mxu2 %v669_v22  ;;  %v436_v20 = vrot.slane %v3117_v17, 1  ;;  %v684_v22 = vrot.slane %v3177_v14, 2 }
  0x9d   : > { %1297 = vmatpush.msra.mxu1 %v1279_v39  ;;  %1852 = vmatpush.msra.mxu0 %v1834_v45  ;;  %v440_v39 = vrot.slane %v3148_v47, 1 }
  0x9e   : > { %935 = vmatmul.f32.gmra.mxu3 %v3190_v32  ;;  %v674_v32 = vrot.slane %v3210_v57, 2  ;;  %1476 = vmatpush.msra.mxu2 %v1465_v48  ;;  %v3299_v23 = vsel %vm412_vm0, %v434_v9, %v436_v20  ;;  %v3302_v25 = vsel %vm664_vm1, %v682_v11, %v684_v22  ;;  %v1828_v9 = vld [vmem:[#allocation5 + $0x428] sm:$0xff] }
  0x9f   : > { %1666 = vmatpush.msra.mxu3 %v1643_v49  ;;  %1298 = vmatpush.msra.mxu1 %v1278_v54 }
  0xa0   : > { %v3244_v52 = vsel %vm664_vm1, %v672_v36, %v674_v32  ;;  %1853 = vmatpush.msra.mxu0 %v1833_v56  ;;  %v3255_v26 = vsel %vm664_vm1, %v674_v32, %v676_v55  ;;  %1477 = vmatpush.msra.mxu2 %v1464_v43  ;;  %v1460_v56 = vld [vmem:[#allocation5 + $0x328] sm:$0xff] }
  0xa1   : > { %1667 = vmatpush.msra.mxu3 %v1642_v60  ;;  %1299 = vmatpush.msra.mxu1 %v1277_v61  ;;  %v1638_v43 = vld [vmem:[#allocation5 + $0x3a8] sm:$0xff] }
  0xa2   : > { %1125 = vmatmul.f32.gmra.mxu0 %v423_v27  ;;  %1478 = vmatpush.msra.mxu2 %v1463_v6 }
  0xa3   : > { %1854 = vmatpush.msra.mxu0 %v1832_v4  ;;  %1668 = vmatpush.msra.mxu3 %v1641_v8  ;;  %v692_v8 = vrot.slane %v3148_v47, 2 }
  0xa4   : > { %508 = vmatmul.f32.gmra.mxu1 %v419_v28  ;;  %760 = vmatmul.f32.gmra.mxu2 %v671_v29  ;;  %v1830_v28 = vld [vmem:[#allocation5 + $0x438] sm:$0xff] }
  0xa5   : > { %1669 = vmatpush.msra.mxu3 %v1640_v58  ;;  %v3368_v58 = vsel %vm664_vm1, %v690_v59, %v692_v8 }
  0xa6   : > { %938 = vmatmul.f32.gmra.mxu3 %v3210_v57  ;;  %v3252_v57 = vsel %vm412_vm0, %v426_v44, %v428_v53  ;;  %v688_v44 = vrot.slane %v3117_v17, 2 }
  0xa7   : > { %1670 = vmatpush.msra.mxu3 %v1639_v10 }
  0xa8   : > { %v3354_v6 = vsel %vm664_vm1, %v688_v44, %v690_v59  ;;  %v1636_v59 = vld [vmem:[#allocation5 + $0x398] sm:$0xff] }
  0xa9   : > { %1671 = vmatpush.msra.mxu3 %v1638_v43 }
  0xaa   : > { %1128 = vmatmul.f32.gmra.mxu0 %v425_v40 }
  0xac   : > { %511 = vmatmul.f32.gmra.mxu1 %v421_v18  ;;  %763 = vmatmul.f32.gmra.mxu2 %v3234_v42  ;;  %v1831_v18 = vld [vmem:[#allocation5 + $0x440] sm:$0xff] }
  0xad   : > { %1855 = vmatpush.msra.mxu0 %v1831_v18 }
  0xae   : > { %941 = vmatmul.f32.gmra.mxu3 %v3114_v16  ;;  %v678_v16 = vrot.slane %v3129_v30, 2 }
  0xaf   : > { %1856 = vmatpush.msra.mxu0 %v1830_v28 }
  0xb0   : > { %v3266_v1 = vsel %vm664_vm1, %v676_v55, %v678_v16  ;;  %v1829_v55 = vld [vmem:[#allocation5 + $0x430] sm:$0xff] }
  0xb1   : > { %1857 = vmatpush.msra.mxu0 %v1829_v55  ;;  %v448_v55 = vrot.slane %v3120_v19, 1 }
  0xb2   : > { %1131 = vmatmul.f32.gmra.mxu0 %v3241_v51 }
  0xb3   : > { %1858 = vmatpush.msra.mxu0 %v1828_v9 }
  0xb4   : > { %514 = vmatmul.f32.gmra.mxu1 %v423_v27  ;;  %766 = vmatmul.f32.gmra.mxu2 %v3244_v52  ;;  %v438_v27 = vrot.slane %v3132_v31, 1 }
  0xb6   : > { %944 = vmatmul.f32.gmra.mxu3 %v3129_v30  ;;  %v680_v30 = vrot.slane %v3145_v46, 2  ;;  %v3311_v29 = vsel %vm412_vm0, %v436_v20, %v438_v27  ;;  %v3329_v48 = vsel %vm412_vm0, %v438_v27, %v440_v39  ;;  %v1459_v20 = vld [vmem:[#allocation5 + $0x320] sm:$0xff] }
  0xb7   : > { %v1272_v27 = vld [vmem:[#allocation5 + $0x2a0] sm:$0xff] }
  0xb8   : > { %v3278_v7 = vsel %vm664_vm1, %v678_v16, %v680_v30  ;;  %v3290_v13 = vsel %vm664_vm1, %v680_v30, %v682_v11 }
  0xba   : > { %1134 = vmatmul.f32.gmra.mxu0 %v3252_v57 }
  0xbc   : > { %517 = vmatmul.f32.gmra.mxu1 %v425_v40  ;;  %769 = vmatmul.f32.gmra.mxu2 %v3255_v26  ;;  %v1274_v40 = vld [vmem:[#allocation5 + $0x2b0] sm:$0xff] }
  0xbe   : > { %947 = vmatmul.f32.gmra.mxu3 %v3145_v46  ;;  %v1276_v46 = vld [vmem:[#allocation5 + $0x2c0] sm:$0xff] }
  0xbf   : > { %1300 = vmatpush.msra.mxu1 %v1276_v46 }
  0xc1   : > { %1301 = vmatpush.msra.mxu1 %v1275_v24  ;;  %v446_v24 = vrot.slane %v3196_v38, 1 }
  0xc2   : > { %1137 = vmatmul.f32.gmra.mxu0 %v3263_v0 }
  0xc3   : > { %1302 = vmatpush.msra.mxu1 %v1274_v40 }
  0xc4   : > { %520 = vmatmul.f32.gmra.mxu1 %v3241_v51  ;;  %772 = vmatmul.f32.gmra.mxu2 %v3266_v1 }
  0xc5   : > { %1303 = vmatpush.msra.mxu1 %v1273_v3 }
  0xc6   : > { %950 = vmatmul.f32.gmra.mxu3 %v3161_v62  ;;  %v1462_v62 = vld [vmem:[#allocation5 + $0x338] sm:$0xff] }
  0xc7   : > { %1479 = vmatpush.msra.mxu2 %v1462_v62  ;;  %1304 = vmatpush.msra.mxu1 %v1272_v27  ;;  %v1457_v27 = vld [vmem:[#allocation5 + $0x310] sm:$0xff] }
  0xc9   : > { %1480 = vmatpush.msra.mxu2 %v1461_v33 }
  0xca   : > { %1140 = vmatmul.f32.gmra.mxu0 %v3275_v5 }
  0xcb   : > { %1481 = vmatpush.msra.mxu2 %v1460_v56  ;;  %v696_v56 = vrot.slane %v3180_v15, 2 }
  0xcc   : > { %523 = vmatmul.f32.gmra.mxu1 %v3252_v57  ;;  %775 = vmatmul.f32.gmra.mxu2 %v3278_v7 }
  0xcd   : > { %1482 = vmatpush.msra.mxu2 %v1459_v20  ;;  %v1826_v20 = vld [vmem:[#allocation5 + $0x418] sm:$0xff] }
  0xce   : > { %953 = vmatmul.f32.gmra.mxu3 %v3177_v14  ;;  %v686_v14 = vrot.slane %v3193_v37, 2 }
  0xd0   : > { %v3316_v36 = vsel %vm664_vm1, %v684_v22, %v686_v14  ;;  %v3336_v54 = vsel %vm664_vm1, %v686_v14, %v688_v44  ;;  %v694_v14 = vrot.slane %v3164_v63, 2 }
  0xd2   : > { %1143 = vmatmul.f32.gmra.mxu0 %v3287_v12  ;;  %v3388_v44 = vsel %vm664_vm1, %v692_v8, %v694_v14 }
  0xd4   : > { %526 = vmatmul.f32.gmra.mxu1 %v3263_v0  ;;  %778 = vmatmul.f32.gmra.mxu2 %v3290_v13 }
  0xd6   : > { %956 = vmatmul.f32.gmra.mxu3 %v3193_v37 }
  0xda   : > { %1146 = vmatmul.f32.gmra.mxu0 %v3299_v23 }
  0xdc   : > { %529 = vmatmul.f32.gmra.mxu1 %v3275_v5  ;;  %781 = vmatmul.f32.gmra.mxu2 %v3302_v25 }
  0xde   : > { %959 = vmatmul.f32.gmra.mxu3 %v3117_v17  ;;  %v442_v17 = vrot.slane %v3164_v63, 1 }
  0xe0   : > { %v3349_v61 = vsel %vm412_vm0, %v440_v39, %v442_v17 }
  0xe1   : > { %v3313_v35 = vpop.f32.mrf.mxu1 }
  0xe2   : > { %1149 = vmatmul.f32.gmra.mxu0 %v3311_v29 }
  0xe4   : > { %532 = vmatmul.f32.gmra.mxu1 %v3287_v12  ;;  %784 = vmatmul.f32.gmra.mxu2 %v3316_v36 }
  0xe6   : > { %962 = vmatmul.f32.gmra.mxu3 %v3132_v31  ;;  %v444_v31 = vrot.slane %v3180_v15, 1 }
  0xe7   : > { %v3324_v32 = vpop.f32.mrf.mxu2  ;;  %v3326_v45 = vpop.f32.mrf.mxu0 }
  0xe8   : > { %v3363_v18 = vsel %vm412_vm0, %v442_v17, %v444_v31  ;;  %v3381_v10 = vsel %vm412_vm0, %v444_v31, %v446_v24  ;;  %v1458_v17 = vld [vmem:[#allocation5 + $0x318] sm:$0xff] }
  0xe9   : > { %v3331_v49 = vpop.f32.mrf.mxu1  ;;  %v3333_v53 = vpop.f32.mrf.mxu3  ;;  %1483 = vmatpush.msra.mxu2 %v1458_v17  ;;  %v1271_v31 = vld [vmem:[#allocation5 + $0x298] sm:$0xff] }
  0xea   : > { %1152 = vmatmul.f32.gmra.mxu0 %v3329_v48  ;;  %1305 = vmatpush.msra.mxu1 %v1271_v31  ;;  %v700_v31 = vrot.slane %v3120_v19, 2 }
  0xeb   : > { %1484 = vmatpush.msra.mxu2 %v1457_v27 }
  0xec   : > { %535 = vmatmul.f32.gmra.mxu1 %v3299_v23  ;;  %787 = vmatmul.f32.gmra.mxu2 %v3336_v54 }
  0xee   : > { %965 = vmatmul.f32.gmra.mxu3 %v3148_v47  ;;  %v1637_v47 = vld [vmem:[#allocation5 + $0x3a0] sm:$0xff] }
  0xef   : > { %v3344_v16 = vpop.f32.mrf.mxu2  ;;  %v3346_v60 = vpop.f32.mrf.mxu0  ;;  %1672 = vmatpush.msra.mxu3 %v1637_v47 }
  0xf1   : > { %v298_v30 = vpop.f32.mrf.mxu1  ;;  %v3351_v4 = vpop.f32.mrf.mxu3  ;;  %1673 = vmatpush.msra.mxu3 %v1636_v59  ;;  %v1635_v59 = vld [vmem:[#allocation5 + $0x390] sm:$0xff] }
  0xf2   : > { %1155 = vmatmul.f32.gmra.mxu0 %v3349_v61  ;;  %v3401_v30 = vsel %vm412_vm0, %v446_v24, %v448_v55 }
  0xf3   : > { %1674 = vmatpush.msra.mxu3 %v1635_v59 }
  0xf4   : > { %538 = vmatmul.f32.gmra.mxu1 %v3311_v29  ;;  %790 = vmatmul.f32.gmra.mxu2 %v3354_v6 }
  0xf6   : > { %968 = vmatmul.f32.gmra.mxu3 %v3164_v63  ;;  %v1827_v63 = vld [vmem:[#allocation5 + $0x420] sm:$0xff] }
  0xf7   : > { %v316_v46 = vpop.f32.mrf.mxu2  ;;  %v280_v11 = vpop.f32.mrf.mxu0  ;;  %1859 = vmatpush.msra.mxu0 %v1827_v63 }
  0xf8   : > { %v3406_v46 = vsel %vm664_vm1, %v694_v14, %v696_v56  ;;  %v698_v11 = vrot.slane %v3196_v38, 2 }
  0xf9   : > { %v3365_v62 = vpop.f32.mrf.mxu1  ;;  %v334_v22 = vpop.f32.mrf.mxu3  ;;  %1860 = vmatpush.msra.mxu0 %v1826_v20 }
  0xfa   : > { %1158 = vmatmul.f32.gmra.mxu0 %v3363_v18  ;;  %v3418_v17 = vsel %vm664_vm1, %v696_v56, %v698_v11  ;;  %v3431_v59 = vsel %vm664_vm1, %v698_v11, %v700_v31 }
  0xfc   : > { %541 = vmatmul.f32.gmra.mxu1 %v3329_v48  ;;  %793 = vmatmul.f32.gmra.mxu2 %v3368_v58 }
  0xfe   : > { %971 = vmatmul.f32.gmra.mxu3 %v3180_v15  ;;  %v450_v15 = vrot.slane %v3136_v34, 1 }
  0xff   : > { %v3376_v28 = vpop.f32.mrf.mxu2  ;;  %v3378_v33 = vpop.f32.mrf.mxu0 }
 0x100   : > { %v3415_v24 = vsel %vm412_vm0, %v448_v55, %v450_v15  ;;  %v1270_v55 = vld [vmem:[#allocation5 + $0x290] sm:$0xff] }
 0x101   : > { %v3383_v39 = vpop.f32.mrf.mxu1  ;;  %v3385_v40 = vpop.f32.mrf.mxu3  ;;  %1306 = vmatpush.msra.mxu1 %v1270_v55  ;;  %v454_v55 = vrot.slane %v3168_v2, 1 }
 0x102   : > { %3890 = vst [vmem:[#allocation19_spill] sm:$0xff] %v3385_v40  ;;  %1161 = vmatmul.f32.gmra.mxu0 %v3381_v10 }
 0x104   : > { %544 = vmatmul.f32.gmra.mxu1 %v3349_v61  ;;  %796 = vmatmul.f32.gmra.mxu2 %v3388_v44 }
 0x106   : > { %974 = vmatmul.f32.gmra.mxu3 %v3196_v38  ;;  %v452_v38 = vrot.slane %v3152_v50, 1 }
 0x107   : > { %v3396_v43 = vpop.f32.mrf.mxu2  ;;  %v3398_v3 = vpop.f32.mrf.mxu0 }
 0x109   : > { %v307_v8 = vpop.f32.mrf.mxu1  ;;  %v3403_v9 = vpop.f32.mrf.mxu3 }
 0x10a   : > { %3891 = vst [vmem:[#allocation20_spill] sm:$0xff] %v3403_v9  ;;  %1164 = vmatmul.f32.gmra.mxu0 %v3401_v30 }
 0x10c   : > { %547 = vmatmul.f32.gmra.mxu1 %v3363_v18  ;;  %799 = vmatmul.f32.gmra.mxu2 %v3406_v46 }
 0x10e   : > { %977 = vmatmul.f32.gmra.mxu3 %v3120_v19  ;;  %v1825_v19 = vld [vmem:[#allocation5 + $0x410] sm:$0xff] }
 0x10f   : > { %v325_v22 = vpop.f32.mrf.mxu2  ;;  %v289_v47 = vpop.f32.mrf.mxu0  ;;  %1861 = vmatpush.msra.mxu0 %v1825_v19 }
 0x110   : > { %v3428_v22 = vsel %vm412_vm0, %v450_v15, %v452_v38  ;;  %v1456_v15 = vld [vmem:[#allocation5 + $0x308] sm:$0xff] }
 0x111   : > { %v343_v14 = vpop.f32.mrf.mxu3  ;;  %v503_v63 = vpop.f32.mrf.mxu1  ;;  %1485 = vmatpush.msra.mxu2 %v1456_v15  ;;  %v1824_v15 = vld [vmem:[#allocation5 + $0x408] sm:$0xff] }
 0x112   : > { %1167 = vmatmul.f32.gmra.mxu0 %v3415_v24  ;;  %v599_v8 = vadd.f32 %v503_v63, %v3326_v45  ;;  %v702_v63 = vrot.slane %v3136_v34, 2 }
 0x113   : > { %1862 = vmatpush.msra.mxu0 %v1824_v15 }
 0x114   : > { %550 = vmatmul.f32.gmra.mxu1 %v3381_v10  ;;  %802 = vmatmul.f32.gmra.mxu2 %v3418_v17  ;;  %v3446_v40 = vsel %vm664_vm1, %v700_v31, %v702_v63 }
 0x116   : > { %980 = vmatmul.f32.gmra.mxu3 %v3136_v34 }
 0x117   : > { %v755_v56 = vpop.f32.mrf.mxu2  ;;  %v1123_v20 = vpop.f32.mrf.mxu0 }
 0x118   : > { %v851_v47 = vadd.f32 %v755_v56, %v599_v8  ;;  %v1634_v8 = vld [vmem:[#allocation5 + $0x388] sm:$0xff] }
 0x119   : > { %v506_v27 = vpop.f32.mrf.mxu1  ;;  %v933_v14 = vpop.f32.mrf.mxu3  ;;  %1675 = vmatpush.msra.mxu3 %v1634_v8 }
 0x11a   : > { %v1029_v9 = vadd.f32 %v933_v14, %v851_v47  ;;  %1170 = vmatmul.f32.gmra.mxu0 %v3428_v22  ;;  %v600_v11 = vadd.f32 %v506_v27, %v3346_v60  ;;  %v3443_v14 = vsel %vm412_vm0, %v452_v38, %v454_v55  ;;  %v456_v60 = vrot.slane %v3184_v21, 1 }
 0x11b   : > { %v704_v38 = vrot.slane %v3152_v50, 2 }
 0x11c   : > { %v3435_v45 = vadd.f32 %v1123_v20, %v1029_v9  ;;  %553 = vmatmul.f32.gmra.mxu1 %v3401_v30  ;;  %805 = vmatmul.f32.gmra.mxu2 %v3431_v59  ;;  %v1269_v9 = vld [vmem:[#allocation5 + $0x288] sm:$0xff]  ;;  %v3457_v31 = vsel %vm412_vm0, %v454_v55, %v456_v60  ;;  %v1268_v55 = vld [vmem:[#allocation5 + $0x280] sm:$0xff] }
 0x11d   : > { %1307 = vmatpush.msra.mxu1 %v1269_v9 }
 0x11e   : > { %3892 = vst [vmem:[#allocation21_spill] sm:$0xff] %v3435_v45  ;;  %983 = vmatmul.f32.gmra.mxu3 %v3152_v50  ;;  %v1633_v50 = vld [vmem:[#allocation5 + $0x380] sm:$0xff] }
 0x11f   : > { %v758_v56 = vpop.f32.mrf.mxu2  ;;  %v1126_v47 = vpop.f32.mrf.mxu0  ;;  %1676 = vmatpush.msra.mxu3 %v1633_v50  ;;  %1308 = vmatpush.msra.mxu1 %v1268_v55 }
 0x120   : > { %v852_v20 = vadd.f32 %v758_v56, %v600_v11 }
 0x121   : > { %v509_v19 = vpop.f32.mrf.mxu1  ;;  %v936_v45 = vpop.f32.mrf.mxu3 }
 0x122   : > { %v1030_v34 = vadd.f32 %v936_v45, %v852_v20  ;;  %1173 = vmatmul.f32.gmra.mxu0 %v3443_v14  ;;  %v1455_v45 = vld [vmem:[#allocation5 + $0x300] sm:$0xff]  ;;  %v458_v20 = vrot.slane %v3200_v41, 1  ;;  %v706_v19 = vrot.slane %v3168_v2, 2 }
 0x123   : > { %1486 = vmatpush.msra.mxu2 %v1455_v45  ;;  %v3473_v45 = vld [vmem:[%s3110_s10 + $0xc0] sm:$0xff] }
 0x124   : > { %v3450_v27 = vadd.f32 %v1126_v47, %v1030_v34  ;;  %556 = vmatmul.f32.gmra.mxu1 %v3415_v24  ;;  %808 = vmatmul.f32.gmra.mxu2 %v3446_v40  ;;  %v3460_v47 = vsel %vm664_vm1, %v702_v63, %v704_v38 }
 0x126   : > { %3893 = vst [vmem:[#allocation22_spill] sm:$0xff] %v3450_v27  ;;  %986 = vmatmul.f32.gmra.mxu3 %v3168_v2  ;;  %v3476_v27 = vsel %vm664_vm1, %v704_v38, %v706_v19 }
 0x127   : > { %v761_v11 = vpop.f32.mrf.mxu2  ;;  %v1129_v8 = vpop.f32.mrf.mxu0  ;;  %3895 = vst [vmem:[#allocation24_spill] sm:$0xff] %v3476_v27 }
 0x128   : > { %v3470_v11 = vsel %vm412_vm0, %v456_v60, %v458_v20  ;;  %v708_v60 = vrot.slane %v3184_v21, 2 }
 0x129   : > { %v512_v56 = vpop.f32.mrf.mxu1  ;;  %v939_v9 = vpop.f32.mrf.mxu3  ;;  %3894 = vst [vmem:[#allocation23_spill] sm:$0xff] %v3470_v11 }
 0x12a   : > { %1176 = vmatmul.f32.gmra.mxu0 %v3457_v31  ;;  %v602_v34 = vadd.f32 %v512_v56, %v3378_v33  ;;  %v1823_v33 = vld [vmem:[#allocation5 + $0x400] sm:$0xff]  ;;  %v460_v56 = vrot.slane %v3473_v45, 1 }
 0x12b   : > { %1863 = vmatpush.msra.mxu0 %v1823_v33  ;;  %v3491_v33 = vld [vmem:[%s3110_s10 + $0xc8] sm:$0xff] }
 0x12c   : > { %559 = vmatmul.f32.gmra.mxu1 %v3428_v22  ;;  %811 = vmatmul.f32.gmra.mxu2 %v3460_v47 }
 0x12e   : > { %989 = vmatmul.f32.gmra.mxu3 %v3184_v21  ;;  %v1097_v21 = vrot.slane %v3491_v33, 1 }
 0x12f   : > { %v764_v63 = vpop.f32.mrf.mxu2  ;;  %v1132_v15 = vpop.f32.mrf.mxu0 }
 0x130   : > { %v854_v8 = vadd.f32 %v764_v63, %v602_v34 }
 0x131   : > { %v515_v9 = vpop.f32.mrf.mxu1  ;;  %v942_v50 = vpop.f32.mrf.mxu3 }
 0x132   : > { %v1032_v2 = vadd.f32 %v942_v50, %v854_v8  ;;  %1179 = vmatmul.f32.gmra.mxu0 %v3470_v11  ;;  %v603_v34 = vadd.f32 %v515_v9, %v3398_v3  ;;  %v3488_v8 = vsel %vm412_vm0, %v458_v20, %v460_v56  ;;  %v710_v20 = vrot.slane %v3200_v41, 2 }
 0x134   : > { %v3480_v55 = vadd.f32 %v1132_v15, %v1032_v2  ;;  %562 = vmatmul.f32.gmra.mxu1 %v3443_v14  ;;  %814 = vmatmul.f32.gmra.mxu2 %v3476_v27 }
 0x136   : > { %3896 = vst [vmem:[#allocation25_spill] sm:$0xff] %v3480_v55  ;;  %992 = vmatmul.f32.gmra.mxu3 %v3200_v41  ;;  %v3494_v55 = vsel %vm664_vm1, %v706_v19, %v708_v60  ;;  %v3505_v19 = vsel %vm412_vm0, %v460_v56, %v1097_v21  ;;  %v3879_v41 = vrot.slane %v3473_v45, 2 }
 0x137   : > { %v767_v38 = vpop.f32.mrf.mxu2  ;;  %v1135_v63 = vpop.f32.mrf.mxu0  ;;  %3898 = vst [vmem:[#allocation27_spill] sm:$0xff] %v3505_v19 }
 0x138   : > { %v855_v50 = vadd.f32 %v767_v38, %v603_v34  ;;  %v3508_v38 = vld [vmem:[%s3110_s10 + $0xd0] sm:$0xff] }
 0x139   : > { %v518_v15 = vpop.f32.mrf.mxu1  ;;  %v945_v2 = vpop.f32.mrf.mxu3 }
 0x13a   : > { %v1033_v27 = vadd.f32 %v945_v2, %v855_v50  ;;  %1182 = vmatmul.f32.gmra.mxu0 %v3488_v8 }
 0x13c   : > { %v3498_v3 = vadd.f32 %v1135_v63, %v1033_v27  ;;  %565 = vmatmul.f32.gmra.mxu1 %v3457_v31  ;;  %817 = vmatmul.f32.gmra.mxu2 %v3494_v55  ;;  %v3511_v27 = vsel %vm664_vm1, %v708_v60, %v710_v20  ;;  %v1099_v63 = vrot.slane %v3508_v38, 1 }
 0x13d   : > { %3899 = vst [vmem:[#allocation28_spill] sm:$0xff] %v3511_v27 }
 0x13e   : > { %3897 = vst [vmem:[#allocation26_spill] sm:$0xff] %v3498_v3  ;;  %995 = vmatmul.f32.gmra.mxu3 %v3473_v45 }
 0x13f   : > { %v770_v9 = vpop.f32.mrf.mxu2  ;;  %v1138_v34 = vpop.f32.mrf.mxu0 }
 0x140   : > { %v3521_v34 = vsel %vm412_vm0, %v1097_v21, %v1099_v63 }
 0x141   : > { %v521_v50 = vpop.f32.mrf.mxu1  ;;  %v948_v15 = vpop.f32.mrf.mxu3 }
 0x142   : > { %1185 = vmatmul.f32.gmra.mxu0 %v3505_v19  ;;  %v605_v56 = vadd.f32 %v521_v50, %v3313_v35  ;;  %v3524_v15 = vld [vmem:[%s3110_s10 + $0xd8] sm:$0xff] }
 0x143   : > { %3900 = vst [vmem:[#allocation29_spill] sm:$0xff] %v3524_v15  ;;  %v1101_v35 = vrot.slane %v3524_v15, 1 }
 0x144   : > { %568 = vmatmul.f32.gmra.mxu1 %v3470_v11  ;;  %820 = vmatmul.f32.gmra.mxu2 %v3511_v27  ;;  %v3529_v27 = vsel %vm664_vm1, %v710_v20, %v3879_v41 }
 0x145   : > { %v3542_v20 = vsel %vm412_vm0, %v1099_v63, %v1101_v35 }
 0x146   : > { %998 = vmatmul.f32.gmra.mxu3 %v3491_v33 }
 0x147   : > { %v773_v2 = vpop.f32.mrf.mxu2  ;;  %v1141_v9 = vpop.f32.mrf.mxu0 }
 0x148   : > { %v857_v60 = vadd.f32 %v773_v2, %v605_v56 }
 0x149   : > { %v524_v3 = vpop.f32.mrf.mxu1  ;;  %v951_v19 = vpop.f32.mrf.mxu3 }
 0x14a   : > { %v1035_v11 = vadd.f32 %v951_v19, %v857_v60  ;;  %1188 = vmatmul.f32.gmra.mxu0 %v3521_v34  ;;  %v606_v21 = vadd.f32 %v524_v3, %v3331_v49  ;;  %v2743_v49 = vld [vmem:[%s3110_s10 + $0x30] sm:$0xff] }
 0x14c   : > { %v3533_v50 = vadd.f32 %v1141_v9, %v1035_v11  ;;  %571 = vmatmul.f32.gmra.mxu1 %v3488_v8  ;;  %823 = vmatmul.f32.gmra.mxu2 %v3529_v27 }
 0x14e   : > { %3901 = vst [vmem:[#allocation30_spill] sm:$0xff] %v3533_v50  ;;  %1001 = vmatmul.f32.gmra.mxu3 %v3508_v38 }
 0x14f   : > { %v776_v56 = vpop.f32.mrf.mxu2  ;;  %v1144_v2 = vpop.f32.mrf.mxu0 }
 0x150   : > { %v858_v19 = vadd.f32 %v776_v56, %v606_v21  ;;  %v2744_v21 = vld [vmem:[%s3110_s10 + $0x38] sm:$0xff] }
 0x151   : > { %v527_v60 = vpop.f32.mrf.mxu1  ;;  %v954_v11 = vpop.f32.mrf.mxu3 }
 0x152   : > { %v1036_v9 = vadd.f32 %v954_v11, %v858_v19  ;;  %1191 = vmatmul.f32.gmra.mxu0 %v3542_v20 }
 0x154   : > { %v3545_v41 = vadd.f32 %v1144_v2, %v1036_v9  ;;  %1309 = vmatmul.f32.vlgmr.msra.gmra.mxu1 %v3234_v42  ;;  %1487 = vmatmul.f32.vlgmr.msra.gmra.mxu2 %v2743_v49 }
 0x156   : > { %1677 = vmatmul.f32.vlgmr.msra.gmra.mxu3 %v3241_v51 }
 0x157   : > { %v779_v3 = vpop.f32.mrf.mxu2  ;;  %v1147_v50 = vpop.f32.mrf.mxu0 }
 0x159   : > { %v530_v15 = vpop.f32.mrf.mxu1  ;;  %v957_v63 = vpop.f32.mrf.mxu3 }
 0x15a   : > { %1864 = vmatmul.f32.vlgmr.msra.gmra.mxu0 %v3266_v1  ;;  %v608_v56 = vadd.f32 %v530_v15, %v3365_v62 }
 0x15c   : > { %1312 = vmatmul.f32.gmra.mxu1 %v3244_v52  ;;  %1490 = vmatmul.f32.gmra.mxu2 %v2744_v21  ;;  %v2745_v52 = vld [vmem:[%s3110_s10 + $0x40] sm:$0xff] }
 0x15e   : > { %1680 = vmatmul.f32.gmra.mxu3 %v3252_v57 }
 0x15f   : > { %v782_v42 = vpop.f32.mrf.mxu2  ;;  %v1150_v2 = vpop.f32.mrf.mxu0 }
 0x160   : > { %v860_v19 = vadd.f32 %v782_v42, %v608_v56 }
 0x161   : > { %v533_v60 = vpop.f32.mrf.mxu1  ;;  %v960_v51 = vpop.f32.mrf.mxu3 }
 0x162   : > { %v1038_v11 = vadd.f32 %v960_v51, %v860_v19  ;;  %1867 = vmatmul.f32.gmra.mxu0 %v3278_v7  ;;  %v609_v9 = vadd.f32 %v533_v60, %v3383_v39 }
 0x164   : > { %v3556_v50 = vadd.f32 %v1150_v2, %v1038_v11  ;;  %1315 = vmatmul.f32.gmra.mxu1 %v3255_v26  ;;  %1493 = vmatmul.f32.gmra.mxu2 %v2745_v52  ;;  %v2746_v26 = vld [vmem:[%s3110_s10 + $0x48] sm:$0xff]  ;;  %v2747_v2 = vld [vmem:[%s3110_s10 + $0x50] sm:$0xff] }
 0x166   : > { %1683 = vmatmul.f32.gmra.mxu3 %v3263_v0 }
 0x167   : > { %v785_v57 = vpop.f32.mrf.mxu2  ;;  %v1153_v62 = vpop.f32.mrf.mxu0 }
 0x168   : > { %v861_v15 = vadd.f32 %v785_v57, %v609_v9 }
 0x169   : > { %v536_v49 = vpop.f32.mrf.mxu1  ;;  %v963_v3 = vpop.f32.mrf.mxu3 }
 0x16a   : > { %v1039_v63 = vadd.f32 %v963_v3, %v861_v15  ;;  %1870 = vmatmul.f32.gmra.mxu0 %v3290_v13 }
 0x16c   : > { %v3563_v21 = vadd.f32 %v1153_v62, %v1039_v63  ;;  %1318 = vmatmul.f32.gmra.mxu1 %v3266_v1  ;;  %1496 = vmatmul.f32.gmra.mxu2 %v2746_v26  ;;  %v2749_v26 = vld [vmem:[%s3110_s10 + $0x68] sm:$0xff] }
 0x16e   : > { %1686 = vmatmul.f32.gmra.mxu3 %v3275_v5 }
 0x16f   : > { %v788_v39 = vpop.f32.mrf.mxu2  ;;  %v1156_v56 = vpop.f32.mrf.mxu0 }
 0x171   : > { %v539_v0 = vpop.f32.mrf.mxu1  ;;  %v966_v42 = vpop.f32.mrf.mxu3 }
 0x172   : > { %1873 = vmatmul.f32.gmra.mxu0 %v3302_v25  ;;  %v611_v19 = vadd.f32 %v539_v0, %v3324_v32 }
 0x174   : > { %1321 = vmatmul.f32.gmra.mxu1 %v3278_v7  ;;  %1499 = vmatmul.f32.gmra.mxu2 %v2747_v2 }
 0x176   : > { %1689 = vmatmul.f32.gmra.mxu3 %v3287_v12 }
 0x177   : > { %v791_v60 = vpop.f32.mrf.mxu2  ;;  %v1159_v1 = vpop.f32.mrf.mxu0 }
 0x178   : > { %v863_v51 = vadd.f32 %v791_v60, %v611_v19 }
 0x179   : > { %v542_v11 = vpop.f32.mrf.mxu1  ;;  %v969_v52 = vpop.f32.mrf.mxu3 }
 0x17a   : > { %v1041_v5 = vadd.f32 %v969_v52, %v863_v51  ;;  %1876 = vmatmul.f32.gmra.mxu0 %v3316_v36  ;;  %v612_v7 = vadd.f32 %v542_v11, %v3344_v16 }
 0x17c   : > { %v3574_v9 = vadd.f32 %v1159_v1, %v1041_v5  ;;  %1324 = vmatmul.f32.gmra.mxu1 %v3290_v13  ;;  %1502 = vmatmul.f32.gmra.mxu2 %v3193_v37  ;;  %v2748_v13 = vld [vmem:[%s3110_s10 + $0x60] sm:$0xff] }
 0x17e   : > { %1692 = vmatmul.f32.gmra.mxu3 %v3299_v23 }
 0x17f   : > { %v794_v12 = vpop.f32.mrf.mxu2  ;;  %v1162_v32 = vpop.f32.mrf.mxu0 }
 0x180   : > { %v864_v57 = vadd.f32 %v794_v12, %v612_v7 }
 0x181   : > { %v545_v62 = vpop.f32.mrf.mxu1  ;;  %v972_v15 = vpop.f32.mrf.mxu3 }
 0x182   : > { %v1042_v49 = vadd.f32 %v972_v15, %v864_v57  ;;  %1879 = vmatmul.f32.gmra.mxu0 %v3336_v54 }
 0x184   : > { %v3581_v3 = vadd.f32 %v1162_v32, %v1042_v49  ;;  %1327 = vmatmul.f32.gmra.mxu1 %v3302_v25  ;;  %1505 = vmatmul.f32.gmra.mxu2 %v2748_v13  ;;  %v2752_v32 = vld [vmem:[%s3110_s10 + $0x80] sm:$0xff] }
 0x186   : > { %1695 = vmatmul.f32.gmra.mxu3 %v3311_v29 }
 0x187   : > { %v797_v37 = vpop.f32.mrf.mxu2  ;;  %v1165_v16 = vpop.f32.mrf.mxu0 }
 0x189   : > { %v548_v23 = vpop.f32.mrf.mxu1  ;;  %v975_v63 = vpop.f32.mrf.mxu3 }
 0x18a   : > { %1882 = vmatmul.f32.gmra.mxu0 %v3354_v6  ;;  %v614_v39 = vadd.f32 %v548_v23, %v3376_v28 }
 0x18c   : > { %1330 = vmatmul.f32.gmra.mxu1 %v3316_v36  ;;  %1508 = vmatmul.f32.gmra.mxu2 %v2749_v26  ;;  %v2750_v36 = vld [vmem:[%s3110_s10 + $0x70] sm:$0xff] }
 0x18e   : > { %1698 = vmatmul.f32.gmra.mxu3 %v3329_v48 }
 0x18f   : > { %v800_v25 = vpop.f32.mrf.mxu2  ;;  %v1168_v56 = vpop.f32.mrf.mxu0 }
 0x190   : > { %v866_v0 = vadd.f32 %v800_v25, %v614_v39 }
 0x191   : > { %v551_v42 = vpop.f32.mrf.mxu1  ;;  %v978_v29 = vpop.f32.mrf.mxu3 }
 0x192   : > { %v1044_v2 = vadd.f32 %v978_v29, %v866_v0  ;;  %1885 = vmatmul.f32.gmra.mxu0 %v3368_v58  ;;  %v615_v60 = vadd.f32 %v551_v42, %v3396_v43  ;;  %v2755_v42 = vld [vmem:[%s3110_s10 + $0x98] sm:$0xff] }
 0x193   : > { %v3902_v29 = vld [vmem:[#allocation19_spill] sm:$0xff] }
 0x194   : > { %v3592_v19 = vadd.f32 %v1168_v56, %v1044_v2  ;;  %1333 = vmatmul.f32.gmra.mxu1 %v3336_v54  ;;  %1511 = vmatmul.f32.gmra.mxu2 %v2750_v36  ;;  %v2751_v54 = vld [vmem:[%s3110_s10 + $0x78] sm:$0xff] }
 0x196   : > { %1701 = vmatmul.f32.gmra.mxu3 %v3349_v61 }
 0x197   : > { %v803_v48 = vpop.f32.mrf.mxu2  ;;  %v1171_v28 = vpop.f32.mrf.mxu0 }
 0x198   : > { %v867_v1 = vadd.f32 %v803_v48, %v615_v60 }
 0x199   : > { %v554_v51 = vpop.f32.mrf.mxu1  ;;  %v981_v11 = vpop.f32.mrf.mxu3 }
 0x19a   : > { %v1045_v52 = vadd.f32 %v981_v11, %v867_v1  ;;  %1888 = vmatmul.f32.gmra.mxu0 %v3388_v44  ;;  %v3903_v51 = vld [vmem:[#allocation20_spill] sm:$0xff] }
 0x19c   : > { %v3599_v5 = vadd.f32 %v1171_v28, %v1045_v52  ;;  %1336 = vmatmul.f32.gmra.mxu1 %v3354_v6  ;;  %1514 = vmatmul.f32.gmra.mxu2 %v2751_v54 }
 0x19e   : > { %1704 = vmatmul.f32.gmra.mxu3 %v3363_v18 }
 0x19f   : > { %v806_v43 = vpop.f32.mrf.mxu2  ;;  %v1174_v7 = vpop.f32.mrf.mxu0 }
 0x1a1   : > { %v557_v61 = vpop.f32.mrf.mxu1  ;;  %v984_v12 = vpop.f32.mrf.mxu3 }
 0x1a2   : > { %1891 = vmatmul.f32.gmra.mxu0 %v3406_v46  ;;  %v617_v57 = vadd.f32 %v557_v61, %v3333_v53  ;;  %v3904_v12 = vld [vmem:[#allocation24_spill] sm:$0xff] }
 0x1a4   : > { %1339 = vmatmul.f32.gmra.mxu1 %v3368_v58  ;;  %1517 = vmatmul.f32.gmra.mxu2 %v2752_v32  ;;  %v2753_v58 = vld [vmem:[%s3110_s10 + $0x88] sm:$0xff] }
 0x1a6   : > { %1707 = vmatmul.f32.gmra.mxu3 %v3381_v10 }
 0x1a7   : > { %v809_v6 = vpop.f32.mrf.mxu2  ;;  %v1177_v62 = vpop.f32.mrf.mxu0 }
 0x1a8   : > { %v869_v15 = vadd.f32 %v809_v6, %v617_v57 }
 0x1a9   : > { %v560_v49 = vpop.f32.mrf.mxu1  ;;  %v987_v18 = vpop.f32.mrf.mxu3 }
 0x1aa   : > { %v1047_v13 = vadd.f32 %v987_v18, %v869_v15  ;;  %1894 = vmatmul.f32.gmra.mxu0 %v3418_v17  ;;  %v618_v16 = vadd.f32 %v560_v49, %v3351_v4  ;;  %v2758_v15 = vld [vmem:[%s3110_s10 + $0xb0] sm:$0xff]  ;;  %v3905_v49 = vld [vmem:[#allocation21_spill] sm:$0xff] }
 0x1ac   : > { %v3610_v37 = vadd.f32 %v1177_v62, %v1047_v13  ;;  %1342 = vmatmul.f32.gmra.mxu1 %v3388_v44  ;;  %1520 = vmatmul.f32.gmra.mxu2 %v2753_v58  ;;  %v2754_v44 = vld [vmem:[%s3110_s10 + $0x90] sm:$0xff] }
 0x1ad   : > { %v3906_v13 = vld [vmem:[#allocation23_spill] sm:$0xff] }
 0x1ae   : > { %1710 = vmatmul.f32.gmra.mxu3 %v3401_v30 }
 0x1af   : > { %v812_v53 = vpop.f32.mrf.mxu2  ;;  %v1180_v10 = vpop.f32.mrf.mxu0 }
 0x1b0   : > { %v870_v23 = vadd.f32 %v812_v53, %v618_v16 }
 0x1b1   : > { %v563_v63 = vpop.f32.mrf.mxu1  ;;  %v990_v26 = vpop.f32.mrf.mxu3 }
 0x1b2   : > { %v1048_v39 = vadd.f32 %v990_v26, %v870_v23  ;;  %1897 = vmatmul.f32.gmra.mxu0 %v3431_v59  ;;  %v3648_v23 = vld [vmem:[%s3869_s2] ss:$0 sm:$0xff]  ;;  %v3907_v63 = vld [vmem:[#allocation28_spill] sm:$0xff] }
 0x1b3   : > { %v2759_v26 = vld [vmem:[%s3110_s10 + $0xb8] sm:$0xff] }
 0x1b4   : > { %v3617_v25 = vadd.f32 %v1180_v10, %v1048_v39  ;;  %1345 = vmatmul.f32.gmra.mxu1 %v3406_v46  ;;  %1523 = vmatmul.f32.gmra.mxu2 %v2754_v44  ;;  %v3908_v39 = vld [vmem:[#allocation22_spill] sm:$0xff] }
 0x1b6   : > { %1713 = vmatmul.f32.gmra.mxu3 %v3415_v24 }
 0x1b7   : > { %v815_v4 = vpop.f32.mrf.mxu2  ;;  %v1183_v56 = vpop.f32.mrf.mxu0 }
 0x1b9   : > { %v566_v30 = vpop.f32.mrf.mxu1  ;;  %v993_v0 = vpop.f32.mrf.mxu3 }
 0x1ba   : > { %1900 = vmatmul.f32.gmra.mxu0 %v3446_v40  ;;  %v620_v2 = vadd.f32 %v566_v30, %v3902_v29 }
 0x1bc   : > { %1348 = vmatmul.f32.gmra.mxu1 %v3418_v17  ;;  %1526 = vmatmul.f32.gmra.mxu2 %v2755_v42  ;;  %v2756_v17 = vld [vmem:[%s3110_s10 + $0xa0] sm:$0xff] }
 0x1be   : > { %1716 = vmatmul.f32.gmra.mxu3 %v3428_v22 }
 0x1bf   : > { %v818_v46 = vpop.f32.mrf.mxu2  ;;  %v1186_v36 = vpop.f32.mrf.mxu0 }
 0x1c0   : > { %v872_v60 = vadd.f32 %v818_v46, %v620_v2 }
 0x1c1   : > { %v569_v48 = vpop.f32.mrf.mxu1  ;;  %v996_v24 = vpop.f32.mrf.mxu3 }
 0x1c2   : > { %v1050_v28 = vadd.f32 %v996_v24, %v872_v60  ;;  %1903 = vmatmul.f32.gmra.mxu0 %v3460_v47  ;;  %v621_v11 = vadd.f32 %v569_v48, %v3903_v51  ;;  %v3909_v48 = vld [vmem:[#allocation27_spill] sm:$0xff] }
 0x1c4   : > { %v3628_v1 = vadd.f32 %v1186_v36, %v1050_v28  ;;  %1351 = vmatmul.f32.gmra.mxu1 %v3431_v59  ;;  %1529 = vmatmul.f32.gmra.mxu2 %v2756_v17  ;;  %v2757_v59 = vld [vmem:[%s3110_s10 + $0xa8] sm:$0xff]  ;;  %v1284_v36 = vrot.slane %v3491_v33, 2  ;;  %v3910_v17 = vrot.slane %v3473_v45, 2 }
 0x1c6   : > { %1719 = vmatmul.f32.gmra.mxu3 %v3443_v14  ;;  %v3670_v51 = vsel %vm664_vm1, %v3910_v17, %v1284_v36 }
 0x1c7   : > { %v821_v22 = vpop.f32.mrf.mxu2  ;;  %v1189_v52 = vpop.f32.mrf.mxu0 }
 0x1c8   : > { %v873_v54 = vadd.f32 %v821_v22, %v621_v11 }
 0x1c9   : > { %v572_v43 = vpop.f32.mrf.mxu1  ;;  %v999_v7 = vpop.f32.mrf.mxu3 }
 0x1ca   : > { %v1051_v61 = vadd.f32 %v999_v7, %v873_v54  ;;  %1906 = vmatmul.f32.gmra.mxu0 %v3904_v12  ;;  %v1286_v43 = vrot.slane %v3508_v38, 2 }
 0x1cc   : > { %v3635_v32 = vadd.f32 %v1189_v52, %v1051_v61  ;;  %1354 = vmatmul.f32.gmra.mxu1 %v3446_v40  ;;  %1532 = vmatmul.f32.gmra.mxu2 %v2757_v59  ;;  %v3680_v59 = vsel %vm664_vm1, %v1284_v36, %v1286_v43 }
 0x1ce   : > { %1722 = vmatmul.f32.gmra.mxu3 %v3457_v31 }
 0x1cf   : > { %v824_v57 = vpop.f32.mrf.mxu2  ;;  %v1192_v6 = vpop.f32.mrf.mxu0 }
 0x1d1   : > { %v1002_v14 = vpop.f32.mrf.mxu3  ;;  %v1310_v62 = vpop.f32.mrf.mxu1 }
 0x1d2   : > { %1909 = vmatmul.f32.gmra.mxu0 %v3494_v55  ;;  %v1406_v18 = vadd.f32 %v1310_v62, %v3905_v49 }
 0x1d4   : > { %1357 = vmatmul.f32.gmra.mxu1 %v3460_v47  ;;  %1535 = vmatmul.f32.gmra.mxu2 %v2758_v15 }
 0x1d6   : > { %1725 = vmatmul.f32.gmra.mxu3 %v3906_v13 }
 0x1d7   : > { %v1488_v40 = vpop.f32.mrf.mxu2  ;;  %v1865_v58 = vpop.f32.mrf.mxu0 }
 0x1d8   : > { %v1584_v16 = vadd.f32 %v1488_v40, %v1406_v18 }
 0x1d9   : > { %v1313_v53 = vpop.f32.mrf.mxu1  ;;  %v1678_v31 = vpop.f32.mrf.mxu3 }
 0x1da   : > { %v1774_v10 = vadd.f32 %v1678_v31, %v1584_v16  ;;  %1912 = vmatmul.f32.gmra.mxu0 %v3907_v63  ;;  %v1407_v44 = vadd.f32 %v1313_v53, %v3908_v39  ;;  %v3690_v16 = vld [vmem:[%s3110_s10 + $0xe0] sm:$0xff] }
 0x1dc   : > { %v1961_v47 = vadd.f32 %v1865_v58, %v1774_v10  ;;  %1360 = vmatmul.f32.gmra.mxu1 %v3904_v12  ;;  %1538 = vmatmul.f32.gmra.mxu2 %v2759_v26 }
 0x1de   : > { %v3655_v4 = vadd.f32 %v3648_v23, %v1961_v47  ;;  %1728 = vmatmul.f32.gmra.mxu3 %v3488_v8 }
 0x1df   : > { %v1491_v56 = vpop.f32.mrf.mxu2  ;;  %v1868_v30 = vpop.f32.mrf.mxu0 }
 0x1e0   : > { %v2511_v0 = vmul.f32 -1.442695, %v3655_v4  ;;  %v1585_v42 = vadd.f32 %v1491_v56, %v1407_v44  ;;  %v1652_v56 = vrot.slane %v3690_v16, 1 }
 0x1e1   : > { %v1316_v29 = vpop.f32.mrf.mxu1  ;;  %v1681_v2 = vpop.f32.mrf.mxu3 }
 0x1e2   : > { %2679 = vpow2.f32 %v2511_v0  ;;  %v1775_v46 = vadd.f32 %v1681_v2, %v1585_v42  ;;  %1915 = vmatmul.f32.gmra.mxu0 %v3529_v27 }
 0x1e4   : > { %v1962_v60 = vadd.f32 %v1868_v30, %v1775_v46  ;;  %1363 = vmatmul.f32.gmra.mxu1 %v3494_v55  ;;  %1541 = vmatmul.f32.gmra.mxu2 %v3473_v45  ;;  %v3911_v45 = vld [vmem:[#allocation25_spill] sm:$0xff] }
 0x1e6   : > { %v3664_v8 = vadd.f32 %v3648_v23, %v1962_v60  ;;  %1731 = vmatmul.f32.gmra.mxu3 %v3909_v48 }
 0x1e7   : > { %v1494_v24 = vpop.f32.mrf.mxu2  ;;  %v1871_v28 = vpop.f32.mrf.mxu0 }
 0x1e8   : > { %v2680_v11 = vpop.eup %2679  ;;  %v2512_v22 = vmul.f32 -1.442695, %v3664_v8  ;;  %v1653_v24 = vsel %vm412_vm0, %v1101_v35, %v1652_v56  ;;  %v1839_v28 = vrot.slane %v3690_v16, 2 }
 0x1e9   : > { %v2093_v52 = vadd.f32 1.0, %v2680_v11  ;;  %v1319_v54 = vpop.f32.mrf.mxu1  ;;  %v1684_v55 = vpop.f32.mrf.mxu3 }
 0x1ea   : > { %2681 = vpow2.f32 %v2512_v22  ;;  %1918 = vmatmul.f32.gmra.mxu0 %v3670_v51  ;;  %v1409_v7 = vadd.f32 %v1319_v54, %v3911_v45  ;;  %v3712_v22 = vld [vmem:[%s3110_s10 + $0xe8] sm:$0xff] }
 0x1eb   : > { %2683 = vrcp.f32 %v2093_v52  ;;  %v2118_v53 = vand.u32 2147483647, %v2093_v52  ;;  %v2120_v31 = vand.u32 2147483648, %v2093_v52  ;;  %vm2114_vm3 = vweird.f32 %v2093_v52 }
 0x1ec   : > { %1366 = vmatmul.f32.gmra.mxu1 %v3907_v63  ;;  %1544 = vmatmul.f32.gmra.mxu2 %v3491_v33  ;;  %v3912_v33 = vld [vmem:[#allocation29_spill] sm:$0xff]  ;;  %v3913_v63 = vld [vmem:[#allocation26_spill] sm:$0xff] }
 0x1ed   : > { %v2121_v29 = vor.u32 1.1754944e-38, %v2120_v31  ;;  %vm2119_vm5 = vcmp.eq.f32.partialorder %v2118_v53, 8.507059e+37 }
 0x1ee   : > { %1734 = vmatmul.f32.gmra.mxu3 %v3521_v34  ;;  %v1288_v34 = vrot.slane %v3912_v33, 2 }
 0x1ef   : > { %v1497_v61 = vpop.f32.mrf.mxu2  ;;  %v1874_v12 = vpop.f32.mrf.mxu0 }
 0x1f0   : > { %v2682_v57 = vpop.eup %2681  ;;  %v1587_v6 = vadd.f32 %v1497_v61, %v1409_v7  ;;  %v1840_v7 = vsel %vm664_vm1, %v1288_v34, %v1839_v28 }
 0x1f1   : > { %v2684_v14 = vpop.eup %2683  ;;  %v3682_v62 = vadd.f32 1.0, %v2682_v57  ;;  %v1322_v15 = vpop.f32.mrf.mxu1 }
 0x1f2   : > { %v1687_v49 = vpop.f32.mrf.mxu3  ;;  %v2110_v18 = vmul.f32 %v2684_v14, %v2093_v52  ;;  %1921 = vmatmul.f32.gmra.mxu0 %v3680_v59  ;;  %vm2115_vm2 = vweird.f32 %v2684_v14  ;;  %v1410_v47 = vadd.f32 %v1322_v15, %v3913_v63 }
 0x1f3   : > { %v1777_v13 = vadd.f32 %v1687_v49, %v1587_v6  ;;  %2685 = vrcp.f32 %v3682_v62  ;;  %vm2116_vm4 = vmor %vm2114_vm3, %vm2115_vm2  ;;  %v2135_v52 = vand.u32 2147483648, %v3682_v62  ;;  %vm2129_vm7 = vweird.f32 %v3682_v62 }
 0x1f4   : > { %v2111_v40 = vsub.f32 1.0, %v2110_v18  ;;  %1369 = vmatmul.f32.gmra.mxu1 %v3529_v27  ;;  %1547 = vmatmul.f32.gmra.mxu2 %v3508_v38  ;;  %v3699_v27 = vsel %vm664_vm1, %v1286_v43, %v1288_v34  ;;  %v2133_v43 = vand.u32 2147483647, %v3682_v62  ;;  %v1841_v34 = vrot.slane %v3712_v22, 2 }
 0x1f5   : > { %v1964_v58 = vadd.f32 %v1874_v12, %v1777_v13  ;;  %v2136_v57 = vor.u32 1.1754944e-38, %v2135_v52 }
 0x1f6   : > { %v2112_v10 = vmul.f32 %v2684_v14, %v2111_v40  ;;  %1737 = vmatmul.f32.gmra.mxu3 %v3542_v20  ;;  %vm2134_vm9 = vcmp.eq.f32.partialorder %v2133_v43, 8.507059e+37 }
 0x1f7   : > { %v3694_v26 = vadd.f32 %v3648_v23, %v1964_v58  ;;  %v1500_v39 = vpop.f32.mrf.mxu2  ;;  %v1877_v44 = vpop.f32.mrf.mxu0 }
 0x1f8   : > { %v2113_v38 = vadd.f32 %v2684_v14, %v2112_v10  ;;  %v1588_v0 = vadd.f32 %v1500_v39, %v1410_v47  ;;  %v1842_v10 = vsel %vm664_vm1, %v1839_v28, %v1841_v34 }
 0x1f9   : > { %v2513_v30 = vmul.f32 -1.442695, %v3694_v26  ;;  %v2686_v42 = vpop.eup %2685  ;;  %v1325_v2 = vpop.f32.mrf.mxu1 }
 0x1fa   : > { %v1690_v46 = vpop.f32.mrf.mxu3  ;;  %v2117_v36 = vsel %vm2116_vm4, %v2684_v14, %v2113_v38  ;;  %v2125_v20 = vmul.f32 %v2686_v42, %v3682_v62  ;;  %1924 = vmatmul.f32.gmra.mxu0 %v3699_v27  ;;  %vm2130_vm6 = vweird.f32 %v2686_v42  ;;  %v3914_v62 = vld [vmem:[#allocation30_spill] sm:$0xff] }
 0x1fb   : > { %2687 = vpow2.f32 %v2513_v30  ;;  %v2122_v60 = vsel %vm2119_vm5, %v2121_v29, %v2117_v36  ;;  %v1778_v48 = vadd.f32 %v1690_v46, %v1588_v0  ;;  %vm2131_vm8 = vmor %vm2129_vm7, %vm2130_vm6 }
 0x1fc   : > { %v2349_v17 = vmul.f32 %v2122_v60, %v3655_v4  ;;  %v2126_v11 = vsub.f32 1.0, %v2125_v20  ;;  %1372 = vmatmul.f32.gmra.mxu1 %v3670_v51  ;;  %1550 = vmatmul.f32.gmra.mxu2 %v3912_v33  ;;  %v1654_v51 = vrot.slane %v3712_v22, 1 }
 0x1fd   : > { %v1965_v54 = vadd.f32 %v1877_v44, %v1778_v48 }
 0x1fe   : > { %2365 = vst [vmem:[%s3108_s21] sm:$0xff] %v2349_v17  ;;  %v2127_v55 = vmul.f32 %v2686_v42, %v2126_v11  ;;  %1740 = vmatmul.f32.gmra.mxu3 %v1653_v24  ;;  %v1655_v33 = vsel %vm412_vm0, %v1652_v56, %v1654_v51 }
 0x1ff   : > { %v3718_v35 = vadd.f32 %v3648_v23, %v1965_v54  ;;  %v1503_v4 = vpop.f32.mrf.mxu2  ;;  %v1880_v45 = vpop.f32.mrf.mxu0 }
 0x200   : > { %v2128_v12 = vadd.f32 %v2686_v42, %v2127_v55 }
 0x201   : > { %v2688_v61 = vpop.eup %2687  ;;  %v2514_v14 = vmul.f32 -1.442695, %v3718_v35  ;;  %v1328_v15 = vpop.f32.mrf.mxu1 }
 0x202   : > { %v2095_v6 = vadd.f32 1.0, %v2688_v61  ;;  %v1693_v49 = vpop.f32.mrf.mxu3  ;;  %v2132_v18 = vsel %vm2131_vm8, %v2686_v42, %v2128_v12  ;;  %1927 = vmatmul.f32.gmra.mxu0 %v1840_v7  ;;  %v1412_v58 = vadd.f32 %v1328_v15, %v3914_v62 }
 0x203   : > { %v2137_v13 = vsel %vm2134_vm9, %v2136_v57, %v2132_v18 }
 0x204   : > { %2689 = vrcp.f32 %v2095_v6  ;;  %v2350_v40 = vmul.f32 %v2137_v13, %v3664_v8  ;;  %1375 = vmatmul.f32.gmra.mxu1 %v3680_v59  ;;  %1553 = vmatmul.f32.gmra.mxu2 %v3690_v16  ;;  %v240_v59 = vld [vmem:[%s3110_s10 + $0xf0] sm:$0xff]  ;;  %v2148_v29 = vand.u32 2147483647, %v2095_v6  ;;  %v2150_v2 = vand.u32 2147483648, %v2095_v6 }
 0x205   : > { %2691 = vpow2.f32 %v2514_v14  ;;  %v1656_v0 = vrot.slane %v240_v59, 1  ;;  %vm2144_vm11 = vweird.f32 %v2095_v6 }
 0x206   : > { %2366 = vst [vmem:[%s3108_s21 + $0x8] sm:$0xff] %v2350_v40  ;;  %1743 = vmatmul.f32.gmra.mxu3 %v1655_v33  ;;  %v2151_v11 = vor.u32 1.1754944e-38, %v2150_v2  ;;  %vm2149_vm13 = vcmp.eq.f32.partialorder %v2148_v29, 8.507059e+37 }
 0x207   : > { %v1506_v53 = vpop.f32.mrf.mxu2  ;;  %v1883_v31 = vpop.f32.mrf.mxu0  ;;  %v1657_v60 = vsel %vm412_vm0, %v1654_v51, %v1656_v0 }
 0x208   : > { %v1590_v63 = vadd.f32 %v1506_v53, %v1412_v58 }
 0x209   : > { %v1331_v39 = vpop.f32.mrf.mxu1 }
 0x20a   : > { %v2690_v47 = vpop.eup %2689  ;;  %v1696_v44 = vpop.f32.mrf.mxu3  ;;  %1930 = vmatmul.f32.gmra.mxu0 %v1842_v10  ;;  %v1413_v36 = vadd.f32 %v1331_v39, %v3545_v41  ;;  %v1843_v41 = vrot.slane %v240_v59, 2 }
 0x20b   : > { %v2692_v56 = vpop.eup %2691  ;;  %v2140_v8 = vmul.f32 %v2690_v47, %v2095_v6  ;;  %v1780_v38 = vadd.f32 %v1696_v44, %v1590_v63  ;;  %vm2145_vm10 = vweird.f32 %v2690_v47 }
 0x20c   : > { %v2096_v30 = vadd.f32 1.0, %v2692_v56  ;;  %1556 = vmatmul.f32.gmra.mxu2 %v3712_v22  ;;  %1378 = vmatmul.f32.gmra.mxu1 %v3699_v27  ;;  %vm2146_vm12 = vmor %vm2144_vm11, %vm2145_vm10  ;;  %v1844_v45 = vsel %vm664_vm1, %v1841_v34, %v1843_v41 }
 0x20d   : > { %v2141_v16 = vsub.f32 1.0, %v2140_v8  ;;  %v1967_v42 = vadd.f32 %v1883_v31, %v1780_v38 }
 0x20e   : > { %2693 = vrcp.f32 %v2096_v30  ;;  %1746 = vmatmul.f32.gmra.mxu3 %v1657_v60  ;;  %v2165_v6 = vand.u32 2147483648, %v2096_v30  ;;  %v2163_v13 = vand.u32 2147483647, %v2096_v30  ;;  %vm2159_vm15 = vweird.f32 %v2096_v30 }
 0x20f   : > { %v2142_v46 = vmul.f32 %v2690_v47, %v2141_v16  ;;  %v3737_v20 = vadd.f32 %v3648_v23, %v1967_v42  ;;  %v1509_v48 = vpop.f32.mrf.mxu2  ;;  %v1886_v24 = vpop.f32.mrf.mxu0 }
 0x210   : > { %v1591_v27 = vadd.f32 %v1509_v48, %v1413_v36  ;;  %v2166_v58 = vor.u32 1.1754944e-38, %v2165_v6  ;;  %vm2164_vm1 = vcmp.eq.f32.partialorder %v2163_v13, 8.507059e+37 }
 0x211   : > { %v2143_v28 = vadd.f32 %v2690_v47, %v2142_v46  ;;  %v2515_v17 = vmul.f32 -1.442695, %v3737_v20  ;;  %v1334_v22 = vpop.f32.mrf.mxu1 }
 0x212   : > { %v1699_v52 = vpop.f32.mrf.mxu3  ;;  %1933 = vmatmul.f32.gmra.mxu0 %v1844_v45 }
 0x213   : > { %v2147_v54 = vsel %vm2146_vm12, %v2690_v47, %v2143_v28  ;;  %2695 = vpow2.f32 %v2515_v17  ;;  %v1781_v55 = vadd.f32 %v1699_v52, %v1591_v27 }
 0x214   : > { %v2694_v43 = vpop.eup %2693  ;;  %v2152_v4 = vsel %vm2149_vm13, %v2151_v11, %v2147_v54 }
 0x215   : > { %v2351_v51 = vmul.f32 %v2152_v4, %v3694_v26  ;;  %v2155_v7 = vmul.f32 %v2694_v43, %v2096_v30  ;;  %v1968_v61 = vadd.f32 %v1886_v24, %v1781_v55  ;;  %vm2160_vm14 = vweird.f32 %v2694_v43 }
 0x216   : > { %vm2161_vm0 = vmor %vm2159_vm15, %vm2160_vm14 }
 0x217   : > { %2367 = vst [vmem:[%s3108_s21 + $0x10] sm:$0xff] %v2351_v51  ;;  %v2156_v12 = vsub.f32 1.0, %v2155_v7  ;;  %v3746_v57 = vadd.f32 %v3648_v23, %v1968_v61  ;;  %v1512_v14 = vpop.f32.mrf.mxu2  ;;  %v1889_v15 = vpop.f32.mrf.mxu0 }
 0x219   : > { %v2696_v49 = vpop.eup %2695  ;;  %v2157_v18 = vmul.f32 %v2694_v43, %v2156_v12  ;;  %v2516_v33 = vmul.f32 -1.442695, %v3746_v57  ;;  %v1337_v40 = vpop.f32.mrf.mxu1 }
 0x21a   : > { %v2097_v34 = vadd.f32 1.0, %v2696_v49  ;;  %v1702_v26 = vpop.f32.mrf.mxu3  ;;  %v1415_v63 = vadd.f32 %v1337_v40, %v3556_v50 }
 0x21b   : > { %v2158_v62 = vadd.f32 %v2694_v43, %v2157_v18  ;;  %2697 = vpow2.f32 %v2516_v33 }
 0x21c   : > { %2699 = vrcp.f32 %v2097_v34  ;;  %v2178_v2 = vand.u32 2147483647, %v2097_v34  ;;  %v2180_v46 = vand.u32 2147483648, %v2097_v34  ;;  %vm2174_vm3 = vweird.f32 %v2097_v34 }
 0x21d   : > { %v2162_v53 = vsel %vm2161_vm0, %v2694_v43, %v2158_v62 }
 0x21e   : > { %v2167_v31 = vsel %vm2164_vm1, %v2166_v58, %v2162_v53  ;;  %v2181_v11 = vor.u32 1.1754944e-38, %v2180_v46  ;;  %vm2179_vm5 = vcmp.eq.f32.partialorder %v2178_v2, 8.507059e+37 }
 0x21f   : > { %v2352_v10 = vmul.f32 %v2167_v31, %v3718_v35  ;;  %v1515_v47 = vpop.f32.mrf.mxu2  ;;  %v1892_v39 = vpop.f32.mrf.mxu0 }
 0x220   : > { %v1593_v56 = vadd.f32 %v1515_v47, %v1415_v63 }
 0x221   : > { %v2698_v44 = vpop.eup %2697  ;;  %2368 = vst [vmem:[%s3108_s21 + $0x18] sm:$0xff] %v2352_v10  ;;  %v1340_v59 = vpop.f32.mrf.mxu1 }
 0x222   : > { %v2700_v8 = vpop.eup %2699  ;;  %v2098_v38 = vadd.f32 1.0, %v2698_v44  ;;  %v1705_v30 = vpop.f32.mrf.mxu3  ;;  %v1416_v50 = vadd.f32 %v1340_v59, %v3563_v21 }
 0x223   : > { %v2170_v0 = vmul.f32 %v2700_v8, %v2097_v34  ;;  %v1783_v16 = vadd.f32 %v1705_v30, %v1593_v56  ;;  %vm2175_vm2 = vweird.f32 %v2700_v8 }
 0x224   : > { %2701 = vrcp.f32 %v2098_v38  ;;  %vm2176_vm4 = vmor %vm2174_vm3, %vm2175_vm2  ;;  %v2195_v45 = vand.u32 2147483648, %v2098_v38  ;;  %v2193_v61 = vand.u32 2147483647, %v2098_v38  ;;  %vm2189_vm7 = vweird.f32 %v2098_v38 }
 0x225   : > { %v2171_v42 = vsub.f32 1.0, %v2170_v0  ;;  %v1970_v29 = vadd.f32 %v1892_v39, %v1783_v16 }
 0x226   : > { %v2196_v18 = vor.u32 1.1754944e-38, %v2195_v45  ;;  %vm2194_vm9 = vcmp.eq.f32.partialorder %v2193_v61, 8.507059e+37 }
 0x227   : > { %v2172_v36 = vmul.f32 %v2700_v8, %v2171_v42  ;;  %v3754_v35 = vadd.f32 %v3648_v23, %v1970_v29  ;;  %v1518_v60 = vpop.f32.mrf.mxu2  ;;  %v1895_v48 = vpop.f32.mrf.mxu0 }
 0x228   : > { %v1594_v17 = vadd.f32 %v1518_v60, %v1416_v50 }
 0x229   : > { %v2173_v24 = vadd.f32 %v2700_v8, %v2172_v36  ;;  %v2517_v28 = vmul.f32 -1.442695, %v3754_v35  ;;  %v1343_v22 = vpop.f32.mrf.mxu1 }
 0x22a   : > { %v2702_v27 = vpop.eup %2701  ;;  %v1708_v52 = vpop.f32.mrf.mxu3 }
 0x22b   : > { %v2177_v41 = vsel %vm2176_vm4, %v2700_v8, %v2173_v24  ;;  %v2185_v54 = vmul.f32 %v2702_v27, %v2098_v38  ;;  %2703 = vpow2.f32 %v2517_v28  ;;  %v1784_v55 = vadd.f32 %v1708_v52, %v1594_v17 }
 0x22c   : > { %v2182_v21 = vsel %vm2179_vm5, %v2181_v11, %v2177_v41  ;;  %vm2190_vm6 = vweird.f32 %v2702_v27 }
 0x22d   : > { %v2353_v43 = vmul.f32 %v2182_v21, %v3737_v20  ;;  %v2186_v4 = vsub.f32 1.0, %v2185_v54  ;;  %v1971_v51 = vadd.f32 %v1895_v48, %v1784_v55  ;;  %vm2191_vm8 = vmor %vm2189_vm7, %vm2190_vm6 }
 0x22f   : > { %2369 = vst [vmem:[%s3108_s21 + $0x20] sm:$0xff] %v2353_v43  ;;  %v2187_v7 = vmul.f32 %v2702_v27, %v2186_v4  ;;  %v3760_v12 = vadd.f32 %v3648_v23, %v1971_v51  ;;  %v1521_v6 = vpop.f32.mrf.mxu2  ;;  %v1898_v14 = vpop.f32.mrf.mxu0 }
 0x231   : > { %v2704_v15 = vpop.eup %2703  ;;  %v2188_v49 = vadd.f32 %v2702_v27, %v2187_v7  ;;  %v2518_v20 = vmul.f32 -1.442695, %v3760_v12  ;;  %v1346_v33 = vpop.f32.mrf.mxu1 }
 0x232   : > { %v2099_v13 = vadd.f32 1.0, %v2704_v15  ;;  %v1711_v34 = vpop.f32.mrf.mxu3  ;;  %v1418_v58 = vadd.f32 %v1346_v33, %v3574_v9 }
 0x233   : > { %v2192_v40 = vsel %vm2191_vm8, %v2702_v27, %v2188_v49 }
 0x234   : > { %v2197_v26 = vsel %vm2194_vm9, %v2196_v18, %v2192_v40  ;;  %2705 = vrcp.f32 %v2099_v13  ;;  %v2208_v0 = vand.u32 2147483647, %v2099_v13  ;;  %v2210_v16 = vand.u32 2147483648, %v2099_v13 }
 0x235   : > { %v2354_v62 = vmul.f32 %v2197_v26, %v3746_v57  ;;  %2707 = vpow2.f32 %v2518_v20  ;;  %vm2204_vm11 = vweird.f32 %v2099_v13 }
 0x236   : > { %v2211_v60 = vor.u32 1.1754944e-38, %v2210_v16  ;;  %vm2209_vm13 = vcmp.eq.f32.partialorder %v2208_v0, 8.507059e+37 }
 0x237   : > { %2370 = vst [vmem:[%s3108_s21 + $0x28] sm:$0xff] %v2354_v62  ;;  %v1524_v53 = vpop.f32.mrf.mxu2  ;;  %v1901_v31 = vpop.f32.mrf.mxu0 }
 0x238   : > { %v1596_v10 = vadd.f32 %v1524_v53, %v1418_v58 }
 0x239   : > { %v1349_v47 = vpop.f32.mrf.mxu1 }
 0x23a   : > { %v2706_v63 = vpop.eup %2705  ;;  %v1714_v39 = vpop.f32.mrf.mxu3  ;;  %v1419_v42 = vadd.f32 %v1349_v47, %v3581_v3 }
 0x23b   : > { %v2708_v44 = vpop.eup %2707  ;;  %v2200_v56 = vmul.f32 %v2706_v63, %v2099_v13  ;;  %v1786_v8 = vadd.f32 %v1714_v39, %v1596_v10  ;;  %vm2205_vm10 = vweird.f32 %v2706_v63 }
 0x23c   : > { %v2100_v38 = vadd.f32 1.0, %v2708_v44  ;;  %vm2206_vm12 = vmor %vm2204_vm11, %vm2205_vm10 }
 0x23d   : > { %v2201_v59 = vsub.f32 1.0, %v2200_v56  ;;  %v1973_v30 = vadd.f32 %v1901_v31, %v1786_v8 }
 0x23e   : > { %2709 = vrcp.f32 %v2100_v38  ;;  %v2225_v21 = vand.u32 2147483648, %v2100_v38  ;;  %v2223_v51 = vand.u32 2147483647, %v2100_v38  ;;  %vm2219_vm15 = vweird.f32 %v2100_v38 }
 0x23f   : > { %v2202_v57 = vmul.f32 %v2706_v63, %v2201_v59  ;;  %v3768_v9 = vadd.f32 %v3648_v23, %v1973_v30  ;;  %v1527_v29 = vpop.f32.mrf.mxu2  ;;  %v1904_v2 = vpop.f32.mrf.mxu0 }
 0x240   : > { %v1597_v50 = vadd.f32 %v1527_v29, %v1419_v42  ;;  %v2226_v15 = vor.u32 1.1754944e-38, %v2225_v21  ;;  %vm2224_vm1 = vcmp.eq.f32.partialorder %v2223_v51, 8.507059e+37 }
 0x241   : > { %v2203_v46 = vadd.f32 %v2706_v63, %v2202_v57  ;;  %v2519_v36 = vmul.f32 -1.442695, %v3768_v9  ;;  %v1352_v48 = vpop.f32.mrf.mxu1 }
 0x242   : > { %v1717_v24 = vpop.f32.mrf.mxu3 }
 0x243   : > { %v2207_v28 = vsel %vm2206_vm12, %v2706_v63, %v2203_v46  ;;  %2711 = vpow2.f32 %v2519_v36  ;;  %v1787_v17 = vadd.f32 %v1717_v24, %v1597_v50 }
 0x244   : > { %v2710_v3 = vpop.eup %2709  ;;  %v2212_v27 = vsel %vm2209_vm13, %v2211_v60, %v2207_v28 }
 0x245   : > { %v2355_v11 = vmul.f32 %v2212_v27, %v3754_v35  ;;  %v2215_v22 = vmul.f32 %v2710_v3, %v2100_v38  ;;  %v1974_v52 = vadd.f32 %v1904_v2, %v1787_v17  ;;  %vm2220_vm14 = vweird.f32 %v2710_v3 }
 0x246   : > { %vm2221_vm0 = vmor %vm2219_vm15, %vm2220_vm14 }
 0x247   : > { %2371 = vst [vmem:[%s3108_s21 + $0x30] sm:$0xff] %v2355_v11  ;;  %v2216_v41 = vsub.f32 1.0, %v2215_v22  ;;  %v3774_v54 = vadd.f32 %v3648_v23, %v1974_v52  ;;  %v1530_v55 = vpop.f32.mrf.mxu2  ;;  %v1907_v43 = vpop.f32.mrf.mxu0 }
 0x249   : > { %v2712_v4 = vpop.eup %2711  ;;  %v2217_v45 = vmul.f32 %v2710_v3, %v2216_v41  ;;  %v2520_v7 = vmul.f32 -1.442695, %v3774_v54  ;;  %v1355_v6 = vpop.f32.mrf.mxu1 }
 0x24a   : > { %v2101_v61 = vadd.f32 1.0, %v2712_v4  ;;  %v1720_v35 = vpop.f32.mrf.mxu3  ;;  %v1421_v20 = vadd.f32 %v1355_v6, %v3592_v19 }
 0x24b   : > { %v2218_v14 = vadd.f32 %v2710_v3, %v2217_v45  ;;  %2713 = vpow2.f32 %v2520_v7 }
 0x24c   : > { %2715 = vrcp.f32 %v2101_v61  ;;  %v2238_v44 = vand.u32 2147483647, %v2101_v61  ;;  %v2240_v56 = vand.u32 2147483648, %v2101_v61  ;;  %vm2234_vm3 = vweird.f32 %v2101_v61 }
 0x24d   : > { %v2222_v49 = vsel %vm2221_vm0, %v2710_v3, %v2218_v14 }
 0x24e   : > { %v2227_v18 = vsel %vm2224_vm1, %v2226_v15, %v2222_v49  ;;  %v2241_v42 = vor.u32 1.1754944e-38, %v2240_v56  ;;  %vm2239_vm5 = vcmp.eq.f32.partialorder %v2238_v44, 8.507059e+37 }
 0x24f   : > { %v2356_v13 = vmul.f32 %v2227_v18, %v3760_v12  ;;  %v1533_v33 = vpop.f32.mrf.mxu2  ;;  %v1910_v34 = vpop.f32.mrf.mxu0 }
 0x250   : > { %v1599_v26 = vadd.f32 %v1533_v33, %v1421_v20 }
 0x251   : > { %v2714_v40 = vpop.eup %2713  ;;  %2372 = vst [vmem:[%s3108_s21 + $0x38] sm:$0xff] %v2356_v13  ;;  %v1358_v53 = vpop.f32.mrf.mxu1 }
 0x252   : > { %v2716_v62 = vpop.eup %2715  ;;  %v2102_v58 = vadd.f32 1.0, %v2714_v40  ;;  %v1723_v31 = vpop.f32.mrf.mxu3  ;;  %v1422_v19 = vadd.f32 %v1358_v53, %v3599_v5 }
 0x253   : > { %v2230_v10 = vmul.f32 %v2716_v62, %v2101_v61  ;;  %v1789_v63 = vadd.f32 %v1723_v31, %v1599_v26  ;;  %vm2235_vm2 = vweird.f32 %v2716_v62 }
 0x254   : > { %2717 = vrcp.f32 %v2102_v58  ;;  %vm2236_vm4 = vmor %vm2234_vm3, %vm2235_vm2  ;;  %v2255_v24 = vand.u32 2147483648, %v2102_v58  ;;  %v2253_v3 = vand.u32 2147483647, %v2102_v58  ;;  %vm2249_vm7 = vweird.f32 %v2102_v58 }
 0x255   : > { %v2231_v47 = vsub.f32 1.0, %v2230_v10  ;;  %v1976_v39 = vadd.f32 %v1910_v34, %v1789_v63 }
 0x256   : > { %v2256_v21 = vor.u32 1.1754944e-38, %v2255_v24  ;;  %vm2254_vm9 = vcmp.eq.f32.partialorder %v2253_v3, 8.507059e+37 }
 0x257   : > { %v2232_v8 = vmul.f32 %v2716_v62, %v2231_v47  ;;  %v3782_v12 = vadd.f32 %v3648_v23, %v1976_v39  ;;  %v1536_v38 = vpop.f32.mrf.mxu2  ;;  %v1913_v59 = vpop.f32.mrf.mxu0 }
 0x258   : > { %v1600_v16 = vadd.f32 %v1536_v38, %v1422_v19 }
 0x259   : > { %v2233_v30 = vadd.f32 %v2716_v62, %v2232_v8  ;;  %v2521_v0 = vmul.f32 -1.442695, %v3782_v12  ;;  %v1361_v29 = vpop.f32.mrf.mxu1 }
 0x25a   : > { %v2718_v57 = vpop.eup %2717  ;;  %v1726_v2 = vpop.f32.mrf.mxu3 }
 0x25b   : > { %v2237_v46 = vsel %vm2236_vm4, %v2716_v62, %v2233_v30  ;;  %v2245_v36 = vmul.f32 %v2718_v57, %v2102_v58  ;;  %2719 = vpow2.f32 %v2521_v0  ;;  %v1790_v50 = vadd.f32 %v1726_v2, %v1600_v16 }
 0x25c   : > { %v2242_v5 = vsel %vm2239_vm5, %v2241_v42, %v2237_v46  ;;  %vm2250_vm6 = vweird.f32 %v2718_v57 }
 0x25d   : > { %v2357_v60 = vmul.f32 %v2242_v5, %v3768_v9  ;;  %v2246_v48 = vsub.f32 1.0, %v2245_v36  ;;  %v1977_v28 = vadd.f32 %v1913_v59, %v1790_v50  ;;  %vm2251_vm8 = vmor %vm2249_vm7, %vm2250_vm6 }
 0x25f   : > { %2373 = vst [vmem:[%s3108_s21 + $0x40] sm:$0xff] %v2357_v60  ;;  %v2247_v17 = vmul.f32 %v2718_v57, %v2246_v48  ;;  %v3788_v27 = vadd.f32 %v3648_v23, %v1977_v28  ;;  %v1539_v11 = vpop.f32.mrf.mxu2  ;;  %v1916_v22 = vpop.f32.mrf.mxu0 }
 0x261   : > { %v2720_v52 = vpop.eup %2719  ;;  %v2248_v41 = vadd.f32 %v2718_v57, %v2247_v17  ;;  %v2522_v9 = vmul.f32 -1.442695, %v3788_v27  ;;  %v1364_v43 = vpop.f32.mrf.mxu1 }
 0x262   : > { %v2103_v55 = vadd.f32 1.0, %v2720_v52  ;;  %v1729_v4 = vpop.f32.mrf.mxu3  ;;  %v1424_v61 = vadd.f32 %v1364_v43, %v3610_v37 }
 0x263   : > { %v2252_v45 = vsel %vm2251_vm8, %v2718_v57, %v2248_v41 }
 0x264   : > { %v2257_v51 = vsel %vm2254_vm9, %v2256_v21, %v2252_v45  ;;  %2721 = vrcp.f32 %v2103_v55  ;;  %v2268_v62 = vand.u32 2147483647, %v2103_v55  ;;  %v2270_v58 = vand.u32 2147483648, %v2103_v55 }
 0x265   : > { %v2358_v7 = vmul.f32 %v2257_v51, %v3774_v54  ;;  %2723 = vpow2.f32 %v2522_v9  ;;  %vm2264_vm11 = vweird.f32 %v2103_v55 }
 0x266   : > { %v2271_v44 = vor.u32 1.1754944e-38, %v2270_v58  ;;  %vm2269_vm13 = vcmp.eq.f32.partialorder %v2268_v62, 8.507059e+37 }
 0x267   : > { %2374 = vst [vmem:[%s3108_s21 + $0x48] sm:$0xff] %v2358_v7  ;;  %v1542_v6 = vpop.f32.mrf.mxu2  ;;  %v1919_v35 = vpop.f32.mrf.mxu0 }
 0x268   : > { %v1602_v14 = vadd.f32 %v1542_v6, %v1424_v61 }
 0x269   : > { %v1367_v49 = vpop.f32.mrf.mxu1 }
 0x26a   : > { %v2722_v15 = vpop.eup %2721  ;;  %v1732_v18 = vpop.f32.mrf.mxu3  ;;  %v1425_v53 = vadd.f32 %v1367_v49, %v3617_v25 }
 0x26b   : > { %v2724_v13 = vpop.eup %2723  ;;  %v2260_v20 = vmul.f32 %v2722_v15, %v2103_v55  ;;  %v1792_v33 = vadd.f32 %v1732_v18, %v1602_v14  ;;  %vm2265_vm10 = vweird.f32 %v2722_v15 }
 0x26c   : > { %v2104_v34 = vadd.f32 1.0, %v2724_v13  ;;  %vm2266_vm12 = vmor %vm2264_vm11, %vm2265_vm10 }
 0x26d   : > { %v2261_v40 = vsub.f32 1.0, %v2260_v20  ;;  %v1979_v26 = vadd.f32 %v1919_v35, %v1792_v33 }
 0x26e   : > { %2725 = vrcp.f32 %v2104_v34  ;;  %v2285_v29 = vand.u32 2147483648, %v2104_v34  ;;  %v2283_v50 = vand.u32 2147483647, %v2104_v34  ;;  %vm2279_vm15 = vweird.f32 %v2104_v34 }
 0x26f   : > { %v2262_v54 = vmul.f32 %v2722_v15, %v2261_v40  ;;  %v3796_v37 = vadd.f32 %v3648_v23, %v1979_v26  ;;  %v1545_v31 = vpop.f32.mrf.mxu2  ;;  %v1922_v10 = vpop.f32.mrf.mxu0 }
 0x270   : > { %v1603_v39 = vadd.f32 %v1545_v31, %v1425_v53  ;;  %v2286_v17 = vor.u32 1.1754944e-38, %v2285_v29  ;;  %vm2284_vm1 = vcmp.eq.f32.partialorder %v2283_v50, 8.507059e+37 }
 0x271   : > { %v2263_v63 = vadd.f32 %v2722_v15, %v2262_v54  ;;  %v2523_v47 = vmul.f32 -1.442695, %v3796_v37  ;;  %v1370_v56 = vpop.f32.mrf.mxu1 }
 0x272   : > { %v1735_v8 = vpop.f32.mrf.mxu3 }
 0x273   : > { %v2267_v19 = vsel %vm2266_vm12, %v2722_v15, %v2263_v63  ;;  %2727 = vpow2.f32 %v2523_v47  ;;  %v1793_v38 = vadd.f32 %v1735_v8, %v1603_v39 }
 0x274   : > { %v2726_v25 = vpop.eup %2725  ;;  %v2272_v59 = vsel %vm2269_vm13, %v2271_v44, %v2267_v19 }
 0x275   : > { %v2359_v30 = vmul.f32 %v2272_v59, %v3782_v12  ;;  %v2275_v0 = vmul.f32 %v2726_v25, %v2104_v34  ;;  %v1980_v16 = vadd.f32 %v1922_v10, %v1793_v38  ;;  %vm2280_vm14 = vweird.f32 %v2726_v25 }
 0x276   : > { %vm2281_vm0 = vmor %vm2279_vm15, %vm2280_vm14 }
 0x277   : > { %2375 = vst [vmem:[%s3108_s21 + $0x50] sm:$0xff] %v2359_v30  ;;  %v2276_v57 = vsub.f32 1.0, %v2275_v0  ;;  %v3802_v42 = vadd.f32 %v3648_v23, %v1980_v16  ;;  %v1548_v2 = vpop.f32.mrf.mxu2  ;;  %v1925_v46 = vpop.f32.mrf.mxu0 }
 0x279   : > { %v2728_v36 = vpop.eup %2727  ;;  %v2277_v5 = vmul.f32 %v2726_v25, %v2276_v57  ;;  %v2524_v60 = vmul.f32 -1.442695, %v3802_v42  ;;  %v1373_v24 = vpop.f32.mrf.mxu1 }
 0x27a   : > { %v2105_v48 = vadd.f32 1.0, %v2728_v36  ;;  %v1738_v12 = vpop.f32.mrf.mxu3  ;;  %v1427_v52 = vadd.f32 %v1373_v24, %v3628_v1 }
 0x27b   : > { %v2278_v28 = vadd.f32 %v2726_v25, %v2277_v5  ;;  %2729 = vpow2.f32 %v2524_v60 }
 0x27c   : > { %2731 = vrcp.f32 %v2105_v48  ;;  %v2298_v14 = vand.u32 2147483647, %v2105_v48  ;;  %v2300_v15 = vand.u32 2147483648, %v2105_v48  ;;  %vm2294_vm3 = vweird.f32 %v2105_v48 }
 0x27d   : > { %v2282_v3 = vsel %vm2281_vm0, %v2726_v25, %v2278_v28 }
 0x27e   : > { %v2287_v11 = vsel %vm2284_vm1, %v2286_v17, %v2282_v3  ;;  %v2301_v26 = vor.u32 1.1754944e-38, %v2300_v15  ;;  %vm2299_vm5 = vcmp.eq.f32.partialorder %v2298_v14, 8.507059e+37 }
 0x27f   : > { %v2360_v22 = vmul.f32 %v2287_v11, %v3788_v27  ;;  %v1551_v41 = vpop.f32.mrf.mxu2  ;;  %v1928_v21 = vpop.f32.mrf.mxu0 }
 0x280   : > { %v1605_v9 = vadd.f32 %v1551_v41, %v1427_v52 }
 0x281   : > { %v2730_v55 = vpop.eup %2729  ;;  %2376 = vst [vmem:[%s3108_s21 + $0x58] sm:$0xff] %v2360_v22  ;;  %v1376_v45 = vpop.f32.mrf.mxu1 }
 0x282   : > { %v2732_v43 = vpop.eup %2731  ;;  %v2106_v4 = vadd.f32 1.0, %v2730_v55  ;;  %v1741_v51 = vpop.f32.mrf.mxu3  ;;  %v1428_v1 = vadd.f32 %v1376_v45, %v3635_v32 }
 0x283   : > { %v2290_v7 = vmul.f32 %v2732_v43, %v2105_v48  ;;  %v1795_v61 = vadd.f32 %v1741_v51, %v1605_v9  ;;  %vm2295_vm2 = vweird.f32 %v2732_v43 }
 0x284   : > { %2733 = vrcp.f32 %v2106_v4  ;;  %vm2296_vm4 = vmor %vm2294_vm3, %vm2295_vm2  ;;  %v2315_v47 = vand.u32 2147483648, %v2106_v4  ;;  %v2313_v56 = vand.u32 2147483647, %v2106_v4  ;;  %vm2309_vm7 = vweird.f32 %v2106_v4 }
 0x285   : > { %v2291_v6 = vsub.f32 1.0, %v2290_v7  ;;  %v1982_v35 = vadd.f32 %v1928_v21, %v1795_v61 }
 0x286   : > { %v2316_v59 = vor.u32 1.1754944e-38, %v2315_v47  ;;  %vm2314_vm9 = vcmp.eq.f32.partialorder %v2313_v56, 8.507059e+37 }
 0x287   : > { %v2292_v49 = vmul.f32 %v2732_v43, %v2291_v6  ;;  %v3810_v27 = vadd.f32 %v3648_v23, %v1982_v35  ;;  %v1554_v18 = vpop.f32.mrf.mxu2  ;;  %v1931_v34 = vpop.f32.mrf.mxu0 }
 0x288   : > { %v1606_v33 = vadd.f32 %v1554_v18, %v1428_v1 }
 0x289   : > { %v2293_v13 = vadd.f32 %v2732_v43, %v2292_v49  ;;  %v2525_v20 = vmul.f32 -1.442695, %v3810_v27  ;;  %v1379_v58 = vpop.f32.mrf.mxu1 }
 0x28a   : > { %v2734_v40 = vpop.eup %2733  ;;  %v1744_v62 = vpop.f32.mrf.mxu3 }
 0x28b   : > { %v2297_v54 = vsel %vm2296_vm4, %v2732_v43, %v2293_v13  ;;  %v2305_v53 = vmul.f32 %v2734_v40, %v2106_v4  ;;  %2735 = vpow2.f32 %v2525_v20  ;;  %v1796_v31 = vadd.f32 %v1744_v62, %v1606_v33 }
 0x28c   : > { %v2302_v32 = vsel %vm2299_vm5, %v2301_v26, %v2297_v54  ;;  %vm2310_vm6 = vweird.f32 %v2734_v40 }
 0x28d   : > { %v2361_v10 = vmul.f32 %v2302_v32, %v3796_v37  ;;  %v2306_v63 = vsub.f32 1.0, %v2305_v53  ;;  %v1983_v39 = vadd.f32 %v1931_v34, %v1796_v31  ;;  %vm2311_vm8 = vmor %vm2309_vm7, %vm2310_vm6 }
 0x28f   : > { %2377 = vst [vmem:[%s3108_s21 + $0x60] sm:$0xff] %v2361_v10  ;;  %v2307_v44 = vmul.f32 %v2734_v40, %v2306_v63  ;;  %v2044_v8 = vadd.f32 %v3648_v23, %v1983_v39  ;;  %v1557_v19 = vpop.f32.mrf.mxu2  ;;  %v1934_v16 = vpop.f32.mrf.mxu0 }
 0x291   : > { %v2736_v38 = vpop.eup %2735  ;;  %v2308_v25 = vadd.f32 %v2734_v40, %v2307_v44  ;;  %v2526_v0 = vmul.f32 -1.442695, %v2044_v8 }
 0x292   : > { %v2107_v30 = vadd.f32 1.0, %v2736_v38  ;;  %v1747_v57 = vpop.f32.mrf.mxu3 }
 0x293   : > { %v2312_v37 = vsel %vm2311_vm8, %v2734_v40, %v2308_v25 }
 0x294   : > { %v2317_v29 = vsel %vm2314_vm9, %v2316_v59, %v2312_v37  ;;  %2737 = vrcp.f32 %v2107_v30  ;;  %v2330_v60 = vand.u32 2147483648, %v2107_v30  ;;  %v2328_v24 = vand.u32 2147483647, %v2107_v30 }
 0x295   : > { %v2362_v2 = vmul.f32 %v2317_v29, %v3802_v42  ;;  %2739 = vpow2.f32 %v2526_v0  ;;  %vm2324_vm11 = vweird.f32 %v2107_v30 }
 0x296   : > { %v2331_v28 = vor.u32 1.1754944e-38, %v2330_v60  ;;  %vm2329_vm13 = vcmp.eq.f32.partialorder %v2328_v24, 8.507059e+37 }
 0x297   : > { %2378 = vst [vmem:[%s3108_s21 + $0x68] sm:$0xff] %v2362_v2 }
 0x29a   : > { %v2738_v23 = vpop.eup %2737 }
 0x29b   : > { %v2740_v46 = vpop.eup %2739  ;;  %v2320_v36 = vmul.f32 %v2738_v23, %v2107_v30  ;;  %vm2325_vm10 = vweird.f32 %v2738_v23 }
 0x29c   : > { %v2108_v5 = vadd.f32 1.0, %v2740_v46  ;;  %vm2326_vm12 = vmor %vm2324_vm11, %vm2325_vm10 }
 0x29d   : > { %v2321_v50 = vsub.f32 1.0, %v2320_v36 }
 0x29e   : > { %2741 = vrcp.f32 %v2108_v5  ;;  %v2345_v41 = vand.u32 2147483648, %v2108_v5  ;;  %v2343_v55 = vand.u32 2147483647, %v2108_v5  ;;  %vm2339_vm15 = vweird.f32 %v2108_v5 }
 0x29f   : > { %v2322_v48 = vmul.f32 %v2738_v23, %v2321_v50 }
 0x2a0   : > { %v2346_v43 = vor.u32 1.1754944e-38, %v2345_v41  ;;  %vm2344_vm1 = vcmp.eq.f32.partialorder %v2343_v55, 8.507059e+37 }
 0x2a1   : > { %v2323_v12 = vadd.f32 %v2738_v23, %v2322_v48 }
 0x2a3   : > { %v2327_v42 = vsel %vm2326_vm12, %v2738_v23, %v2323_v12 }
 0x2a4   : > { %v2742_v17 = vpop.eup %2741  ;;  %v2332_v3 = vsel %vm2329_vm13, %v2331_v28, %v2327_v42 }
 0x2a5   : > { %v2363_v11 = vmul.f32 %v2332_v3, %v3810_v27  ;;  %v2335_v22 = vmul.f32 %v2742_v17, %v2108_v5  ;;  %vm2340_vm14 = vweird.f32 %v2742_v17 }
 0x2a6   : > { %vm2341_vm0 = vmor %vm2339_vm15, %vm2340_vm14 }
 0x2a7   : > { %2379 = vst [vmem:[%s3108_s21 + $0x70] sm:$0xff] %v2363_v11  ;;  %v2336_v52 = vsub.f32 1.0, %v2335_v22 }
 0x2a9   : > { %v2337_v21 = vmul.f32 %v2742_v17, %v2336_v52 }
 0x2ab   : > { %v2338_v9 = vadd.f32 %v2742_v17, %v2337_v21 }
 0x2ad   : > { %v2342_v4 = vsel %vm2341_vm0, %v2742_v17, %v2338_v9 }
 0x2ae   : > { %v2347_v45 = vsel %vm2344_vm1, %v2346_v43, %v2342_v4 }
 0x2af   : > { %v2364_v51 = vmul.f32 %v2347_v45, %v2044_v8 }
 0x2b1   : > { %2380 = vst [vmem:[%s3108_s21 + $0x78] sm:$0xff] %v2364_v51 }
 0x2b2   : > { %2873 = shalt.err (!%p2870_p13)
}
 0x2b3   : > { %s2952_s21 = smov 128   ;;  %s2953_s6 = smov 8  }
 0x2b4   : > { %2593 = dma.vmem_to_hbm [thread:$0]  (%p3026_p3), %s2398_s29, 2048, %s2400_s9, %s2382_s28, %s2952_s21, %s2952_s21, %s2953_s6  }
 0x2b5 PF: > { %p2607_p0 = scmp.ge.s32.totalorder %s2946_s19, 2  ;;  %s2414_s11 = sand.u32 1, %s2918_s12  }
 0x2b6   : > { %s2415_s4 = scalar_lea.sflag [#allocation7], %s2414_s11 }
 0x2b7   : > { %p2600_p1 = pnand %p2607_p0, %p3035_p8 }
 0x2b9   : > { %p2601_p2 = pneg %p2600_p1 }
 0x2bb   : > { %2913 = dma.done.wait (%p2601_p2), %s2415_s4, 2048  }
 0x2bc   : > { %2915 = vsyncadd (%p2601_p2), %s2415_s4, 4294965248  ;;  %s17_s19 = sadd.s32 1, %s2946_s19   ;;  %s3916_s26 = sld [smem:[#allocation18_spill]] }
 0x2bd   : > { %p14_p4 = scmp.ge.s32.totalorder %s17_s19, 6   ;;  %s3917_s12 = smov %s2922_s13 }
 0x2be   : > { %s3918_s13 = smov %s2926_s14  ;;  %s3919_s14 = smov %s3056_s8 }
 0x2bf   : > { %s3920_s15 = smov %s2938_s17  ;;  %s3921_s16 = smov %s2942_s18 }
 0x2c0   : > { %s3922_s17 = smov %s3925_s22  ;;  %16 = sbr.rel (!%p14_p4) target bundleno = 8 (0x8), region = 96 }
 0x2c2   : > { %s3923_s18 = smov %s3916_s26 }
 0x2c5   :  { %2421 = vsyncpa [#allocation6], 1 }
 0x2c6   :  { %2423 = vsyncpa [#allocation6 + $0x1], 1 }
 0x2c7   :  { %2424 = vsyncpa [#allocation7], 1 }
 0x2c8   :  { %2426 = vsyncpa [#allocation7 + $0x1], 1 }
 0x2c9   :  { %2427 = vsyncmov [#allocation3] }
 0x2cc   :  { %s2428_s27 = vpop.sfrf %2427 }
 0x2cd   :  { %p2534_p3 = scmp.ne.s32.totalorder %s2428_s27, 0 }
 0x2cf   :  { %2432 = shalt.err (%p2534_p3)  }
 0x2d0   :  { %2434 = vsyncmov [#allocation3 + $0x1] }
 0x2d3   :  { %s2435_s8 = vpop.sfrf %2434 }
 0x2d4   :  { %p2535_p8 = scmp.ne.s32.totalorder %s2435_s8, 0 }
 0x2d6   :  { %2439 = shalt.err (%p2535_p8)  }

</bundles_post_ra>
